<compile_context>
chip_gen: v7x
topology: tpu7x:2x2x1
jax: 0.10.0
libtpu: 0.0.40
codegen_flags: <defaults>
</compile_context>

<pallas_src>
import jax
import jax.numpy as jnp
from jax.experimental import pallas as pl
from jax.experimental.pallas import tpu as pltpu


VMEM = pltpu.MemorySpace.VMEM
LANE = 128
SUBLANE = 8


def _round_up(n, m):
    return ((n + m - 1) // m) * m


def _elementwise_dtype():
    """bf16 VPU/EUP exists on v6e/v7x; keep f32 elementwise on v5e and older."""
    try:
        kind = jax.devices()[0].device_kind.lower()
    except Exception:
        return jnp.float32
    if "v6" in kind or "v7" in kind:
        return jnp.bfloat16
    return jnp.float32


# ----------------------------------------------------------------------------
# In-kernel helpers (trace-time Python, fully unrolled)
# ----------------------------------------------------------------------------
def _fastkan_apply(x, vec_ref, sel, w_pack, *, din, inv_denom, cdt):
    """One FastKAN layer on lane-padded f32 activations.

       y = [SiLU(x), RBF(LayerNorm(x))] @ [W_base; W_spline] + b_base

       The spline K axis is densely packed (K = round_up(G*din, LANE)); the RBF
       input is produced with a 0/1 lane-selection matmul `z @ sel`.  Padded
       lanes of x are zero on entry and zero on exit (weights zero-padded).
    """
    n, din_pad = x.shape
    k_pad = sel.shape[1]
    dout_pad = w_pack.shape[1]
    inv_din = 1.0 / float(din)

    ln_g = vec_ref[0:1, 0:din_pad]
    ln_b = vec_ref[1:2, 0:din_pad]
    b_base = vec_ref[2:3, 0:dout_pad]
    grid_c = vec_ref[3:4, 0:k_pad].astype(cdt)

    # LayerNorm over the active lanes.  Padded lanes of x are zero, so the sums are
    # exact; gamma/beta are zero on padded lanes, so z stays zero there.  f32 stats.
    mean = jnp.sum(x, axis=-1, keepdims=True) * inv_din
    ex2 = jnp.sum(x * x, axis=-1, keepdims=True) * inv_din
    var = ex2 - mean * mean
    z = (x - mean) * jax.lax.rsqrt(var + 1e-5) * ln_g + ln_b

    # Densely packed RBF input: z_rep[:, g*din + d] = z[:, d]  (tiny bf16 MXU matmul).
    z_rep = jnp.dot(z.astype(jnp.bfloat16), sel, preferred_element_type=jnp.float32)
    diff = (z_rep.astype(cdt) - grid_c) * inv_denom
    phi = jnp.exp(-(diff * diff))                    # bf16 on v6e/v7x, f32 on v5e

    base = jax.nn.silu(x.astype(cdt))

    # Fused base + spline matmul against the pre-stacked weight slab.
    ks = jnp.concatenate([base.astype(jnp.bfloat16), phi.astype(jnp.bfloat16)], axis=1)
    return jnp.dot(ks, w_pack, preferred_element_type=jnp.float32) + b_base


def _build_fused_kernel(conv_meta, head_meta, num_classes, cdt):
    """conv_meta: per GNN layer, list of per-FastKAN-sublayer static dicts.
       head_meta: per head FastKAN sublayer static dicts."""

    def kernel(*refs):
        out_ref = refs[-1]
        it = iter(refs[:-1])

        adj = next(it)[...]          # (N_pad, N_pad)  bf16, A[target, source]
        pool = next(it)[...]         # (G_pad, N_pad)  bf16, one-hot graph membership
        x = next(it)[...]            # (N_pad, F_pad)  f32

        for layer_meta in conv_meta:
            # GINConv aggregation (eps = 0): x <- x + A @ x
            x = x + jnp.dot(adj, x.astype(jnp.bfloat16),
                            preferred_element_type=jnp.float32)
            # GINConv's FastKAN MLP
            for meta in layer_meta:
                vec_ref = next(it)
                sel = next(it)[...]
                wp = next(it)[...]
                x = _fastkan_apply(x, vec_ref, sel, wp, cdt=cdt, **meta)
            # BatchNorm1d (eval mode), folded to scale/shift at init time.
            bn_ref = next(it)
            x = x * bn_ref[0:1, :] + bn_ref[1:2, :]
            # Dropout: identity at inference.

        # global_add_pool as dense matmul with the one-hot pooling matrix.
        h = jnp.dot(pool, x.astype(jnp.bfloat16), preferred_element_type=jnp.float32)

        # Head FastKAN
        for meta in head_meta:
            vec_ref = next(it)
            sel = next(it)[...]
            wp = next(it)[...]
            h = _fastkan_apply(h, vec_ref, sel, wp, cdt=cdt, **meta)

        # Numerically stable log_softmax over the active class lanes only.
        cls = jax.lax.broadcasted_iota(jnp.int32, h.shape, 1)
        logits = jnp.where(cls < num_classes, h, -1e30)
        mx = jnp.max(logits, axis=1, keepdims=True)
        s = logits - mx
        lse = jnp.log(jnp.sum(jnp.exp(s), axis=1, keepdims=True))
        out_ref[...] = s - lse

    return kernel


# ----------------------------------------------------------------------------
# Parameter construction (deterministic, synthetic, pre-padded, pre-packed)
# ----------------------------------------------------------------------------
def make_fastkan_params(key, sizes, num_grids, grid_min=-2.0, grid_max=2.0):
    """FastKAN(layers_hidden=sizes, num_grids=num_grids) params, lane-padded & packed."""
    layers = []
    for din, dout in zip(sizes[:-1], sizes[1:]):
        key, k1, k2, k3 = jax.random.split(key, 4)
        din_p = _round_up(din, LANE)
        dout_p = _round_up(dout, LANE)
        k_dense = num_grids * din
        k_pad = _round_up(k_dense, LANE)

        grid = jnp.linspace(grid_min, grid_max, num_grids).astype(jnp.float32)
        denom = (grid_max - grid_min) / (num_grids - 1)

        # Packed small-vector slab: rows = [ln_gamma, ln_beta, b_base, grid_centers].
        w_vec = max(din_p, dout_p, k_pad)
        b_b = 0.01 * jax.random.normal(k3, (dout,), jnp.float32)
        vec = jnp.zeros((4, w_vec), jnp.float32)
        vec = vec.at[0, :din].set(1.0)                       # LayerNorm gamma
        #            row 1: LayerNorm beta (zeros)
        vec = vec.at[2, :dout].set(b_b)                      # base-branch bias
        vec = vec.at[3, :k_dense].set(jnp.repeat(grid, din))  # dense grid centers

        # 0/1 lane-selection matrix: sel[d, g*din + d] = 1.
        cols = jnp.arange(k_dense)
        sel = jnp.zeros((din_p, k_pad), jnp.float32)
        sel = sel.at[cols % din, cols].set(1.0).astype(jnp.bfloat16)

        # Pre-stacked [W_base; W_spline] weight slab (densely packed spline rows), bf16.
        w_sp = 0.1 * jax.random.normal(k1, (num_grids, din, dout), jnp.float32)
        w_sp_pad = jnp.zeros((k_pad, dout_p), jnp.float32)
        w_sp_pad = w_sp_pad.at[:k_dense, :dout].set(w_sp.reshape(k_dense, dout))
        w_b = jax.random.normal(k2, (din, dout), jnp.float32) / jnp.sqrt(din)
        w_base_pad = jnp.zeros((din_p, dout_p), jnp.float32).at[:din, :dout].set(w_b)
        w_pack = jnp.concatenate([w_base_pad, w_sp_pad], axis=0).astype(jnp.bfloat16)

        layers.append(dict(
            arrays=(vec, sel, w_pack),
            meta=dict(din=int(din), inv_denom=float(1.0 / denom)),
        ))
    return layers


def init_params(key, gnn_layers, num_features, hidden, num_classes,
                hidden_layers, grid_size):
    h_p = _round_up(hidden, LANE)
    convs, bns = [], []
    for i in range(gnn_layers):
        key, sub = jax.random.split(key)
        in_dim = num_features if i == 0 else hidden
        sizes = [in_dim] + [hidden] * (hidden_layers - 1) + [hidden]
        convs.append(make_fastkan_params(sub, sizes, grid_size))
    for _ in range(gnn_layers):
        key, k1, k2 = jax.random.split(key, 3)
        gamma = 1.0 + 0.1 * jax.random.normal(k1, (hidden,), jnp.float32)
        beta = 0.1 * jax.random.normal(k2, (hidden,), jnp.float32)
        mean = jnp.zeros((hidden,), jnp.float32)
        var = jnp.ones((hidden,), jnp.float32)
        # Eval-mode BN folded to scale/shift (exact same numerics).
        scale = gamma * jax.lax.rsqrt(var + 1e-5)
        shift = beta - mean * scale
        bn = jnp.zeros((2, h_p), jnp.float32)
        bn = bn.at[0, :hidden].set(scale).at[1, :hidden].set(shift)
        bns.append(bn)
    key, sub = jax.random.split(key)
    kan_sizes = [hidden] + [hidden] * (hidden_layers - 1) + [num_classes]
    kan = make_fastkan_params(sub, kan_sizes, grid_size)
    return dict(conv=convs, bn=bns, kan=kan,
                num_features=num_features, num_classes=num_classes)


# ----------------------------------------------------------------------------
# Forward pass (mirrors FASTKAGIN.forward) — one fused pallas_call
# ----------------------------------------------------------------------------
def fastkagin_forward(params, x, edge_index, batch, num_graphs):
    n = x.shape[0]
    n_pad = _round_up(max(n, SUBLANE), SUBLANE)
    g_pad = _round_up(max(num_graphs, 1), SUBLANE)
    f_pad = _round_up(params["num_features"], LANE)
    num_classes = params["num_classes"]
    c_pad = _round_up(num_classes, LANE)

    # glue (plain JAX): dense adjacency A[target, source] and one-hot pooling matrix
    adj = jnp.zeros((n_pad, n_pad), jnp.float32)
    adj = adj.at[edge_index[1], edge_index[0]].add(1.0).astype(jnp.bfloat16)
    pool_mat = jnp.zeros((g_pad, n_pad), jnp.float32)
    pool_mat = pool_mat.at[batch, jnp.arange(n)].set(1.0).astype(jnp.bfloat16)
    x_pad = jnp.zeros((n_pad, f_pad), jnp.float32).at[:n, :x.shape[1]].set(x)

    flat_inputs = [adj, pool_mat, x_pad]
    conv_meta = []
    for layer, bn in zip(params["conv"], params["bn"]):
        lm = []
        for sub in layer:
            flat_inputs.extend(sub["arrays"])
            lm.append(sub["meta"])
        flat_inputs.append(bn)
        conv_meta.append(lm)
    head_meta = []
    for sub in params["kan"]:
        flat_inputs.extend(sub["arrays"])
        head_meta.append(sub["meta"])

    cdt = _elementwise_dtype()
    kernel = _build_fused_kernel(conv_meta, head_meta, num_classes, cdt)
    out_padded = pl.pallas_call(
        kernel,
        out_shape=jax.ShapeDtypeStruct((g_pad, c_pad), jnp.float32),
        in_specs=[pl.BlockSpec(memory_space=VMEM)] * len(flat_inputs),
        out_specs=pl.BlockSpec(memory_space=VMEM),
        compiler_params=pltpu.CompilerParams(vmem_limit_bytes=64 * 1024 * 1024),
    )(*flat_inputs)
    return out_padded[:num_graphs, :num_classes]


# ----------------------------------------------------------------------------
if __name__ == "__main__":
    N_NODES, NUM_FEATURES, HIDDEN, NUM_CLASSES = 16, 8, 32, 4
    GNN_LAYERS, HIDDEN_LAYERS, GRID_SIZE = 2, 2, 8
    NUM_GRAPHS = 2

    key = jax.random.PRNGKey(0)
    kx, kp = jax.random.split(key)

    # node features
    x = jax.random.normal(kx, (N_NODES, NUM_FEATURES), jnp.float32)

    # two graphs of 8 nodes each, bidirectional ring topology
    src, dst = [], []
    for g0 in (0, 8):
        for i in range(8):
            a, b = g0 + i, g0 + (i + 1) % 8
            src += [a, b]
            dst += [b, a]
    edge_index = jnp.array([src, dst], dtype=jnp.int32)        # (2, 32)
    batch = jnp.array([0] * 8 + [1] * 8, dtype=jnp.int32)      # (16,)

    params = init_params(kp, GNN_LAYERS, NUM_FEATURES, HIDDEN, NUM_CLASSES,
                         HIDDEN_LAYERS, GRID_SIZE)

    out = fastkagin_forward(params, x, edge_index, batch, NUM_GRAPHS)
    out = jax.block_until_ready(out)

    assert out.shape == (NUM_GRAPHS, NUM_CLASSES)
    assert bool(jnp.all(jnp.isfinite(out)))
    # rows of log_softmax should exp-sum to 1
    assert bool(jnp.allclose(jnp.exp(out).sum(axis=1), 1.0, atol=1e-4))
    print("KERNEL_OK")
</pallas_src>

<mosaic_0001>
module attributes {stable_mosaic.version = 11 : i64} {
  func.func @kernel(%arg0: memref<16x16xbf16, #tpu.memory_space<vmem>>, %arg1: memref<8x16xbf16, #tpu.memory_space<vmem>>, %arg2: memref<16x128xf32, #tpu.memory_space<vmem>>, %arg3: memref<4x128xf32, #tpu.memory_space<vmem>>, %arg4: memref<128x128xbf16, #tpu.memory_space<vmem>>, %arg5: memref<256x128xbf16, #tpu.memory_space<vmem>>, %arg6: memref<4x256xf32, #tpu.memory_space<vmem>>, %arg7: memref<128x256xbf16, #tpu.memory_space<vmem>>, %arg8: memref<384x128xbf16, #tpu.memory_space<vmem>>, %arg9: memref<2x128xf32, #tpu.memory_space<vmem>>, %arg10: memref<4x256xf32, #tpu.memory_space<vmem>>, %arg11: memref<128x256xbf16, #tpu.memory_space<vmem>>, %arg12: memref<384x128xbf16, #tpu.memory_space<vmem>>, %arg13: memref<4x256xf32, #tpu.memory_space<vmem>>, %arg14: memref<128x256xbf16, #tpu.memory_space<vmem>>, %arg15: memref<384x128xbf16, #tpu.memory_space<vmem>>, %arg16: memref<2x128xf32, #tpu.memory_space<vmem>>, %arg17: memref<4x256xf32, #tpu.memory_space<vmem>>, %arg18: memref<128x256xbf16, #tpu.memory_space<vmem>>, %arg19: memref<384x128xbf16, #tpu.memory_space<vmem>>, %arg20: memref<4x256xf32, #tpu.memory_space<vmem>>, %arg21: memref<128x256xbf16, #tpu.memory_space<vmem>>, %arg22: memref<384x128xbf16, #tpu.memory_space<vmem>>, %arg23: memref<8x128xf32, #tpu.memory_space<vmem>>) attributes {dimension_semantics = [], scalar_prefetch = 0 : i64, scratch_operands = 0 : i64, tpu.core_type = #tpu.core_type<tc>} {
    %c0 = arith.constant 0 : index
    %c0_0 = arith.constant 0 : index
    %0 = vector.load %arg0[%c0, %c0_0] : memref<16x16xbf16, #tpu.memory_space<vmem>>, vector<16x16xbf16>
    %c0_1 = arith.constant 0 : index
    %c0_2 = arith.constant 0 : index
    %1 = vector.load %arg1[%c0_1, %c0_2] : memref<8x16xbf16, #tpu.memory_space<vmem>>, vector<8x16xbf16>
    %c0_3 = arith.constant 0 : index
    %c0_4 = arith.constant 0 : index
    %2 = vector.load %arg2[%c0_3, %c0_4] : memref<16x128xf32, #tpu.memory_space<vmem>>, vector<16x128xf32>
    %3 = arith.truncf %2 : vector<16x128xf32> to vector<16x128xbf16>
    %cst = arith.constant dense<0.000000e+00> : vector<16x128xf32>
    %4 = tpu.matmul %0, %3, %cst {dimension_numbers = #tpu.dot_dimension_numbers<[1], [0], [0], [1], [0, 0, 1, 1], [], []>} : vector<16x16xbf16>, vector<16x128xbf16>, vector<16x128xf32> -> vector<16x128xf32>
    %5 = arith.addf %2, %4 : vector<16x128xf32>
    %c0_5 = arith.constant 0 : index
    %c0_6 = arith.constant 0 : index
    %6 = vector.load %arg4[%c0_5, %c0_6] : memref<128x128xbf16, #tpu.memory_space<vmem>>, vector<128x128xbf16>
    %c0_7 = arith.constant 0 : index
    %c0_8 = arith.constant 0 : index
    %7 = vector.load %arg5[%c0_7, %c0_8] : memref<256x128xbf16, #tpu.memory_space<vmem>>, vector<256x128xbf16>
    %c0_9 = arith.constant 0 : index
    %c0_10 = arith.constant 0 : index
    %8 = vector.load %arg3[%c0_9, %c0_10] : memref<4x128xf32, #tpu.memory_space<vmem>>, vector<1x128xf32>
    %c1 = arith.constant 1 : index
    %c0_11 = arith.constant 0 : index
    %9 = vector.load %arg3[%c1, %c0_11] : memref<4x128xf32, #tpu.memory_space<vmem>>, vector<1x128xf32>
    %c2 = arith.constant 2 : index
    %c0_12 = arith.constant 0 : index
    %10 = vector.load %arg3[%c2, %c0_12] : memref<4x128xf32, #tpu.memory_space<vmem>>, vector<1x128xf32>
    %c3 = arith.constant 3 : index
    %c0_13 = arith.constant 0 : index
    %11 = vector.load %arg3[%c3, %c0_13] : memref<4x128xf32, #tpu.memory_space<vmem>>, vector<1x128xf32>
    %cst_14 = arith.constant dense<0.000000e+00> : vector<16xf32>
    %12 = vector.multi_reduction <add>, %5, %cst_14 [1] : vector<16x128xf32> to vector<16xf32>
    %13 = vector.shape_cast %12 : vector<16xf32> to vector<16x1xf32>
    %cst_15 = arith.constant 1.250000e-01 : f32
    %14 = vector.broadcast %cst_15 : f32 to vector<16x1xf32>
    %15 = arith.mulf %13, %14 : vector<16x1xf32>
    %16 = arith.mulf %5, %5 : vector<16x128xf32>
    %cst_16 = arith.constant dense<0.000000e+00> : vector<16xf32>
    %17 = vector.multi_reduction <add>, %16, %cst_16 [1] : vector<16x128xf32> to vector<16xf32>
    %18 = vector.shape_cast %17 : vector<16xf32> to vector<16x1xf32>
    %cst_17 = arith.constant 1.250000e-01 : f32
    %19 = vector.broadcast %cst_17 : f32 to vector<16x1xf32>
    %20 = arith.mulf %18, %19 : vector<16x1xf32>
    %21 = arith.mulf %15, %15 : vector<16x1xf32>
    %22 = arith.subf %20, %21 : vector<16x1xf32>
    %23 = vector.broadcast %15 : vector<16x1xf32> to vector<16x128xf32>
    %24 = arith.subf %5, %23 : vector<16x128xf32>
    %cst_18 = arith.constant 9.99999974E-6 : f32
    %25 = vector.broadcast %cst_18 : f32 to vector<16x1xf32>
    %26 = arith.addf %22, %25 : vector<16x1xf32>
    %27 = math.rsqrt %26 : vector<16x1xf32>
    %28 = vector.broadcast %27 : vector<16x1xf32> to vector<16x128xf32>
    %29 = arith.mulf %24, %28 : vector<16x128xf32>
    %30 = vector.broadcast %8 : vector<1x128xf32> to vector<16x128xf32>
    %31 = arith.mulf %29, %30 : vector<16x128xf32>
    %32 = vector.broadcast %9 : vector<1x128xf32> to vector<16x128xf32>
    %33 = arith.addf %31, %32 : vector<16x128xf32>
    %34 = arith.truncf %33 : vector<16x128xf32> to vector<16x128xbf16>
    %cst_19 = arith.constant dense<0.000000e+00> : vector<16x128xf32>
    %35 = tpu.matmul %34, %6, %cst_19 {dimension_numbers = #tpu.dot_dimension_numbers<[1], [0], [0], [1], [0, 0, 1, 1], [], []>} : vector<16x128xbf16>, vector<128x128xbf16>, vector<16x128xf32> -> vector<16x128xf32>
    %36 = vector.broadcast %11 : vector<1x128xf32> to vector<16x128xf32>
    %37 = arith.subf %35, %36 : vector<16x128xf32>
    %cst_20 = arith.constant 1.750000e+00 : f32
    %38 = vector.broadcast %cst_20 : f32 to vector<16x128xf32>
    %39 = arith.mulf %37, %38 : vector<16x128xf32>
    %40 = arith.mulf %39, %39 : vector<16x128xf32>
    %cst_21 = arith.constant 0.000000e+00 : f32
    %41 = vector.broadcast %cst_21 : f32 to vector<16x128xf32>
    %42 = arith.subf %41, %40 : vector<16x128xf32>
    %43 = math.exp %42 : vector<16x128xf32>
    %44 = arith.negf %5 : vector<16x128xf32>
    %45 = math.exp %44 : vector<16x128xf32>
    %cst_22 = arith.constant 1.000000e+00 : f32
    %46 = vector.broadcast %cst_22 : f32 to vector<16x128xf32>
    %47 = arith.addf %46, %45 : vector<16x128xf32>
    %48 = arith.divf %46, %47 : vector<16x128xf32>
    %49 = arith.mulf %5, %48 : vector<16x128xf32>
    %50 = arith.truncf %49 : vector<16x128xf32> to vector<16x128xbf16>
    %51 = arith.truncf %43 : vector<16x128xf32> to vector<16x128xbf16>
    %52 = tpu.concatenate %50, %51 in 1 : vector<16x128xbf16>, vector<16x128xbf16> -> vector<16x256xbf16>
    %cst_23 = arith.constant dense<0.000000e+00> : vector<16x128xf32>
    %53 = tpu.matmul %52, %7, %cst_23 {dimension_numbers = #tpu.dot_dimension_numbers<[1], [0], [0], [1], [0, 0, 1, 1], [], []>} : vector<16x256xbf16>, vector<256x128xbf16>, vector<16x128xf32> -> vector<16x128xf32>
    %54 = vector.broadcast %10 : vector<1x128xf32> to vector<16x128xf32>
    %55 = arith.addf %53, %54 : vector<16x128xf32>
    %c0_24 = arith.constant 0 : index
    %c0_25 = arith.constant 0 : index
    %56 = vector.load %arg7[%c0_24, %c0_25] : memref<128x256xbf16, #tpu.memory_space<vmem>>, vector<128x256xbf16>
    %c0_26 = arith.constant 0 : index
    %c0_27 = arith.constant 0 : index
    %57 = vector.load %arg8[%c0_26, %c0_27] : memref<384x128xbf16, #tpu.memory_space<vmem>>, vector<384x128xbf16>
    %c0_28 = arith.constant 0 : index
    %c0_29 = arith.constant 0 : index
    %58 = vector.load %arg6[%c0_28, %c0_29] : memref<4x256xf32, #tpu.memory_space<vmem>>, vector<1x128xf32>
    %c1_30 = arith.constant 1 : index
    %c0_31 = arith.constant 0 : index
    %59 = vector.load %arg6[%c1_30, %c0_31] : memref<4x256xf32, #tpu.memory_space<vmem>>, vector<1x128xf32>
    %c2_32 = arith.constant 2 : index
    %c0_33 = arith.constant 0 : index
    %60 = vector.load %arg6[%c2_32, %c0_33] : memref<4x256xf32, #tpu.memory_space<vmem>>, vector<1x128xf32>
    %c3_34 = arith.constant 3 : index
    %c0_35 = arith.constant 0 : index
    %61 = vector.load %arg6[%c3_34, %c0_35] : memref<4x256xf32, #tpu.memory_space<vmem>>, vector<1x256xf32>
    %cst_36 = arith.constant dense<0.000000e+00> : vector<16xf32>
    %62 = vector.multi_reduction <add>, %55, %cst_36 [1] : vector<16x128xf32> to vector<16xf32>
    %63 = vector.shape_cast %62 : vector<16xf32> to vector<16x1xf32>
    %cst_37 = arith.constant 3.125000e-02 : f32
    %64 = vector.broadcast %cst_37 : f32 to vector<16x1xf32>
    %65 = arith.mulf %63, %64 : vector<16x1xf32>
    %66 = arith.mulf %55, %55 : vector<16x128xf32>
    %cst_38 = arith.constant dense<0.000000e+00> : vector<16xf32>
    %67 = vector.multi_reduction <add>, %66, %cst_38 [1] : vector<16x128xf32> to vector<16xf32>
    %68 = vector.shape_cast %67 : vector<16xf32> to vector<16x1xf32>
    %cst_39 = arith.constant 3.125000e-02 : f32
    %69 = vector.broadcast %cst_39 : f32 to vector<16x1xf32>
    %70 = arith.mulf %68, %69 : vector<16x1xf32>
    %71 = arith.mulf %65, %65 : vector<16x1xf32>
    %72 = arith.subf %70, %71 : vector<16x1xf32>
    %73 = vector.broadcast %65 : vector<16x1xf32> to vector<16x128xf32>
    %74 = arith.subf %55, %73 : vector<16x128xf32>
    %cst_40 = arith.constant 9.99999974E-6 : f32
    %75 = vector.broadcast %cst_40 : f32 to vector<16x1xf32>
    %76 = arith.addf %72, %75 : vector<16x1xf32>
    %77 = math.rsqrt %76 : vector<16x1xf32>
    %78 = vector.broadcast %77 : vector<16x1xf32> to vector<16x128xf32>
    %79 = arith.mulf %74, %78 : vector<16x128xf32>
    %80 = vector.broadcast %58 : vector<1x128xf32> to vector<16x128xf32>
    %81 = arith.mulf %79, %80 : vector<16x128xf32>
    %82 = vector.broadcast %59 : vector<1x128xf32> to vector<16x128xf32>
    %83 = arith.addf %81, %82 : vector<16x128xf32>
    %84 = arith.truncf %83 : vector<16x128xf32> to vector<16x128xbf16>
    %cst_41 = arith.constant dense<0.000000e+00> : vector<16x256xf32>
    %85 = tpu.matmul %84, %56, %cst_41 {dimension_numbers = #tpu.dot_dimension_numbers<[1], [0], [0], [1], [0, 0, 1, 1], [], []>} : vector<16x128xbf16>, vector<128x256xbf16>, vector<16x256xf32> -> vector<16x256xf32>
    %86 = vector.broadcast %61 : vector<1x256xf32> to vector<16x256xf32>
    %87 = arith.subf %85, %86 : vector<16x256xf32>
    %cst_42 = arith.constant 1.750000e+00 : f32
    %88 = vector.broadcast %cst_42 : f32 to vector<16x256xf32>
    %89 = arith.mulf %87, %88 : vector<16x256xf32>
    %90 = arith.mulf %89, %89 : vector<16x256xf32>
    %cst_43 = arith.constant 0.000000e+00 : f32
    %91 = vector.broadcast %cst_43 : f32 to vector<16x256xf32>
    %92 = arith.subf %91, %90 : vector<16x256xf32>
    %93 = math.exp %92 : vector<16x256xf32>
    %94 = arith.negf %55 : vector<16x128xf32>
    %95 = math.exp %94 : vector<16x128xf32>
    %cst_44 = arith.constant 1.000000e+00 : f32
    %96 = vector.broadcast %cst_44 : f32 to vector<16x128xf32>
    %97 = arith.addf %96, %95 : vector<16x128xf32>
    %98 = arith.divf %96, %97 : vector<16x128xf32>
    %99 = arith.mulf %55, %98 : vector<16x128xf32>
    %100 = arith.truncf %99 : vector<16x128xf32> to vector<16x128xbf16>
    %101 = arith.truncf %93 : vector<16x256xf32> to vector<16x256xbf16>
    %102 = tpu.concatenate %100, %101 in 1 : vector<16x128xbf16>, vector<16x256xbf16> -> vector<16x384xbf16>
    %cst_45 = arith.constant dense<0.000000e+00> : vector<16x128xf32>
    %103 = tpu.matmul %102, %57, %cst_45 {dimension_numbers = #tpu.dot_dimension_numbers<[1], [0], [0], [1], [0, 0, 1, 1], [], []>} : vector<16x384xbf16>, vector<384x128xbf16>, vector<16x128xf32> -> vector<16x128xf32>
    %104 = vector.broadcast %60 : vector<1x128xf32> to vector<16x128xf32>
    %105 = arith.addf %103, %104 : vector<16x128xf32>
    %c0_46 = arith.constant 0 : index
    %c0_47 = arith.constant 0 : index
    %106 = vector.load %arg9[%c0_46, %c0_47] : memref<2x128xf32, #tpu.memory_space<vmem>>, vector<1x128xf32>
    %107 = vector.broadcast %106 : vector<1x128xf32> to vector<16x128xf32>
    %108 = arith.mulf %105, %107 : vector<16x128xf32>
    %c1_48 = arith.constant 1 : index
    %c0_49 = arith.constant 0 : index
    %109 = vector.load %arg9[%c1_48, %c0_49] : memref<2x128xf32, #tpu.memory_space<vmem>>, vector<1x128xf32>
    %110 = vector.broadcast %109 : vector<1x128xf32> to vector<16x128xf32>
    %111 = arith.addf %108, %110 : vector<16x128xf32>
    %112 = arith.truncf %111 : vector<16x128xf32> to vector<16x128xbf16>
    %cst_50 = arith.constant dense<0.000000e+00> : vector<16x128xf32>
    %113 = tpu.matmul %0, %112, %cst_50 {dimension_numbers = #tpu.dot_dimension_numbers<[1], [0], [0], [1], [0, 0, 1, 1], [], []>} : vector<16x16xbf16>, vector<16x128xbf16>, vector<16x128xf32> -> vector<16x128xf32>
    %114 = arith.addf %111, %113 : vector<16x128xf32>
    %c0_51 = arith.constant 0 : index
    %c0_52 = arith.constant 0 : index
    %115 = vector.load %arg11[%c0_51, %c0_52] : memref<128x256xbf16, #tpu.memory_space<vmem>>, vector<128x256xbf16>
    %c0_53 = arith.constant 0 : index
    %c0_54 = arith.constant 0 : index
    %116 = vector.load %arg12[%c0_53, %c0_54] : memref<384x128xbf16, #tpu.memory_space<vmem>>, vector<384x128xbf16>
    %c0_55 = arith.constant 0 : index
    %c0_56 = arith.constant 0 : index
    %117 = vector.load %arg10[%c0_55, %c0_56] : memref<4x256xf32, #tpu.memory_space<vmem>>, vector<1x128xf32>
    %c1_57 = arith.constant 1 : index
    %c0_58 = arith.constant 0 : index
    %118 = vector.load %arg10[%c1_57, %c0_58] : memref<4x256xf32, #tpu.memory_space<vmem>>, vector<1x128xf32>
    %c2_59 = arith.constant 2 : index
    %c0_60 = arith.constant 0 : index
    %119 = vector.load %arg10[%c2_59, %c0_60] : memref<4x256xf32, #tpu.memory_space<vmem>>, vector<1x128xf32>
    %c3_61 = arith.constant 3 : index
    %c0_62 = arith.constant 0 : index
    %120 = vector.load %arg10[%c3_61, %c0_62] : memref<4x256xf32, #tpu.memory_space<vmem>>, vector<1x256xf32>
    %cst_63 = arith.constant dense<0.000000e+00> : vector<16xf32>
    %121 = vector.multi_reduction <add>, %114, %cst_63 [1] : vector<16x128xf32> to vector<16xf32>
    %122 = vector.shape_cast %121 : vector<16xf32> to vector<16x1xf32>
    %cst_64 = arith.constant 3.125000e-02 : f32
    %123 = vector.broadcast %cst_64 : f32 to vector<16x1xf32>
    %124 = arith.mulf %122, %123 : vector<16x1xf32>
    %125 = arith.mulf %114, %114 : vector<16x128xf32>
    %cst_65 = arith.constant dense<0.000000e+00> : vector<16xf32>
    %126 = vector.multi_reduction <add>, %125, %cst_65 [1] : vector<16x128xf32> to vector<16xf32>
    %127 = vector.shape_cast %126 : vector<16xf32> to vector<16x1xf32>
    %cst_66 = arith.constant 3.125000e-02 : f32
    %128 = vector.broadcast %cst_66 : f32 to vector<16x1xf32>
    %129 = arith.mulf %127, %128 : vector<16x1xf32>
    %130 = arith.mulf %124, %124 : vector<16x1xf32>
    %131 = arith.subf %129, %130 : vector<16x1xf32>
    %132 = vector.broadcast %124 : vector<16x1xf32> to vector<16x128xf32>
    %133 = arith.subf %114, %132 : vector<16x128xf32>
    %cst_67 = arith.constant 9.99999974E-6 : f32
    %134 = vector.broadcast %cst_67 : f32 to vector<16x1xf32>
    %135 = arith.addf %131, %134 : vector<16x1xf32>
    %136 = math.rsqrt %135 : vector<16x1xf32>
    %137 = vector.broadcast %136 : vector<16x1xf32> to vector<16x128xf32>
    %138 = arith.mulf %133, %137 : vector<16x128xf32>
    %139 = vector.broadcast %117 : vector<1x128xf32> to vector<16x128xf32>
    %140 = arith.mulf %138, %139 : vector<16x128xf32>
    %141 = vector.broadcast %118 : vector<1x128xf32> to vector<16x128xf32>
    %142 = arith.addf %140, %141 : vector<16x128xf32>
    %143 = arith.truncf %142 : vector<16x128xf32> to vector<16x128xbf16>
    %cst_68 = arith.constant dense<0.000000e+00> : vector<16x256xf32>
    %144 = tpu.matmul %143, %115, %cst_68 {dimension_numbers = #tpu.dot_dimension_numbers<[1], [0], [0], [1], [0, 0, 1, 1], [], []>} : vector<16x128xbf16>, vector<128x256xbf16>, vector<16x256xf32> -> vector<16x256xf32>
    %145 = vector.broadcast %120 : vector<1x256xf32> to vector<16x256xf32>
    %146 = arith.subf %144, %145 : vector<16x256xf32>
    %cst_69 = arith.constant 1.750000e+00 : f32
    %147 = vector.broadcast %cst_69 : f32 to vector<16x256xf32>
    %148 = arith.mulf %146, %147 : vector<16x256xf32>
    %149 = arith.mulf %148, %148 : vector<16x256xf32>
    %cst_70 = arith.constant 0.000000e+00 : f32
    %150 = vector.broadcast %cst_70 : f32 to vector<16x256xf32>
    %151 = arith.subf %150, %149 : vector<16x256xf32>
    %152 = math.exp %151 : vector<16x256xf32>
    %153 = arith.negf %114 : vector<16x128xf32>
    %154 = math.exp %153 : vector<16x128xf32>
    %cst_71 = arith.constant 1.000000e+00 : f32
    %155 = vector.broadcast %cst_71 : f32 to vector<16x128xf32>
    %156 = arith.addf %155, %154 : vector<16x128xf32>
    %157 = arith.divf %155, %156 : vector<16x128xf32>
    %158 = arith.mulf %114, %157 : vector<16x128xf32>
    %159 = arith.truncf %158 : vector<16x128xf32> to vector<16x128xbf16>
    %160 = arith.truncf %152 : vector<16x256xf32> to vector<16x256xbf16>
    %161 = tpu.concatenate %159, %160 in 1 : vector<16x128xbf16>, vector<16x256xbf16> -> vector<16x384xbf16>
    %cst_72 = arith.constant dense<0.000000e+00> : vector<16x128xf32>
    %162 = tpu.matmul %161, %116, %cst_72 {dimension_numbers = #tpu.dot_dimension_numbers<[1], [0], [0], [1], [0, 0, 1, 1], [], []>} : vector<16x384xbf16>, vector<384x128xbf16>, vector<16x128xf32> -> vector<16x128xf32>
    %163 = vector.broadcast %119 : vector<1x128xf32> to vector<16x128xf32>
    %164 = arith.addf %162, %163 : vector<16x128xf32>
    %c0_73 = arith.constant 0 : index
    %c0_74 = arith.constant 0 : index
    %165 = vector.load %arg14[%c0_73, %c0_74] : memref<128x256xbf16, #tpu.memory_space<vmem>>, vector<128x256xbf16>
    %c0_75 = arith.constant 0 : index
    %c0_76 = arith.constant 0 : index
    %166 = vector.load %arg15[%c0_75, %c0_76] : memref<384x128xbf16, #tpu.memory_space<vmem>>, vector<384x128xbf16>
    %c0_77 = arith.constant 0 : index
    %c0_78 = arith.constant 0 : index
    %167 = vector.load %arg13[%c0_77, %c0_78] : memref<4x256xf32, #tpu.memory_space<vmem>>, vector<1x128xf32>
    %c1_79 = arith.constant 1 : index
    %c0_80 = arith.constant 0 : index
    %168 = vector.load %arg13[%c1_79, %c0_80] : memref<4x256xf32, #tpu.memory_space<vmem>>, vector<1x128xf32>
    %c2_81 = arith.constant 2 : index
    %c0_82 = arith.constant 0 : index
    %169 = vector.load %arg13[%c2_81, %c0_82] : memref<4x256xf32, #tpu.memory_space<vmem>>, vector<1x128xf32>
    %c3_83 = arith.constant 3 : index
    %c0_84 = arith.constant 0 : index
    %170 = vector.load %arg13[%c3_83, %c0_84] : memref<4x256xf32, #tpu.memory_space<vmem>>, vector<1x256xf32>
    %cst_85 = arith.constant dense<0.000000e+00> : vector<16xf32>
    %171 = vector.multi_reduction <add>, %164, %cst_85 [1] : vector<16x128xf32> to vector<16xf32>
    %172 = vector.shape_cast %171 : vector<16xf32> to vector<16x1xf32>
    %cst_86 = arith.constant 3.125000e-02 : f32
    %173 = vector.broadcast %cst_86 : f32 to vector<16x1xf32>
    %174 = arith.mulf %172, %173 : vector<16x1xf32>
    %175 = arith.mulf %164, %164 : vector<16x128xf32>
    %cst_87 = arith.constant dense<0.000000e+00> : vector<16xf32>
    %176 = vector.multi_reduction <add>, %175, %cst_87 [1] : vector<16x128xf32> to vector<16xf32>
    %177 = vector.shape_cast %176 : vector<16xf32> to vector<16x1xf32>
    %cst_88 = arith.constant 3.125000e-02 : f32
    %178 = vector.broadcast %cst_88 : f32 to vector<16x1xf32>
    %179 = arith.mulf %177, %178 : vector<16x1xf32>
    %180 = arith.mulf %174, %174 : vector<16x1xf32>
    %181 = arith.subf %179, %180 : vector<16x1xf32>
    %182 = vector.broadcast %174 : vector<16x1xf32> to vector<16x128xf32>
    %183 = arith.subf %164, %182 : vector<16x128xf32>
    %cst_89 = arith.constant 9.99999974E-6 : f32
    %184 = vector.broadcast %cst_89 : f32 to vector<16x1xf32>
    %185 = arith.addf %181, %184 : vector<16x1xf32>
    %186 = math.rsqrt %185 : vector<16x1xf32>
    %187 = vector.broadcast %186 : vector<16x1xf32> to vector<16x128xf32>
    %188 = arith.mulf %183, %187 : vector<16x128xf32>
    %189 = vector.broadcast %167 : vector<1x128xf32> to vector<16x128xf32>
    %190 = arith.mulf %188, %189 : vector<16x128xf32>
    %191 = vector.broadcast %168 : vector<1x128xf32> to vector<16x128xf32>
    %192 = arith.addf %190, %191 : vector<16x128xf32>
    %193 = arith.truncf %192 : vector<16x128xf32> to vector<16x128xbf16>
    %cst_90 = arith.constant dense<0.000000e+00> : vector<16x256xf32>
    %194 = tpu.matmul %193, %165, %cst_90 {dimension_numbers = #tpu.dot_dimension_numbers<[1], [0], [0], [1], [0, 0, 1, 1], [], []>} : vector<16x128xbf16>, vector<128x256xbf16>, vector<16x256xf32> -> vector<16x256xf32>
    %195 = vector.broadcast %170 : vector<1x256xf32> to vector<16x256xf32>
    %196 = arith.subf %194, %195 : vector<16x256xf32>
    %cst_91 = arith.constant 1.750000e+00 : f32
    %197 = vector.broadcast %cst_91 : f32 to vector<16x256xf32>
    %198 = arith.mulf %196, %197 : vector<16x256xf32>
    %199 = arith.mulf %198, %198 : vector<16x256xf32>
    %cst_92 = arith.constant 0.000000e+00 : f32
    %200 = vector.broadcast %cst_92 : f32 to vector<16x256xf32>
    %201 = arith.subf %200, %199 : vector<16x256xf32>
    %202 = math.exp %201 : vector<16x256xf32>
    %203 = arith.negf %164 : vector<16x128xf32>
    %204 = math.exp %203 : vector<16x128xf32>
    %cst_93 = arith.constant 1.000000e+00 : f32
    %205 = vector.broadcast %cst_93 : f32 to vector<16x128xf32>
    %206 = arith.addf %205, %204 : vector<16x128xf32>
    %207 = arith.divf %205, %206 : vector<16x128xf32>
    %208 = arith.mulf %164, %207 : vector<16x128xf32>
    %209 = arith.truncf %208 : vector<16x128xf32> to vector<16x128xbf16>
    %210 = arith.truncf %202 : vector<16x256xf32> to vector<16x256xbf16>
    %211 = tpu.concatenate %209, %210 in 1 : vector<16x128xbf16>, vector<16x256xbf16> -> vector<16x384xbf16>
    %cst_94 = arith.constant dense<0.000000e+00> : vector<16x128xf32>
    %212 = tpu.matmul %211, %166, %cst_94 {dimension_numbers = #tpu.dot_dimension_numbers<[1], [0], [0], [1], [0, 0, 1, 1], [], []>} : vector<16x384xbf16>, vector<384x128xbf16>, vector<16x128xf32> -> vector<16x128xf32>
    %213 = vector.broadcast %169 : vector<1x128xf32> to vector<16x128xf32>
    %214 = arith.addf %212, %213 : vector<16x128xf32>
    %c0_95 = arith.constant 0 : index
    %c0_96 = arith.constant 0 : index
    %215 = vector.load %arg16[%c0_95, %c0_96] : memref<2x128xf32, #tpu.memory_space<vmem>>, vector<1x128xf32>
    %216 = vector.broadcast %215 : vector<1x128xf32> to vector<16x128xf32>
    %217 = arith.mulf %214, %216 : vector<16x128xf32>
    %c1_97 = arith.constant 1 : index
    %c0_98 = arith.constant 0 : index
    %218 = vector.load %arg16[%c1_97, %c0_98] : memref<2x128xf32, #tpu.memory_space<vmem>>, vector<1x128xf32>
    %219 = vector.broadcast %218 : vector<1x128xf32> to vector<16x128xf32>
    %220 = arith.addf %217, %219 : vector<16x128xf32>
    %221 = arith.truncf %220 : vector<16x128xf32> to vector<16x128xbf16>
    %cst_99 = arith.constant dense<0.000000e+00> : vector<8x128xf32>
    %222 = tpu.matmul %1, %221, %cst_99 {dimension_numbers = #tpu.dot_dimension_numbers<[1], [0], [0], [1], [0, 0, 1, 1], [], []>} : vector<8x16xbf16>, vector<16x128xbf16>, vector<8x128xf32> -> vector<8x128xf32>
    %c0_100 = arith.constant 0 : index
    %c0_101 = arith.constant 0 : index
    %223 = vector.load %arg18[%c0_100, %c0_101] : memref<128x256xbf16, #tpu.memory_space<vmem>>, vector<128x256xbf16>
    %c0_102 = arith.constant 0 : index
    %c0_103 = arith.constant 0 : index
    %224 = vector.load %arg19[%c0_102, %c0_103] : memref<384x128xbf16, #tpu.memory_space<vmem>>, vector<384x128xbf16>
    %c0_104 = arith.constant 0 : index
    %c0_105 = arith.constant 0 : index
    %225 = vector.load %arg17[%c0_104, %c0_105] : memref<4x256xf32, #tpu.memory_space<vmem>>, vector<1x128xf32>
    %c1_106 = arith.constant 1 : index
    %c0_107 = arith.constant 0 : index
    %226 = vector.load %arg17[%c1_106, %c0_107] : memref<4x256xf32, #tpu.memory_space<vmem>>, vector<1x128xf32>
    %c2_108 = arith.constant 2 : index
    %c0_109 = arith.constant 0 : index
    %227 = vector.load %arg17[%c2_108, %c0_109] : memref<4x256xf32, #tpu.memory_space<vmem>>, vector<1x128xf32>
    %c3_110 = arith.constant 3 : index
    %c0_111 = arith.constant 0 : index
    %228 = vector.load %arg17[%c3_110, %c0_111] : memref<4x256xf32, #tpu.memory_space<vmem>>, vector<1x256xf32>
    %cst_112 = arith.constant dense<0.000000e+00> : vector<8xf32>
    %229 = vector.multi_reduction <add>, %222, %cst_112 [1] : vector<8x128xf32> to vector<8xf32>
    %230 = vector.shape_cast %229 : vector<8xf32> to vector<8x1xf32>
    %cst_113 = arith.constant 3.125000e-02 : f32
    %231 = vector.broadcast %cst_113 : f32 to vector<8x1xf32>
    %232 = arith.mulf %230, %231 : vector<8x1xf32>
    %233 = arith.mulf %222, %222 : vector<8x128xf32>
    %cst_114 = arith.constant dense<0.000000e+00> : vector<8xf32>
    %234 = vector.multi_reduction <add>, %233, %cst_114 [1] : vector<8x128xf32> to vector<8xf32>
    %235 = vector.shape_cast %234 : vector<8xf32> to vector<8x1xf32>
    %cst_115 = arith.constant 3.125000e-02 : f32
    %236 = vector.broadcast %cst_115 : f32 to vector<8x1xf32>
    %237 = arith.mulf %235, %236 : vector<8x1xf32>
    %238 = arith.mulf %232, %232 : vector<8x1xf32>
    %239 = arith.subf %237, %238 : vector<8x1xf32>
    %240 = vector.broadcast %232 : vector<8x1xf32> to vector<8x128xf32>
    %241 = arith.subf %222, %240 : vector<8x128xf32>
    %cst_116 = arith.constant 9.99999974E-6 : f32
    %242 = vector.broadcast %cst_116 : f32 to vector<8x1xf32>
    %243 = arith.addf %239, %242 : vector<8x1xf32>
    %244 = math.rsqrt %243 : vector<8x1xf32>
    %245 = vector.broadcast %244 : vector<8x1xf32> to vector<8x128xf32>
    %246 = arith.mulf %241, %245 : vector<8x128xf32>
    %247 = vector.broadcast %225 : vector<1x128xf32> to vector<8x128xf32>
    %248 = arith.mulf %246, %247 : vector<8x128xf32>
    %249 = vector.broadcast %226 : vector<1x128xf32> to vector<8x128xf32>
    %250 = arith.addf %248, %249 : vector<8x128xf32>
    %251 = arith.truncf %250 : vector<8x128xf32> to vector<8x128xbf16>
    %cst_117 = arith.constant dense<0.000000e+00> : vector<8x256xf32>
    %252 = tpu.matmul %251, %223, %cst_117 {dimension_numbers = #tpu.dot_dimension_numbers<[1], [0], [0], [1], [0, 0, 1, 1], [], []>} : vector<8x128xbf16>, vector<128x256xbf16>, vector<8x256xf32> -> vector<8x256xf32>
    %253 = vector.broadcast %228 : vector<1x256xf32> to vector<8x256xf32>
    %254 = arith.subf %252, %253 : vector<8x256xf32>
    %cst_118 = arith.constant 1.750000e+00 : f32
    %255 = vector.broadcast %cst_118 : f32 to vector<8x256xf32>
    %256 = arith.mulf %254, %255 : vector<8x256xf32>
    %257 = arith.mulf %256, %256 : vector<8x256xf32>
    %cst_119 = arith.constant 0.000000e+00 : f32
    %258 = vector.broadcast %cst_119 : f32 to vector<8x256xf32>
    %259 = arith.subf %258, %257 : vector<8x256xf32>
    %260 = math.exp %259 : vector<8x256xf32>
    %261 = arith.negf %222 : vector<8x128xf32>
    %262 = math.exp %261 : vector<8x128xf32>
    %cst_120 = arith.constant 1.000000e+00 : f32
    %263 = vector.broadcast %cst_120 : f32 to vector<8x128xf32>
    %264 = arith.addf %263, %262 : vector<8x128xf32>
    %265 = arith.divf %263, %264 : vector<8x128xf32>
    %266 = arith.mulf %222, %265 : vector<8x128xf32>
    %267 = arith.truncf %266 : vector<8x128xf32> to vector<8x128xbf16>
    %268 = arith.truncf %260 : vector<8x256xf32> to vector<8x256xbf16>
    %269 = tpu.concatenate %267, %268 in 1 : vector<8x128xbf16>, vector<8x256xbf16> -> vector<8x384xbf16>
    %cst_121 = arith.constant dense<0.000000e+00> : vector<8x128xf32>
    %270 = tpu.matmul %269, %224, %cst_121 {dimension_numbers = #tpu.dot_dimension_numbers<[1], [0], [0], [1], [0, 0, 1, 1], [], []>} : vector<8x384xbf16>, vector<384x128xbf16>, vector<8x128xf32> -> vector<8x128xf32>
    %271 = vector.broadcast %227 : vector<1x128xf32> to vector<8x128xf32>
    %272 = arith.addf %270, %271 : vector<8x128xf32>
    %c0_122 = arith.constant 0 : index
    %c0_123 = arith.constant 0 : index
    %273 = vector.load %arg21[%c0_122, %c0_123] : memref<128x256xbf16, #tpu.memory_space<vmem>>, vector<128x256xbf16>
    %c0_124 = arith.constant 0 : index
    %c0_125 = arith.constant 0 : index
    %274 = vector.load %arg22[%c0_124, %c0_125] : memref<384x128xbf16, #tpu.memory_space<vmem>>, vector<384x128xbf16>
    %c0_126 = arith.constant 0 : index
    %c0_127 = arith.constant 0 : index
    %275 = vector.load %arg20[%c0_126, %c0_127] : memref<4x256xf32, #tpu.memory_space<vmem>>, vector<1x128xf32>
    %c1_128 = arith.constant 1 : index
    %c0_129 = arith.constant 0 : index
    %276 = vector.load %arg20[%c1_128, %c0_129] : memref<4x256xf32, #tpu.memory_space<vmem>>, vector<1x128xf32>
    %c2_130 = arith.constant 2 : index
    %c0_131 = arith.constant 0 : index
    %277 = vector.load %arg20[%c2_130, %c0_131] : memref<4x256xf32, #tpu.memory_space<vmem>>, vector<1x128xf32>
    %c3_132 = arith.constant 3 : index
    %c0_133 = arith.constant 0 : index
    %278 = vector.load %arg20[%c3_132, %c0_133] : memref<4x256xf32, #tpu.memory_space<vmem>>, vector<1x256xf32>
    %cst_134 = arith.constant dense<0.000000e+00> : vector<8xf32>
    %279 = vector.multi_reduction <add>, %272, %cst_134 [1] : vector<8x128xf32> to vector<8xf32>
    %280 = vector.shape_cast %279 : vector<8xf32> to vector<8x1xf32>
    %cst_135 = arith.constant 3.125000e-02 : f32
    %281 = vector.broadcast %cst_135 : f32 to vector<8x1xf32>
    %282 = arith.mulf %280, %281 : vector<8x1xf32>
    %283 = arith.mulf %272, %272 : vector<8x128xf32>
    %cst_136 = arith.constant dense<0.000000e+00> : vector<8xf32>
    %284 = vector.multi_reduction <add>, %283, %cst_136 [1] : vector<8x128xf32> to vector<8xf32>
    %285 = vector.shape_cast %284 : vector<8xf32> to vector<8x1xf32>
    %cst_137 = arith.constant 3.125000e-02 : f32
    %286 = vector.broadcast %cst_137 : f32 to vector<8x1xf32>
    %287 = arith.mulf %285, %286 : vector<8x1xf32>
    %288 = arith.mulf %282, %282 : vector<8x1xf32>
    %289 = arith.subf %287, %288 : vector<8x1xf32>
    %290 = vector.broadcast %282 : vector<8x1xf32> to vector<8x128xf32>
    %291 = arith.subf %272, %290 : vector<8x128xf32>
    %cst_138 = arith.constant 9.99999974E-6 : f32
    %292 = vector.broadcast %cst_138 : f32 to vector<8x1xf32>
    %293 = arith.addf %289, %292 : vector<8x1xf32>
    %294 = math.rsqrt %293 : vector<8x1xf32>
    %295 = vector.broadcast %294 : vector<8x1xf32> to vector<8x128xf32>
    %296 = arith.mulf %291, %295 : vector<8x128xf32>
    %297 = vector.broadcast %275 : vector<1x128xf32> to vector<8x128xf32>
    %298 = arith.mulf %296, %297 : vector<8x128xf32>
    %299 = vector.broadcast %276 : vector<1x128xf32> to vector<8x128xf32>
    %300 = arith.addf %298, %299 : vector<8x128xf32>
    %301 = arith.truncf %300 : vector<8x128xf32> to vector<8x128xbf16>
    %cst_139 = arith.constant dense<0.000000e+00> : vector<8x256xf32>
    %302 = tpu.matmul %301, %273, %cst_139 {dimension_numbers = #tpu.dot_dimension_numbers<[1], [0], [0], [1], [0, 0, 1, 1], [], []>} : vector<8x128xbf16>, vector<128x256xbf16>, vector<8x256xf32> -> vector<8x256xf32>
    %303 = vector.broadcast %278 : vector<1x256xf32> to vector<8x256xf32>
    %304 = arith.subf %302, %303 : vector<8x256xf32>
    %cst_140 = arith.constant 1.750000e+00 : f32
    %305 = vector.broadcast %cst_140 : f32 to vector<8x256xf32>
    %306 = arith.mulf %304, %305 : vector<8x256xf32>
    %307 = arith.mulf %306, %306 : vector<8x256xf32>
    %cst_141 = arith.constant 0.000000e+00 : f32
    %308 = vector.broadcast %cst_141 : f32 to vector<8x256xf32>
    %309 = arith.subf %308, %307 : vector<8x256xf32>
    %310 = math.exp %309 : vector<8x256xf32>
    %311 = arith.negf %272 : vector<8x128xf32>
    %312 = math.exp %311 : vector<8x128xf32>
    %cst_142 = arith.constant 1.000000e+00 : f32
    %313 = vector.broadcast %cst_142 : f32 to vector<8x128xf32>
    %314 = arith.addf %313, %312 : vector<8x128xf32>
    %315 = arith.divf %313, %314 : vector<8x128xf32>
    %316 = arith.mulf %272, %315 : vector<8x128xf32>
    %317 = arith.truncf %316 : vector<8x128xf32> to vector<8x128xbf16>
    %318 = arith.truncf %310 : vector<8x256xf32> to vector<8x256xbf16>
    %319 = tpu.concatenate %317, %318 in 1 : vector<8x128xbf16>, vector<8x256xbf16> -> vector<8x384xbf16>
    %cst_143 = arith.constant dense<0.000000e+00> : vector<8x128xf32>
    %320 = tpu.matmul %319, %274, %cst_143 {dimension_numbers = #tpu.dot_dimension_numbers<[1], [0], [0], [1], [0, 0, 1, 1], [], []>} : vector<8x384xbf16>, vector<384x128xbf16>, vector<8x128xf32> -> vector<8x128xf32>
    %321 = vector.broadcast %277 : vector<1x128xf32> to vector<8x128xf32>
    %322 = arith.addf %320, %321 : vector<8x128xf32>
    %323 = tpu.iota {dimensions = array<i32: 1>} : vector<8x128xi32>
    %c4_i32 = arith.constant 4 : i32
    %324 = vector.broadcast %c4_i32 : i32 to vector<8x128xi32>
    %325 = arith.cmpi slt, %323, %324 : vector<8x128xi32>
    %cst_144 = arith.constant -1.000000e+30 : f32
    %326 = vector.broadcast %cst_144 : f32 to vector<8x128xf32>
    %327 = arith.select %325, %322, %326 : vector<8x128xi1>, vector<8x128xf32>
    %cst_145 = arith.constant dense<0xFF800000> : vector<8xf32>
    %328 = vector.multi_reduction <maximumf>, %327, %cst_145 [1] : vector<8x128xf32> to vector<8xf32>
    %329 = vector.shape_cast %328 : vector<8xf32> to vector<8x1xf32>
    %330 = vector.broadcast %329 : vector<8x1xf32> to vector<8x128xf32>
    %331 = arith.subf %327, %330 : vector<8x128xf32>
    %332 = math.exp %331 : vector<8x128xf32>
    %cst_146 = arith.constant dense<0.000000e+00> : vector<8xf32>
    %333 = vector.multi_reduction <add>, %332, %cst_146 [1] : vector<8x128xf32> to vector<8xf32>
    %334 = vector.shape_cast %333 : vector<8xf32> to vector<8x1xf32>
    %335 = math.log %334 : vector<8x1xf32>
    %336 = vector.broadcast %335 : vector<8x1xf32> to vector<8x128xf32>
    %337 = arith.subf %331, %336 : vector<8x128xf32>
    %c0_147 = arith.constant 0 : index
    %c0_148 = arith.constant 0 : index
    %338 = vector.load %arg23[%c0_147, %c0_148] : memref<8x128xf32, #tpu.memory_space<vmem>>, vector<8x128xf32>
    tpu.vector_store %arg23[%c0_147, %c0_148], %337 {strides = array<i32>} : memref<8x128xf32, #tpu.memory_space<vmem>>, vector<8x128xf32>,
    return
  }
}

</mosaic_0001>

<bundles_post_ra>
// kernel: tpu_custom_call.1
= control target key start
LH: loop header
LB: loop body
LE: loop exit
PB: predicated region body
PF: predicated region fallthrough
CT: control target
= control target key end

     0   :  { %s5622_s0 = inlined_call_operand.hbm [shape: bf16[16,16], index: 0, kind: input, shape index: {}]   ;;  %s5623_s1 = inlined_call_operand.hbm [shape: bf16[8,16], index: 1, kind: input, shape index: {}]   ;;  %s5624_s2 = inlined_call_operand.hbm [shape: f32[16,128], index: 2, kind: input, shape index: {}]   ;;  %s5625_s3 = inlined_call_operand.hbm [shape: f32[4,128], index: 3, kind: input, shape index: {}]   ;;  %s5626_s4 = inlined_call_operand.hbm [shape: bf16[128,128], index: 4, kind: input, shape index: {}]   ;;  %s5627_s5 = inlined_call_operand.hbm [shape: bf16[256,128], index: 5, kind: input, shape index: {}]   ;;  %s5628_s6 = inlined_call_operand.hbm [shape: f32[4,256], index: 6, kind: input, shape index: {}]   ;;  %s5629_s7 = inlined_call_operand.hbm [shape: bf16[128,256], index: 7, kind: input, shape index: {}]   ;;  %s5630_s8 = inlined_call_operand.hbm [shape: bf16[384,128], index: 8, kind: input, shape index: {}]   ;;  %s5631_s9 = inlined_call_operand.hbm [shape: f32[2,128], index: 9, kind: input, shape index: {}]   ;;  %s5632_s10 = inlined_call_operand.hbm [shape: f32[4,256], index: 10, kind: input, shape index: {}]   ;;  %s5633_s11 = inlined_call_operand.hbm [shape: bf16[128,256], index: 11, kind: input, shape index: {}]   ;;  %s5634_s12 = inlined_call_operand.hbm [shape: bf16[384,128], index: 12, kind: input, shape index: {}]   ;;  %s5635_s13 = inlined_call_operand.hbm [shape: f32[4,256], index: 13, kind: input, shape index: {}]   ;;  %s5636_s14 = inlined_call_operand.hbm [shape: bf16[128,256], index: 14, kind: input, shape index: {}]   ;;  %s5637_s15 = inlined_call_operand.hbm [shape: bf16[384,128], index: 15, kind: input, shape index: {}]   ;;  %s5638_s16 = inlined_call_operand.hbm [shape: f32[2,128], index: 16, kind: input, shape index: {}]   ;;  %s5639_s17 = inlined_call_operand.hbm [shape: f32[4,256], index: 17, kind: input, shape index: {}]   ;;  %s5640_s18 = inlined_call_operand.hbm [shape: bf16[128,256], index: 18, kind: input, shape index: {}]   ;;  %s5641_s19 = inlined_call_operand.hbm [shape: bf16[384,128], index: 19, kind: input, shape index: {}]   ;;  %s5642_s20 = inlined_call_operand.hbm [shape: f32[4,256], index: 20, kind: input, shape index: {}]   ;;  %s5643_s21 = inlined_call_operand.hbm [shape: bf16[128,256], index: 21, kind: input, shape index: {}]   ;;  %s5644_s22 = inlined_call_operand.hbm [shape: bf16[384,128], index: 22, kind: input, shape index: {}]   ;;  %s5645_s23 = inlined_call_operand.hbm [shape: f32[8,128], index: 23, kind: output, shape index: {}]  }
   0x1   :  { %5657 = sst [smem:[#allocation52_spill]] %s5622_s0 }
   0x2   :  { %5658 = sst [smem:[#allocation53_spill]] %s5623_s1 }
   0x3   :  { %5659 = sst [smem:[#allocation54_spill]] %s5624_s2 }
   0x4   :  { %5660 = sst [smem:[#allocation55_spill]] %s5625_s3 }
   0x5   :  { %5661 = sst [smem:[#allocation56_spill]] %s5626_s4 }
   0x6   :  { %5662 = sst [smem:[#allocation57_spill]] %s5627_s5 }
   0x7   :  { %5663 = sst [smem:[#allocation58_spill]] %s5628_s6 }
   0x8   :  { %5664 = sst [smem:[#allocation59_spill]] %s5629_s7 }
   0x9   :  { %5665 = sst [smem:[#allocation60_spill]] %s5642_s20 }
   0xa   :  { %5666 = sst [smem:[#allocation61_spill]] %s5644_s22 }
   0xb   :  { %5667 = sst [smem:[#allocation62_spill]] %s5645_s23 }
   0xc   :  { %28 = vsyncpa [#allocation3], 0 }
   0xd   :  { %29 = vsyncpa [#allocation6], 0 }
   0xe   :  { %30 = vsyncpa [#allocation9], 0 }
   0xf   :  { %31 = vsyncpa [#allocation12], 0 }
  0x10   :  { %32 = vsyncpa [#allocation15], 0 }
  0x11   :  { %33 = vsyncpa [#allocation18], 0 }
  0x12   :  { %34 = vsyncpa [#allocation21], 0 }
  0x13   :  { %35 = vsyncpa [#allocation24], 0 }
  0x14   :  { %36 = vsyncpa [#allocation27], 0 }
  0x15   :  { %37 = vsyncpa [#allocation30], 0 }
  0x16   :  { %38 = vsyncpa [#allocation33], 0 }
  0x17   :  { %39 = vsyncpa [#allocation36], 0 }
  0x18   :  { %40 = vsyncpa [#allocation4], 0  ;;  %s4968_s4 = smov [#allocation5]   ;;  %s4969_s24 = smov [#allocation8]  }
  0x19   :  { %s59_s30 = sshll.u32 %s4968_s4, 4  ;;  %s81_s25 = sshll.u32 %s4969_s24, 4  ;;  %s60_s30 = int_to_ptr.vmem [resolvable:$true] %s59_s30  ;;  %s82_s25 = int_to_ptr.vmem [resolvable:$true] %s81_s25 }
  0x1a   :  { %s5668_s26 = sld [smem:[#allocation53_spill]] }
  0x20   :  { %s4414_s2 = scalar_lea.hbm %s5668_s26, 64 }
  0x21   :  { %p4415_p0 = scmp.ne.s32.totalorder %s5668_s26, %s4414_s2  ;;  %p4418_p1 = scmp.lt.u32.totalorder %s4414_s2, %s5668_s26 }
  0x23   :  { %p4420_p2 = pnand %p4418_p1, %p4415_p0 }
  0x25   :  { %4423 = shalt.err (!%p4420_p2)
}
  0x26   :  { %s4424_s29 = scalar_lea.vmem %s60_s30, 64  ;;  %p4429_p4 = scmp.lt.s32.totalorder %s60_s30, %s60_s30 }
  0x27   :  { %p4425_p3 = scmp.ne.s32.totalorder %s60_s30, %s4424_s29  ;;  %p4430_p5 = scmp.lt.s32.totalorder %s4424_s29, %s4424_s29 }
  0x29   :  { %p4431_p6 = por %p4430_p5, %p4429_p4 }
  0x2b   :  { %p4432_p7 = pnand %p4431_p6, %p4425_p3 }
  0x2d   :  { %4435 = shalt.err (!%p4432_p7)
}
  0x2e   :  { %62 = dma.hbm_to_vmem [thread:$0]  %s5668_s26, 64, %s60_s30, [#allocation6]  }
  0x2f   :  { %s5669_s5 = sld [smem:[#allocation55_spill]] }
  0x35   :  { %s4436_s1 = scalar_lea.hbm %s5669_s5, 64 }
  0x36   :  { %p4437_p8 = scmp.ne.s32.totalorder %s5669_s5, %s4436_s1  ;;  %p4440_p9 = scmp.lt.u32.totalorder %s4436_s1, %s5669_s5 }
  0x38   :  { %p4442_p10 = pnand %p4440_p9, %p4437_p8 }
  0x3a   :  { %4445 = shalt.err (!%p4442_p10)
}
  0x3b   :  { %s4446_s28 = scalar_lea.vmem %s82_s25, 64  ;;  %p4451_p12 = scmp.lt.s32.totalorder %s82_s25, %s82_s25 }
  0x3c   :  { %p4447_p11 = scmp.ne.s32.totalorder %s82_s25, %s4446_s28  ;;  %p4452_p13 = scmp.lt.s32.totalorder %s4446_s28, %s4446_s28 }
  0x3e   :  { %p4453_p0 = por %p4452_p13, %p4451_p12 }
  0x40   :  { %p4454_p1 = pnand %p4453_p0, %p4447_p11 }
  0x42   :  { %4457 = shalt.err (!%p4454_p1)
}
  0x43   :  { %84 = dma.hbm_to_vmem [thread:$0]  %s5669_s5, 64, %s82_s25, [#allocation9]  }
  0x44   :  { %s4970_s29 = smov [#allocation11]   ;;  %s5670_s24 = sld [smem:[#allocation57_spill]] }
  0x45   :  { %s102_s3 = sshll.u32 %s4970_s29, 4  ;;  %s103_s3 = int_to_ptr.vmem [resolvable:$true] %s102_s3 }
  0x4a   :  { %s4458_s1 = scalar_lea.hbm %s5670_s24, 2048 }
  0x4b   :  { %p4459_p2 = scmp.ne.s32.totalorder %s5670_s24, %s4458_s1  ;;  %p4462_p3 = scmp.lt.u32.totalorder %s4458_s1, %s5670_s24 }
  0x4d   :  { %p4464_p4 = pnand %p4462_p3, %p4459_p2 }
  0x4f   :  { %4467 = shalt.err (!%p4464_p4)
}
  0x50   :  { %s4468_s28 = scalar_lea.vmem %s103_s3, 2048  ;;  %p4473_p6 = scmp.lt.s32.totalorder %s103_s3, %s103_s3 }
  0x51   :  { %p4469_p5 = scmp.ne.s32.totalorder %s103_s3, %s4468_s28  ;;  %p4474_p7 = scmp.lt.s32.totalorder %s4468_s28, %s4468_s28 }
  0x53   :  { %p4475_p8 = por %p4474_p7, %p4473_p6 }
  0x55   :  { %p4476_p9 = pnand %p4475_p8, %p4469_p5 }
  0x57   :  { %4479 = shalt.err (!%p4476_p9)
}
  0x58   :  { %s4971_s25 = smov 64   ;;  %s4972_s5 = smov 4  }
  0x59   :  { %108 = dma.hbm_to_vmem [thread:$0]  %s5670_s24, 2048, %s103_s3, [#allocation12], %s4971_s25, %s4971_s25, %s4972_s5  }
  0x5a   :  { %s4973_s29 = smov [#allocation14]   ;;  %s4974_s4 = smov [#allocation17]  }
  0x5b   :  { %s124_s0 = sshll.u32 %s4973_s29, 4  ;;  %s149_s1 = sshll.u32 %s4974_s4, 4  ;;  %s125_s0 = int_to_ptr.vmem [resolvable:$true] %s124_s0  ;;  %s150_s1 = int_to_ptr.vmem [resolvable:$true] %s149_s1 }
  0x5c   :  { %s5671_s2 = sld [smem:[#allocation59_spill]] }
  0x62   :  { %s4480_s7 = scalar_lea.hbm %s5671_s2, 2048 }
  0x63   :  { %p4481_p10 = scmp.ne.s32.totalorder %s5671_s2, %s4480_s7  ;;  %p4484_p11 = scmp.lt.u32.totalorder %s4480_s7, %s5671_s2 }
  0x65   :  { %p4486_p12 = pnand %p4484_p11, %p4481_p10 }
  0x67   :  { %4489 = shalt.err (!%p4486_p12)
}
  0x68   :  { %s4490_s3 = scalar_lea.vmem %s125_s0, 2048  ;;  %p4495_p0 = scmp.lt.s32.totalorder %s125_s0, %s125_s0 }
  0x69   :  { %p4491_p13 = scmp.ne.s32.totalorder %s125_s0, %s4490_s3  ;;  %p4496_p1 = scmp.lt.s32.totalorder %s4490_s3, %s4490_s3 }
  0x6b   :  { %p4497_p2 = por %p4496_p1, %p4495_p0 }
  0x6d   :  { %p4498_p3 = pnand %p4497_p2, %p4491_p13 }
  0x6f   :  { %4501 = shalt.err (!%p4498_p3)
}
  0x70   :  { %s4975_s24 = smov 128   ;;  %s4976_s30 = smov 8  }
  0x71   :  { %130 = dma.hbm_to_vmem [thread:$0]  %s5671_s2, 2048, %s125_s0, [#allocation15], %s4975_s24, %s4975_s24, %s4976_s30  }
  0x72   :  { %s4502_s29 = scalar_lea.hbm %s5631_s9, 32 }
  0x73   :  { %p4503_p4 = scmp.ne.s32.totalorder %s5631_s9, %s4502_s29  ;;  %p4506_p5 = scmp.lt.u32.totalorder %s4502_s29, %s5631_s9 }
  0x75   :  { %p4508_p6 = pnand %p4506_p5, %p4503_p4 }
  0x77   :  { %4511 = shalt.err (!%p4508_p6)
}
  0x78   :  { %s4512_s28 = scalar_lea.vmem %s150_s1, 32  ;;  %p4517_p8 = scmp.lt.s32.totalorder %s150_s1, %s150_s1 }
  0x79   :  { %p4513_p7 = scmp.ne.s32.totalorder %s150_s1, %s4512_s28  ;;  %p4518_p9 = scmp.lt.s32.totalorder %s4512_s28, %s4512_s28 }
  0x7b   :  { %p4519_p10 = por %p4518_p9, %p4517_p8 }
  0x7d   :  { %p4520_p11 = pnand %p4519_p10, %p4513_p7 }
  0x7f   :  { %4523 = shalt.err (!%p4520_p11)
}
  0x80   :  { %152 = dma.hbm_to_vmem [thread:$0]  %s5631_s9, 32, %s150_s1, [#allocation18]  }
  0x81   :  { %s4977_s3 = smov [#allocation20]   ;;  %s4978_s26 = smov [#allocation23]  }
  0x82   :  { %s168_s23 = sshll.u32 %s4977_s3, 4  ;;  %s193_s20 = sshll.u32 %s4978_s26, 4  ;;  %s169_s23 = int_to_ptr.vmem [resolvable:$true] %s168_s23  ;;  %s194_s20 = int_to_ptr.vmem [resolvable:$true] %s193_s20 }
  0x83   :  { %s4524_s4 = scalar_lea.hbm %s5633_s11, 2048 }
  0x84   :  { %p4525_p12 = scmp.ne.s32.totalorder %s5633_s11, %s4524_s4  ;;  %p4528_p13 = scmp.lt.u32.totalorder %s4524_s4, %s5633_s11 }
  0x86   :  { %p4530_p0 = pnand %p4528_p13, %p4525_p12 }
  0x88   :  { %4533 = shalt.err (!%p4530_p0)
}
  0x89   :  { %s4534_s9 = scalar_lea.vmem %s169_s23, 2048  ;;  %p4539_p2 = scmp.lt.s32.totalorder %s169_s23, %s169_s23 }
  0x8a   :  { %p4535_p1 = scmp.ne.s32.totalorder %s169_s23, %s4534_s9  ;;  %p4540_p3 = scmp.lt.s32.totalorder %s4534_s9, %s4534_s9 }
  0x8c   :  { %p4541_p4 = por %p4540_p3, %p4539_p2 }
  0x8e   :  { %p4542_p5 = pnand %p4541_p4, %p4535_p1 }
  0x90   :  { %4545 = shalt.err (!%p4542_p5)
}
  0x91   :  { %174 = dma.hbm_to_vmem [thread:$0]  %s5633_s11, 2048, %s169_s23, [#allocation21], %s4975_s24, %s4975_s24, %s4976_s30  }
  0x92   :  { %s4546_s26 = scalar_lea.hbm %s5635_s13, 128 }
  0x93   :  { %p4547_p6 = scmp.ne.s32.totalorder %s5635_s13, %s4546_s26  ;;  %p4550_p7 = scmp.lt.u32.totalorder %s4546_s26, %s5635_s13 }
  0x95   :  { %p4552_p8 = pnand %p4550_p7, %p4547_p6 }
  0x97   :  { %4555 = shalt.err (!%p4552_p8)
}
  0x98   :  { %s4556_s27 = scalar_lea.vmem %s194_s20, 128  ;;  %p4561_p10 = scmp.lt.s32.totalorder %s194_s20, %s194_s20 }
  0x99   :  { %p4557_p9 = scmp.ne.s32.totalorder %s194_s20, %s4556_s27  ;;  %p4562_p11 = scmp.lt.s32.totalorder %s4556_s27, %s4556_s27 }
  0x9b   :  { %p4563_p12 = por %p4562_p11, %p4561_p10 }
  0x9d   :  { %p4564_p13 = pnand %p4563_p12, %p4557_p9 }
  0x9f   :  { %4567 = shalt.err (!%p4564_p13)
}
  0xa0   :  { %196 = dma.hbm_to_vmem [thread:$0]  %s5635_s13, 128, %s194_s20, [#allocation24]  }
  0xa1   :  { %s4979_s7 = smov [#allocation26]   ;;  %s4980_s9 = smov [#allocation29]  }
  0xa2   :  { %s214_s28 = sshll.u32 %s4979_s7, 4  ;;  %s237_s1 = sshll.u32 %s4980_s9, 4  ;;  %s215_s28 = int_to_ptr.vmem [resolvable:$true] %s214_s28  ;;  %s238_s1 = int_to_ptr.vmem [resolvable:$true] %s237_s1 }
  0xa3   :  { %s4568_s3 = scalar_lea.hbm %s5637_s15, 3072 }
  0xa4   :  { %p4569_p0 = scmp.ne.s32.totalorder %s5637_s15, %s4568_s3  ;;  %p4572_p1 = scmp.lt.u32.totalorder %s4568_s3, %s5637_s15 }
  0xa6   :  { %p4574_p2 = pnand %p4572_p1, %p4569_p0 }
  0xa8   :  { %4577 = shalt.err (!%p4574_p2)
}
  0xa9   :  { %s4578_s13 = scalar_lea.vmem %s215_s28, 3072  ;;  %p4583_p4 = scmp.lt.s32.totalorder %s215_s28, %s215_s28 }
  0xaa   :  { %p4579_p3 = scmp.ne.s32.totalorder %s215_s28, %s4578_s13  ;;  %p4584_p5 = scmp.lt.s32.totalorder %s4578_s13, %s4578_s13 }
  0xac   :  { %p4585_p6 = por %p4584_p5, %p4583_p4 }
  0xae   :  { %p4586_p7 = pnand %p4585_p6, %p4579_p3 }
  0xb0   :  { %4589 = shalt.err (!%p4586_p7)
}
  0xb1   :  { %220 = dma.hbm_to_vmem [thread:$0]  %s5637_s15, 3072, %s215_s28, [#allocation27], %s4971_s25, %s4971_s25, %s4972_s5  }
  0xb2   :  { %s4590_s23 = scalar_lea.hbm %s5639_s17, 128 }
  0xb3   :  { %p4591_p8 = scmp.ne.s32.totalorder %s5639_s17, %s4590_s23  ;;  %p4594_p9 = scmp.lt.u32.totalorder %s4590_s23, %s5639_s17 }
  0xb5   :  { %p4596_p10 = pnand %p4594_p9, %p4591_p8 }
  0xb7   :  { %4599 = shalt.err (!%p4596_p10)
}
  0xb8   :  { %s4600_s3 = scalar_lea.vmem %s238_s1, 128  ;;  %p4605_p12 = scmp.lt.s32.totalorder %s238_s1, %s238_s1 }
  0xb9   :  { %p4601_p11 = scmp.ne.s32.totalorder %s238_s1, %s4600_s3  ;;  %p4606_p13 = scmp.lt.s32.totalorder %s4600_s3, %s4600_s3 }
  0xbb   :  { %p4607_p0 = por %p4606_p13, %p4605_p12 }
  0xbd   :  { %p4608_p1 = pnand %p4607_p0, %p4601_p11 }
  0xbf   :  { %4611 = shalt.err (!%p4608_p1)
}
  0xc0   :  { %240 = dma.hbm_to_vmem [thread:$0]  %s5639_s17, 128, %s238_s1, [#allocation30]  }
  0xc1   :  { %s4981_s26 = smov [#allocation32]   ;;  %s4982_s29 = smov [#allocation35]  }
  0xc2   :  { %s258_s22 = sshll.u32 %s4981_s26, 4  ;;  %s280_s4 = sshll.u32 %s4982_s29, 4  ;;  %s259_s22 = int_to_ptr.vmem [resolvable:$true] %s258_s22  ;;  %s281_s4 = int_to_ptr.vmem [resolvable:$true] %s280_s4 }
  0xc3   :  { %s4612_s6 = scalar_lea.hbm %s5641_s19, 3072 }
  0xc4   :  { %p4613_p2 = scmp.ne.s32.totalorder %s5641_s19, %s4612_s6  ;;  %p4616_p3 = scmp.lt.u32.totalorder %s4612_s6, %s5641_s19 }
  0xc6   :  { %p4618_p4 = pnand %p4616_p3, %p4613_p2 }
  0xc8   :  { %4621 = shalt.err (!%p4618_p4)
}
  0xc9   :  { %s4622_s17 = scalar_lea.vmem %s259_s22, 3072  ;;  %p4627_p6 = scmp.lt.s32.totalorder %s259_s22, %s259_s22 }
  0xca   :  { %p4623_p5 = scmp.ne.s32.totalorder %s259_s22, %s4622_s17  ;;  %p4628_p7 = scmp.lt.s32.totalorder %s4622_s17, %s4622_s17 }
  0xcc   :  { %p4629_p8 = por %p4628_p7, %p4627_p6 }
  0xce   :  { %p4630_p9 = pnand %p4629_p8, %p4623_p5 }
  0xd0   :  { %4633 = shalt.err (!%p4630_p9)
}
  0xd1   :  { %264 = dma.hbm_to_vmem [thread:$0]  %s5641_s19, 3072, %s259_s22, [#allocation33], %s4971_s25, %s4971_s25, %s4972_s5  }
  0xd2   :  { %s4634_s3 = scalar_lea.hbm %s5643_s21, 2048 }
  0xd3   :  { %p4635_p10 = scmp.ne.s32.totalorder %s5643_s21, %s4634_s3  ;;  %p4638_p11 = scmp.lt.u32.totalorder %s4634_s3, %s5643_s21 }
  0xd5   :  { %p4640_p12 = pnand %p4638_p11, %p4635_p10 }
  0xd7   :  { %4643 = shalt.err (!%p4640_p12)
}
  0xd8   :  { %s4644_s13 = scalar_lea.vmem %s281_s4, 2048  ;;  %p4649_p0 = scmp.lt.s32.totalorder %s281_s4, %s281_s4 }
  0xd9   :  { %p4645_p13 = scmp.ne.s32.totalorder %s281_s4, %s4644_s13  ;;  %p4650_p1 = scmp.lt.s32.totalorder %s4644_s13, %s4644_s13 }
  0xdb   :  { %p4651_p2 = por %p4650_p1, %p4649_p0 }
  0xdd   :  { %p4652_p3 = pnand %p4651_p2, %p4645_p13 }
  0xdf   :  { %4655 = shalt.err (!%p4652_p3)
}
  0xe0   :  { %286 = dma.hbm_to_vmem [thread:$0]  %s5643_s21, 2048, %s281_s4, [#allocation36], %s4975_s24, %s4975_s24, %s4976_s30  }
  0xe1   :  { %s4983_s20 = smov [#allocation2]   ;;  %s4984_s27 = smov [#allocation7]  }
  0xe2   :  { %s46_s6 = sshll.u32 %s4983_s20, 4  ;;  %s68_s11 = sshll.u32 %s4984_s27, 4  ;;  %s47_s6 = int_to_ptr.vmem [resolvable:$true] %s46_s6  ;;  %s69_s11 = int_to_ptr.vmem [resolvable:$true] %s68_s11 }
  0xe3   :  { %s5672_s17 = sld [smem:[#allocation52_spill]] }
  0xe9   :  { %s4656_s1 = scalar_lea.hbm %s5672_s17, 128 }
  0xea   :  { %p4657_p4 = scmp.ne.s32.totalorder %s5672_s17, %s4656_s1  ;;  %p4660_p5 = scmp.lt.u32.totalorder %s4656_s1, %s5672_s17 }
  0xec   :  { %p4662_p6 = pnand %p4660_p5, %p4657_p4 }
  0xee   :  { %4665 = shalt.err (!%p4662_p6)
}
  0xef   :  { %s4666_s21 = scalar_lea.vmem %s47_s6, 128  ;;  %p4671_p8 = scmp.lt.s32.totalorder %s47_s6, %s47_s6 }
  0xf0   :  { %p4667_p7 = scmp.ne.s32.totalorder %s47_s6, %s4666_s21  ;;  %p4672_p9 = scmp.lt.s32.totalorder %s4666_s21, %s4666_s21 }
  0xf2   :  { %p4673_p10 = por %p4672_p9, %p4671_p8 }
  0xf4   :  { %p4674_p11 = pnand %p4673_p10, %p4667_p7 }
  0xf6   :  { %4677 = shalt.err (!%p4674_p11)
}
  0xf7   :  { %52 = dma.hbm_to_vmem [thread:$0]  %s5672_s17, 128, %s47_s6, [#allocation3], %s4971_s25, %s4971_s25, %s4972_s5  }
  0xf8   :  { %s5673_s29 = sld [smem:[#allocation54_spill]] }
  0xfe   :  { %s4678_s13 = scalar_lea.hbm %s5673_s29, 256 }
  0xff   :  { %p4679_p12 = scmp.ne.s32.totalorder %s5673_s29, %s4678_s13  ;;  %p4682_p13 = scmp.lt.u32.totalorder %s4678_s13, %s5673_s29 }
 0x101   :  { %p4684_p0 = pnand %p4682_p13, %p4679_p12 }
 0x103   :  { %4687 = shalt.err (!%p4684_p0)
}
 0x104   :  { %s4688_s23 = scalar_lea.vmem %s69_s11, 256  ;;  %p4693_p2 = scmp.lt.s32.totalorder %s69_s11, %s69_s11 }
 0x105   :  { %p4689_p1 = scmp.ne.s32.totalorder %s69_s11, %s4688_s23  ;;  %p4694_p3 = scmp.lt.s32.totalorder %s4688_s23, %s4688_s23 }
 0x107   :  { %p4695_p4 = por %p4694_p3, %p4693_p2 }
 0x109   :  { %p4696_p5 = pnand %p4695_p4, %p4689_p1 }
 0x10b   :  { %4699 = shalt.err (!%p4696_p5)
}
 0x10c   :  { %74 = dma.hbm_to_vmem [thread:$0]  %s5673_s29, 256, %s69_s11, [#allocation6], %s4975_s24, %s4975_s24, %s4976_s30  }
 0x10d   :  { %s4985_s17 = smov [#allocation10]   ;;  %s4986_s9 = smov [#allocation13]  }
 0x10e   :  { %s90_s1 = sshll.u32 %s4985_s17, 4  ;;  %s115_s0 = sshll.u32 %s4986_s9, 4  ;;  %s91_s1 = int_to_ptr.vmem [resolvable:$true] %s90_s1  ;;  %s116_s0 = int_to_ptr.vmem [resolvable:$true] %s115_s0 }
 0x10f   :  { %s5674_s21 = sld [smem:[#allocation56_spill]] }
 0x115   :  { %s4700_s4 = scalar_lea.hbm %s5674_s21, 1024 }
 0x116   :  { %p4701_p6 = scmp.ne.s32.totalorder %s5674_s21, %s4700_s4  ;;  %p4704_p7 = scmp.lt.u32.totalorder %s4700_s4, %s5674_s21 }
 0x118   :  { %p4706_p8 = pnand %p4704_p7, %p4701_p6 }
 0x11a   :  { %4709 = shalt.err (!%p4706_p8)
}
 0x11b   :  { %s4710_s11 = scalar_lea.vmem %s91_s1, 1024  ;;  %p4715_p10 = scmp.lt.s32.totalorder %s91_s1, %s91_s1 }
 0x11c   :  { %p4711_p9 = scmp.ne.s32.totalorder %s91_s1, %s4710_s11  ;;  %p4716_p11 = scmp.lt.s32.totalorder %s4710_s11, %s4710_s11 }
 0x11e   :  { %p4717_p12 = por %p4716_p11, %p4715_p10 }
 0x120   :  { %p4718_p13 = pnand %p4717_p12, %p4711_p9 }
 0x122   :  { %4721 = shalt.err (!%p4718_p13)
}
 0x123   :  { %96 = dma.hbm_to_vmem [thread:$0]  %s5674_s21, 1024, %s91_s1, [#allocation9], %s4971_s25, %s4971_s25, %s4972_s5  }
 0x124   :  { %s5675_s27 = sld [smem:[#allocation58_spill]] }
 0x12a   :  { %s4722_s23 = scalar_lea.hbm %s5675_s27, 128 }
 0x12b   :  { %p4723_p0 = scmp.ne.s32.totalorder %s5675_s27, %s4722_s23  ;;  %p4726_p1 = scmp.lt.u32.totalorder %s4722_s23, %s5675_s27 }
 0x12d   :  { %p4728_p2 = pnand %p4726_p1, %p4723_p0 }
 0x12f   :  { %4731 = shalt.err (!%p4728_p2)
}
 0x130   :  { %s4732_s2 = scalar_lea.vmem %s116_s0, 128  ;;  %p4737_p4 = scmp.lt.s32.totalorder %s116_s0, %s116_s0 }
 0x131   :  { %p4733_p3 = scmp.ne.s32.totalorder %s116_s0, %s4732_s2  ;;  %p4738_p5 = scmp.lt.s32.totalorder %s4732_s2, %s4732_s2 }
 0x133   :  { %p4739_p6 = por %p4738_p5, %p4737_p4 }
 0x135   :  { %p4740_p7 = pnand %p4739_p6, %p4733_p3 }
 0x137   :  { %4743 = shalt.err (!%p4740_p7)
}
 0x138   :  { %118 = dma.hbm_to_vmem [thread:$0]  %s5675_s27, 128, %s116_s0, [#allocation12]  }
 0x139   :  { %s4987_s21 = smov [#allocation16]   ;;  %s4988_s15 = smov [#allocation19]  }
 0x13a   :  { %s136_s4 = sshll.u32 %s4987_s21, 4  ;;  %s159_s28 = sshll.u32 %s4988_s15, 4  ;;  %s137_s4 = int_to_ptr.vmem [resolvable:$true] %s136_s4  ;;  %s160_s28 = int_to_ptr.vmem [resolvable:$true] %s159_s28 }
 0x13b   :  { %s4744_s11 = scalar_lea.hbm %s5630_s8, 3072 }
 0x13c   :  { %p4745_p8 = scmp.ne.s32.totalorder %s5630_s8, %s4744_s11  ;;  %p4748_p9 = scmp.lt.u32.totalorder %s4744_s11, %s5630_s8 }
 0x13e   :  { %p4750_p10 = pnand %p4748_p9, %p4745_p8 }
 0x140   :  { %4753 = shalt.err (!%p4750_p10)
}
 0x141   :  { %s4754_s0 = scalar_lea.vmem %s137_s4, 3072  ;;  %p4759_p12 = scmp.lt.s32.totalorder %s137_s4, %s137_s4 }
 0x142   :  { %p4755_p11 = scmp.ne.s32.totalorder %s137_s4, %s4754_s0  ;;  %p4760_p13 = scmp.lt.s32.totalorder %s4754_s0, %s4754_s0 }
 0x144   :  { %p4761_p0 = por %p4760_p13, %p4759_p12 }
 0x146   :  { %p4762_p1 = pnand %p4761_p0, %p4755_p11 }
 0x148   :  { %4765 = shalt.err (!%p4762_p1)
}
 0x149   :  { %142 = dma.hbm_to_vmem [thread:$0]  %s5630_s8, 3072, %s137_s4, [#allocation15], %s4971_s25, %s4971_s25, %s4972_s5  }
 0x14a   :  { %s4766_s17 = scalar_lea.hbm %s5632_s10, 128 }
 0x14b   :  { %p4767_p2 = scmp.ne.s32.totalorder %s5632_s10, %s4766_s17  ;;  %p4770_p3 = scmp.lt.u32.totalorder %s4766_s17, %s5632_s10 }
 0x14d   :  { %p4772_p4 = pnand %p4770_p3, %p4767_p2 }
 0x14f   :  { %4775 = shalt.err (!%p4772_p4)
}
 0x150   :  { %s4776_s21 = scalar_lea.vmem %s160_s28, 128  ;;  %p4781_p6 = scmp.lt.s32.totalorder %s160_s28, %s160_s28 }
 0x151   :  { %p4777_p5 = scmp.ne.s32.totalorder %s160_s28, %s4776_s21  ;;  %p4782_p7 = scmp.lt.s32.totalorder %s4776_s21, %s4776_s21 }
 0x153   :  { %p4783_p8 = por %p4782_p7, %p4781_p6 }
 0x155   :  { %p4784_p9 = pnand %p4783_p8, %p4777_p5 }
 0x157   :  { %4787 = shalt.err (!%p4784_p9)
}
 0x158   :  { %162 = dma.hbm_to_vmem [thread:$0]  %s5632_s10, 128, %s160_s28, [#allocation18]  }
 0x159   :  { %s4989_s15 = smov [#allocation22]   ;;  %s4990_s13 = smov [#allocation25]  }
 0x15a   :  { %s180_s26 = sshll.u32 %s4989_s15, 4  ;;  %s202_s11 = sshll.u32 %s4990_s13, 4  ;;  %s181_s26 = int_to_ptr.vmem [resolvable:$true] %s180_s26  ;;  %s203_s11 = int_to_ptr.vmem [resolvable:$true] %s202_s11 }
 0x15b   :  { %s4788_s22 = scalar_lea.hbm %s5634_s12, 3072 }
 0x15c   :  { %p4789_p10 = scmp.ne.s32.totalorder %s5634_s12, %s4788_s22  ;;  %p4792_p11 = scmp.lt.u32.totalorder %s4788_s22, %s5634_s12 }
 0x15e   :  { %p4794_p12 = pnand %p4792_p11, %p4789_p10 }
 0x160   :  { %4797 = shalt.err (!%p4794_p12)
}
 0x161   :  { %s4798_s10 = scalar_lea.vmem %s181_s26, 3072  ;;  %p4803_p0 = scmp.lt.s32.totalorder %s181_s26, %s181_s26 }
 0x162   :  { %p4799_p13 = scmp.ne.s32.totalorder %s181_s26, %s4798_s10  ;;  %p4804_p1 = scmp.lt.s32.totalorder %s4798_s10, %s4798_s10 }
 0x164   :  { %p4805_p2 = por %p4804_p1, %p4803_p0 }
 0x166   :  { %p4806_p3 = pnand %p4805_p2, %p4799_p13 }
 0x168   :  { %4809 = shalt.err (!%p4806_p3)
}
 0x169   :  { %186 = dma.hbm_to_vmem [thread:$0]  %s5634_s12, 3072, %s181_s26, [#allocation21], %s4971_s25, %s4971_s25, %s4972_s5  }
 0x16a   :  { %s4810_s9 = scalar_lea.hbm %s5636_s14, 2048 }
 0x16b   :  { %p4811_p4 = scmp.ne.s32.totalorder %s5636_s14, %s4810_s9  ;;  %p4814_p5 = scmp.lt.u32.totalorder %s4810_s9, %s5636_s14 }
 0x16d   :  { %p4816_p6 = pnand %p4814_p5, %p4811_p4 }
 0x16f   :  { %4819 = shalt.err (!%p4816_p6)
}
 0x170   :  { %s4820_s8 = scalar_lea.vmem %s203_s11, 2048  ;;  %p4825_p8 = scmp.lt.s32.totalorder %s203_s11, %s203_s11 }
 0x171   :  { %p4821_p7 = scmp.ne.s32.totalorder %s203_s11, %s4820_s8  ;;  %p4826_p9 = scmp.lt.s32.totalorder %s4820_s8, %s4820_s8 }
 0x173   :  { %p4827_p10 = por %p4826_p9, %p4825_p8 }
 0x175   :  { %p4828_p11 = pnand %p4827_p10, %p4821_p7 }
 0x177   :  { %4831 = shalt.err (!%p4828_p11)
}
 0x178   :  { %208 = dma.hbm_to_vmem [thread:$0]  %s5636_s14, 2048, %s203_s11, [#allocation24], %s4975_s24, %s4975_s24, %s4976_s30  }
 0x179   :  { %s4991_s15 = smov [#allocation28]   ;;  %s4992_s13 = smov [#allocation31]  }
 0x17a   :  { %s227_s26 = sshll.u32 %s4991_s15, 4  ;;  %s246_s29 = sshll.u32 %s4992_s13, 4  ;;  %s228_s26 = int_to_ptr.vmem [resolvable:$true] %s227_s26  ;;  %s247_s29 = int_to_ptr.vmem [resolvable:$true] %s246_s29 }
 0x17b   :  { %s4832_s20 = scalar_lea.hbm %s5638_s16, 32 }
 0x17c   :  { %p4833_p12 = scmp.ne.s32.totalorder %s5638_s16, %s4832_s20  ;;  %p4836_p13 = scmp.lt.u32.totalorder %s4832_s20, %s5638_s16 }
 0x17e   :  { %p4838_p0 = pnand %p4836_p13, %p4833_p12 }
 0x180   :  { %4841 = shalt.err (!%p4838_p0)
}
 0x181   :  { %s4842_s14 = scalar_lea.vmem %s228_s26, 32  ;;  %p4847_p2 = scmp.lt.s32.totalorder %s228_s26, %s228_s26 }
 0x182   :  { %p4843_p1 = scmp.ne.s32.totalorder %s228_s26, %s4842_s14  ;;  %p4848_p3 = scmp.lt.s32.totalorder %s4842_s14, %s4842_s14 }
 0x184   :  { %p4849_p4 = por %p4848_p3, %p4847_p2 }
 0x186   :  { %p4850_p5 = pnand %p4849_p4, %p4843_p1 }
 0x188   :  { %4853 = shalt.err (!%p4850_p5)
}
 0x189   :  { %230 = dma.hbm_to_vmem [thread:$0]  %s5638_s16, 32, %s228_s26, [#allocation27]  }
 0x18a   :  { %s4854_s17 = scalar_lea.hbm %s5640_s18, 2048 }
 0x18b   :  { %p4855_p6 = scmp.ne.s32.totalorder %s5640_s18, %s4854_s17  ;;  %p4858_p7 = scmp.lt.u32.totalorder %s4854_s17, %s5640_s18 }
 0x18d   :  { %p4860_p8 = pnand %p4858_p7, %p4855_p6 }
 0x18f   :  { %4863 = shalt.err (!%p4860_p8)
}
 0x190   :  { %s4864_s21 = scalar_lea.vmem %s247_s29, 2048  ;;  %p4869_p10 = scmp.lt.s32.totalorder %s247_s29, %s247_s29 }
 0x191   :  { %p4865_p9 = scmp.ne.s32.totalorder %s247_s29, %s4864_s21  ;;  %p4870_p11 = scmp.lt.s32.totalorder %s4864_s21, %s4864_s21 }
 0x193   :  { %p4871_p12 = por %p4870_p11, %p4869_p10 }
 0x195   :  { %p4872_p13 = pnand %p4871_p12, %p4865_p9 }
 0x197   :  { %4875 = shalt.err (!%p4872_p13)
}
 0x198   :  { %252 = dma.hbm_to_vmem [thread:$0]  %s5640_s18, 2048, %s247_s29, [#allocation30], %s4975_s24, %s4975_s24, %s4976_s30  }
 0x199   :  { %s4993_s12 = smov [#allocation34]   ;;  %s4994_s15 = smov [#allocation37]  }
 0x19a   :  { %s271_s4 = sshll.u32 %s4993_s12, 4  ;;  %s292_s26 = sshll.u32 %s4994_s15, 4  ;;  %s272_s4 = int_to_ptr.vmem [resolvable:$true] %s271_s4  ;;  %s293_s26 = int_to_ptr.vmem [resolvable:$true] %s292_s26 }
 0x19b   :  { %s5676_s22 = sld [smem:[#allocation60_spill]] }
 0x1a1   :  { %s4876_s20 = scalar_lea.hbm %s5676_s22, 128 }
 0x1a2   :  { %p4877_p0 = scmp.ne.s32.totalorder %s5676_s22, %s4876_s20  ;;  %p4880_p1 = scmp.lt.u32.totalorder %s4876_s20, %s5676_s22 }
 0x1a4   :  { %p4882_p2 = pnand %p4880_p1, %p4877_p0 }
 0x1a6   :  { %4885 = shalt.err (!%p4882_p2)
}
 0x1a7   :  { %s4886_s18 = scalar_lea.vmem %s272_s4, 128  ;;  %p4891_p4 = scmp.lt.s32.totalorder %s272_s4, %s272_s4 }
 0x1a8   :  { %p4887_p3 = scmp.ne.s32.totalorder %s272_s4, %s4886_s18  ;;  %p4892_p5 = scmp.lt.s32.totalorder %s4886_s18, %s4886_s18 }
 0x1aa   :  { %p4893_p6 = por %p4892_p5, %p4891_p4 }
 0x1ac   :  { %p4894_p7 = pnand %p4893_p6, %p4887_p3 }
 0x1ae   :  { %4897 = shalt.err (!%p4894_p7)
}
 0x1af   :  { %274 = dma.hbm_to_vmem [thread:$0]  %s5676_s22, 128, %s272_s4, [#allocation33]  }
 0x1b0   :  { %s5677_s11 = sld [smem:[#allocation61_spill]] }
 0x1b6   :  { %s4898_s28 = scalar_lea.hbm %s5677_s11, 3072 }
 0x1b7   :  { %p4899_p8 = scmp.ne.s32.totalorder %s5677_s11, %s4898_s28  ;;  %p4902_p9 = scmp.lt.u32.totalorder %s4898_s28, %s5677_s11 }
 0x1b9   :  { %p4904_p10 = pnand %p4902_p9, %p4899_p8 }
 0x1bb   :  { %4907 = shalt.err (!%p4904_p10)
}
 0x1bc   :  { %s4908_s2 = scalar_lea.vmem %s293_s26, 3072  ;;  %p4913_p12 = scmp.lt.s32.totalorder %s293_s26, %s293_s26 }
 0x1bd   :  { %p4909_p11 = scmp.ne.s32.totalorder %s293_s26, %s4908_s2  ;;  %p4914_p13 = scmp.lt.s32.totalorder %s4908_s2, %s4908_s2 }
 0x1bf   :  { %p4915_p0 = por %p4914_p13, %p4913_p12 }
 0x1c1   :  { %p4916_p1 = pnand %p4915_p0, %p4909_p11 }
 0x1c3   :  { %4919 = shalt.err (!%p4916_p1)
}
 0x1c4   :  { %298 = dma.hbm_to_vmem [thread:$0]  %s5677_s11, 3072, %s293_s26, [#allocation36], %s4971_s25, %s4971_s25, %s4972_s5  }
 0x1c5   :  { %4942 = dma.done.wait [#allocation3], 128  }
 0x1c6   :  { %4943 = vsyncadd [#allocation3], 4294967168 }
 0x1c7   :  { %4944 = dma.done.wait [#allocation6], 320  }
 0x1c8   :  { %4945 = vsyncadd [#allocation6], 4294966976 }
 0x1c9   :  { %4946 = dma.done.wait [#allocation9], 1088  }
 0x1ca   :  { %4947 = vsyncadd [#allocation9], 4294966208 }
 0x1cb   :  { %4948 = dma.done.wait [#allocation12], 2176  }
 0x1cc   :  { %4949 = vsyncadd [#allocation12], 4294965120 }
 0x1cd   :  { %4950 = dma.done.wait [#allocation15], 5120  }
 0x1ce   :  { %4951 = vsyncadd [#allocation15], 4294962176 }
 0x1cf   :  { %4952 = dma.done.wait [#allocation18], 160  }
 0x1d0   :  { %4953 = vsyncadd [#allocation18], 4294967136 }
 0x1d1   :  { %4954 = dma.done.wait [#allocation21], 5120  }
 0x1d2   :  { %4955 = vsyncadd [#allocation21], 4294962176 }
 0x1d3   :  { %4956 = dma.done.wait [#allocation24], 2176  }
 0x1d4   :  { %4957 = vsyncadd [#allocation24], 4294965120 }
 0x1d5   :  { %4958 = dma.done.wait [#allocation27], 3104  }
 0x1d6   :  { %4959 = vsyncadd [#allocation27], 4294964192 }
 0x1d7   :  { %4960 = dma.done.wait [#allocation30], 2176  }
 0x1d8   :  { %4961 = vsyncadd [#allocation30], 4294965120 }
 0x1d9   :  { %4962 = dma.done.wait [#allocation33], 3200  }
 0x1da   :  { %4963 = vsyncadd [#allocation33], 4294964096 }
 0x1db   :  { %4964 = dma.done.wait [#allocation36], 5120  }
 0x1dc   :  { %4965 = vsyncadd [#allocation36], 4294962176  ;;  %v4995_v0 = vmov 0.0   ;;  %vm4996_vm0 = vmmov 0   ;;  %v372_v1 = vld [vmem:[#allocation7] sm:$0xff]  ;;  %v373_v2 = vld [vmem:[#allocation7 + $0x8] sm:$0xff] }
 0x1dd   :  { %3879 = vmatprep.subr.bf16.mxu0 %v4995_v0  ;;  %3881 = vmatprep.mubr.msk.bf16.mxu0 %vm4996_vm0, %v4995_v0  ;;  %v374_v3 = vpack.c.bf16 %v373_v2, %v372_v1  ;;  %v4048_v4 = vld [vmem:[#allocation2] sm:$0xff]   ;;  %vm380_vm1 = vcmask 130048   ;;  %v4050_v14 = vld [vmem:[#allocation10 + $0x8] sm:$0xff]   ;;  %v4051_v15 = vld [vmem:[#allocation10 + $0x10] sm:$0xff]   ;;  %s4998_s25 = smov [#allocation38]  }
 0x1de   :  { %3885 = vmatprep.subr.bf16.mxu1 %v4995_v0  ;;  %3901 = vmatprep.mubr.msk.bf16.mxu1 %vm4996_vm0, %v4995_v0  ;;  %v4049_v13 = vld [vmem:[#allocation10] sm:$0xff]   ;;  %v4052_v16 = vld [vmem:[#allocation10 + $0x18] sm:$0xff]   ;;  %v4054_v18 = vld [vmem:[#allocation10 + $0x28] sm:$0xff]   ;;  %s3406_s5 = sshll.u32 %s4998_s25, 4  ;;  %s3407_s5 = int_to_ptr.vmem [resolvable:$true] %s3406_s5 }
 0x1df   :  { %3880 = vmatpush3.bf16.msra.mxu0 %v374_v3  ;;  %3886 = vmatpush3.bf16.msra.mxu1 %v4049_v13  ;;  %v4053_v17 = vld [vmem:[#allocation10 + $0x20] sm:$0xff]   ;;  %v4055_v19 = vld [vmem:[#allocation10 + $0x30] sm:$0xff]   ;;  %v4056_v20 = vld [vmem:[#allocation10 + $0x38] sm:$0xff]   ;;  %s4920_s21 = scalar_lea.vmem %s3407_s5, 128  ;;  %p4925_p3 = scmp.lt.s32.totalorder %s3407_s5, %s3407_s5 }
 0x1e0   :  { %3887 = vmatprep.subr.bf16.mxu1 %v4995_v0  ;;  %v4057_v21 = vld [vmem:[#allocation11 + $0x40] sm:$0xff]   ;;  %v4059_v23 = vld [vmem:[#allocation11 + $0x48] sm:$0xff]   ;;  %v3428_v41 = vld [vmem:[#allocation8] ss:$0 sm:$0xff]  ;;  %p4921_p2 = scmp.ne.s32.totalorder %s3407_s5, %s4920_s21  ;;  %p4926_p4 = scmp.lt.s32.totalorder %s4920_s21, %s4920_s21 }
 0x1e1   :  { %v4058_v22 = vld [vmem:[#allocation11] sm:$0xff]   ;;  %3698 = vmatprep.subr.bf16.mxu0 %v4057_v21  ;;  %v3429_v46 = vld [vmem:[#allocation8 + $0x1] ss:$0 sm:$0xff]  ;;  %v4060_v51 = vld [vmem:[#allocation11 + $0x8] sm:$0xff]  }
 0x1e2   :  { %3882 = vmatmul.mubr.msk.bf16.vlgmr.msra.gmra.mrb[0].mxu0 %vm380_vm1, %v4048_v4  ;;  %v4061_v52 = vld [vmem:[#allocation11 + $0x50] sm:$0xff]   ;;  %v4063_v54 = vld [vmem:[#allocation11 + $0x58] sm:$0xff]   ;;  %v4065_v56 = vld [vmem:[#allocation11 + $0x60] sm:$0xff]   ;;  %p4927_p5 = por %p4926_p4, %p4925_p3 }
 0x1e3   :  { %3888 = vmatpush3.bf16.msra.mxu1 %v4050_v14  ;;  %3699 = vmatpush3.bf16.msra.mxu0 %v4058_v22  ;;  %v4062_v53 = vld [vmem:[#allocation11 + $0x10] sm:$0xff]   ;;  %v4064_v55 = vld [vmem:[#allocation11 + $0x18] sm:$0xff]   ;;  %v4066_v57 = vld [vmem:[#allocation11 + $0x20] sm:$0xff]  }
 0x1e4   :  { %3889 = vmatprep.subr.bf16.mxu1 %v4995_v0  ;;  %3700 = vmatprep.subr.bf16.mxu0 %v4059_v23  ;;  %v4067_v58 = vld [vmem:[#allocation11 + $0x68] sm:$0xff]   ;;  %v4069_v60 = vld [vmem:[#allocation11 + $0x70] sm:$0xff]   ;;  %v4071_v62 = vld [vmem:[#allocation11 + $0x78] sm:$0xff]   ;;  %p4928_p6 = pnand %p4927_p5, %p4921_p2 }
 0x1e5   :  { %v4068_v59 = vld [vmem:[#allocation11 + $0x28] sm:$0xff]   ;;  %v4070_v61 = vld [vmem:[#allocation11 + $0x30] sm:$0xff]   ;;  %v4072_v63 = vld [vmem:[#allocation11 + $0x38] sm:$0xff]  }
 0x1e6   :  { %v3438_v3 = vld [vmem:[#allocation8 + $0x3] ss:$0 sm:$0xff] }
 0x1e7   :  { %3890 = vmatpush3.bf16.msra.mxu1 %v4051_v15  ;;  %3701 = vmatpush3.bf16.msra.mxu0 %v4060_v51  ;;  %v4090_v51 = vld [vmem:[#allocation14 + $0x54] ss:$8 sps:$4 sm:$0xff]  }
 0x1e8   :  { %3891 = vmatprep.subr.bf16.mxu1 %v4995_v0  ;;  %3702 = vmatprep.subr.bf16.mxu0 %v4061_v52  ;;  %v4997_v52 = vmov 0  }
 0x1eb   :  { %3892 = vmatpush3.bf16.msra.mxu1 %v4052_v16  ;;  %3703 = vmatpush3.bf16.msra.mxu0 %v4062_v53  ;;  %v4088_v53 = vld [vmem:[#allocation14 + $0x50] ss:$8 sps:$4 sm:$0xff]  }
 0x1ec   :  { %3893 = vmatprep.subr.bf16.mxu1 %v4995_v0  ;;  %3704 = vmatprep.subr.bf16.mxu0 %v4063_v54  ;;  %v4093_v54 = vld [vmem:[#allocation14 + $0x64] ss:$8 sps:$4 sm:$0xff]  }
 0x1ef   :  { %3894 = vmatpush3.bf16.msra.mxu1 %v4053_v17  ;;  %3705 = vmatpush3.bf16.msra.mxu0 %v4064_v55  ;;  %v4091_v55 = vld [vmem:[#allocation14 + $0x60] ss:$8 sps:$4 sm:$0xff]  }
 0x1f0   :  { %3895 = vmatprep.subr.bf16.mxu1 %v4995_v0  ;;  %3706 = vmatprep.subr.bf16.mxu0 %v4065_v56  ;;  %v4096_v56 = vld [vmem:[#allocation14 + $0x74] ss:$8 sps:$4 sm:$0xff]  }
 0x1f3   :  { %3896 = vmatpush3.bf16.msra.mxu1 %v4054_v18  ;;  %3707 = vmatpush3.bf16.msra.mxu0 %v4066_v57  ;;  %v4094_v57 = vld [vmem:[#allocation14 + $0x70] ss:$8 sps:$4 sm:$0xff]  }
 0x1f4   :  { %3897 = vmatprep.subr.bf16.mxu1 %v4995_v0  ;;  %3708 = vmatprep.subr.bf16.mxu0 %v4067_v58  ;;  %v4097_v58 = vld [vmem:[#allocation16 + $0x40] sm:$0xff]  }
 0x1f7   :  { %3898 = vmatpush3.bf16.msra.mxu1 %v4055_v19  ;;  %3709 = vmatpush3.bf16.msra.mxu0 %v4068_v59  ;;  %v4098_v59 = vld [vmem:[#allocation16] sm:$0xff]  }
 0x1f8   :  { %3899 = vmatprep.subr.bf16.mxu1 %v4995_v0  ;;  %3710 = vmatprep.subr.bf16.mxu0 %v4069_v60  ;;  %v4100_v60 = vld [vmem:[#allocation16 + $0x48] sm:$0xff]  }
 0x1fb   :  { %3900 = vmatpush3.bf16.msra.mxu1 %v4056_v20  ;;  %3711 = vmatpush3.bf16.msra.mxu0 %v4070_v61 }
 0x1fc   :  { %3712 = vmatprep.subr.bf16.mxu0 %v4071_v62 }
 0x1ff   :  { %3713 = vmatpush3.bf16.msra.mxu0 %v4072_v63 }
 0x200   :  { %3720 = vmatprep.subr.bf16.mxu0 %v4097_v58 }
 0x2b5   :  { %v418_v5 = vpop.f32.mrb[0].mxu0 }
 0x2b6   :  { %v5444_v6 = vadd.f32 %v418_v5, %v372_v1  ;;  %v3883_v7 = vpop.f32.mrb[1].mxu0 }
 0x2b7   :  { %v421_v8 = vpop.f32.mrb[2].mxu0 }
 0x2b8   :  { %v5446_v9 = vadd.f32 %v421_v8, %v373_v2  ;;  %479 = vadd.xlane.f32.xlu0 %v5444_v6  ;;  %v3884_v10 = vpop.f32.mrb[3].mxu0  ;;  %v485_v11 = vmul.f32 %v5444_v6, %v5444_v6  ;;  %v3439_v2 = vmul.f32 -1.442695, %v5444_v6 }
 0x2ba   :  { %487 = vadd.xlane.f32.xlu1 %v485_v11  ;;  %v486_v12 = vmul.f32 %v5446_v9, %v5446_v9  ;;  %v3440_v1 = vmul.f32 -1.442695, %v5446_v9 }
 0x2bc   :  { %481 = vadd.xlane.f32.xlu0 %v5446_v9 }
 0x2be   :  { %489 = vadd.xlane.f32.xlu1 %v486_v12 }
 0x345   :  { %v480_v24 = vpop.xlane.xlu0 %479 }
 0x346   :  { %v483_v25 = vmul.f32 0.125, %v480_v24 }
 0x347   :  { %v488_v26 = vpop.xlane.xlu1 %487 }
 0x348   :  { %v493_v27 = vmul.f32 %v483_v25, %v483_v25  ;;  %v491_v28 = vmul.f32 0.125, %v488_v26  ;;  %v497_v38 = vsub.f32 %v5444_v6, %v483_v25 }
 0x349   :  { %v482_v29 = vpop.xlane.xlu0 %481 }
 0x34a   :  { %v495_v30 = vsub.f32 %v491_v28, %v493_v27  ;;  %v484_v31 = vmul.f32 0.125, %v482_v29 }
 0x34b   :  { %v490_v32 = vpop.xlane.xlu1 %489 }
 0x34c   :  { %v499_v33 = vadd.f32 1e-05, %v495_v30  ;;  %v494_v34 = vmul.f32 %v484_v31, %v484_v31  ;;  %v492_v35 = vmul.f32 0.125, %v490_v32  ;;  %v498_v42 = vsub.f32 %v5446_v9, %v484_v31  ;;  %v4073_v32 = vld [vmem:[#allocation14] ss:$8 sps:$4 sm:$0xff]  }
 0x34e   :  { %4313 = vrsqrt.f32 %v499_v33  ;;  %v496_v36 = vsub.f32 %v492_v35, %v494_v34  ;;  %v4075_v33 = vld [vmem:[#allocation14 + $0x4] ss:$8 sps:$4 sm:$0xff]   ;;  %v3441_v35 = vld [vmem:[#allocation8 + $0x2] ss:$0 sm:$0xff] }
 0x34f   :  { %968 = vmatprep.subr.bf16.mxu1 %v4075_v33  ;;  %v4106_v33 = vld [vmem:[#allocation16 + $0x58] sm:$0xff]  }
 0x350   :  { %v500_v37 = vadd.f32 1e-05, %v496_v36 }
 0x352   :  { %4315 = vrsqrt.f32 %v500_v37 }
 0x353   :  { %4317 = vpow2.f32 %v3440_v1 }
 0x354   :  { %4319 = vpow2.f32 %v3439_v2 }
 0x358   :  { %v4314_v39 = vpop.eup %4313 }
 0x359   :  { %v503_v40 = vmul.f32 %v4314_v39, %v497_v38 }
 0x35b   :  { %v509_v45 = vmul.f32 %v3428_v41, %v503_v40 }
 0x35c   :  { %v4316_v43 = vpop.eup %4315 }
 0x35d   :  { %v504_v44 = vmul.f32 %v4316_v43, %v498_v42  ;;  %v515_v48 = vadd.f32 %v3429_v46, %v509_v45  ;;  %v4318_v5 = vpop.eup %4317  ;;  %v4078_v43 = vld [vmem:[#allocation14 + $0x14] ss:$8 sps:$4 sm:$0xff]   ;;  %v4081_v45 = vld [vmem:[#allocation14 + $0x24] ss:$8 sps:$4 sm:$0xff]  }
 0x35e   :  { %v4320_v11 = vpop.eup %4319  ;;  %v630_v15 = vadd.f32 1.0, %v4318_v5 }
 0x35f   :  { %v510_v47 = vmul.f32 %v3428_v41, %v504_v44  ;;  %v629_v18 = vadd.f32 1.0, %v4320_v11  ;;  %v4076_v44 = vld [vmem:[#allocation14 + $0x10] ss:$8 sps:$4 sm:$0xff]  }
 0x360   :  { %4321 = vrcp.f32 %v630_v15 }
 0x361   :  { %v516_v49 = vadd.f32 %v3429_v46, %v510_v47  ;;  %4323 = vrcp.f32 %v629_v18  ;;  %v4079_v46 = vld [vmem:[#allocation14 + $0x20] ss:$8 sps:$4 sm:$0xff]   ;;  %v4084_v47 = vld [vmem:[#allocation14 + $0x34] ss:$8 sps:$4 sm:$0xff]  }
 0x363   :  { %v517_v50 = vpack.c.bf16 %v516_v49, %v515_v48  ;;  %v4082_v48 = vld [vmem:[#allocation14 + $0x30] ss:$8 sps:$4 sm:$0xff]   ;;  %v4085_v49 = vld [vmem:[#allocation14 + $0x40] ss:$8 sps:$4 sm:$0xff]  }
 0x365   :  { %3902 = vmatmul.mubr.bf16.vlgmr.msra.gmra.mrb[0].mxu1 %v517_v50  ;;  %v4087_v50 = vld [vmem:[#allocation14 + $0x44] ss:$8 sps:$4 sm:$0xff]  }
 0x366   :  { %969 = vmatpush1.bf16.msra.mxu1 %v4073_v32  ;;  %1000 = vmatprep.mubr.bf16.mxu1 %v4997_v52  ;;  %v4105_v32 = vld [vmem:[#allocation16 + $0x90] sm:$0xff]  }
 0x367   :  { %970 = vmatprep.subr.bf16.mxu1 %v4078_v43  ;;  %v4116_v43 = vld [vmem:[#allocation16 + $0x30] sm:$0xff]  }
 0x36a   :  { %v4322_v24 = vpop.eup %4321  ;;  %971 = vmatpush1.bf16.msra.mxu1 %v4076_v44  ;;  %v4117_v44 = vld [vmem:[#allocation16 + $0xb0] sm:$0xff]  }
 0x36b   :  { %v4324_v25 = vpop.eup %4323  ;;  %v636_v26 = vmul.f32 %v4322_v24, %v5446_v9  ;;  %972 = vmatprep.subr.bf16.mxu1 %v4081_v45  ;;  %v4118_v45 = vld [vmem:[#allocation16 + $0x78] sm:$0xff]  }
 0x36c   :  { %v635_v29 = vmul.f32 %v4324_v25, %v5444_v6 }
 0x36e   :  { %v637_v31 = vpack.c.bf16 %v636_v26, %v635_v29  ;;  %973 = vmatpush1.bf16.msra.mxu1 %v4079_v46  ;;  %v4099_v26 = vld [vmem:[#allocation16 + $0x80] sm:$0xff]   ;;  %v4102_v29 = vld [vmem:[#allocation16 + $0x88] sm:$0xff]   ;;  %v4119_v46 = vld [vmem:[#allocation16 + $0x38] sm:$0xff]  }
 0x36f   :  { %974 = vmatprep.subr.bf16.mxu1 %v4084_v47  ;;  %v4120_v47 = vld [vmem:[#allocation16 + $0xb8] sm:$0xff]  }
 0x372   :  { %975 = vmatpush1.bf16.msra.mxu1 %v4082_v48  ;;  %v1012_v48 = vlaneseq }
 0x373   :  { %976 = vmatprep.subr.bf16.mxu1 %v4087_v50 }
 0x376   :  { %977 = vmatpush1.bf16.msra.mxu1 %v4085_v49 }
 0x377   :  { %978 = vmatprep.subr.bf16.mxu1 %v4090_v51  ;;  %v1013_v51 = vshrl.u32 %v1012_v48, 7 }
 0x37a   :  { %979 = vmatpush1.bf16.msra.mxu1 %v4088_v53  ;;  %v5494_v53 = vsub.s32 0, %v1013_v51 }
 0x37b   :  { %980 = vmatprep.subr.bf16.mxu1 %v4093_v54  ;;  %v848_v54 = vld [vmem:[#allocation13 + $0x3] ss:$4 sm:$0x3] }
 0x37e   :  { %981 = vmatpush1.bf16.msra.mxu1 %v4091_v55  ;;  %v5496_v55 = vsub.s32 1, %v1013_v51 }
 0x37f   :  { %982 = vmatprep.subr.bf16.mxu1 %v4096_v56  ;;  %v1015_v56 = vrot.slane %v848_v54, %v5494_v53 }
 0x382   :  { %983 = vmatpush1.bf16.msra.mxu1 %v4094_v57  ;;  %v1019_v57 = vrot.slane %v848_v54, %v5496_v55  ;;  %v3504_v54 = vld [vmem:[#allocation17 + $0x1] ss:$0 sm:$0xff] }
 0x383   :  { %3905 = vmatprep.subr.bf16.mxu1 %v4995_v0 }
 0x438   :  { %v600_v4 = vpop.f32.mrb[0].mxu1 }
 0x439   :  { %v611_v7 = vsub.f32 %v600_v4, %v3438_v3  ;;  %v3903_v8 = vpop.f32.mrb[1].mxu1 }
 0x43a   :  { %v603_v10 = vpop.f32.mrb[2].mxu1 }
 0x43b   :  { %v613_v12 = vmul.f32 1.75, %v611_v7  ;;  %v612_v13 = vsub.f32 %v603_v10, %v3438_v3  ;;  %v3904_v14 = vpop.f32.mrb[3].mxu1 }
 0x43d   :  { %v615_v16 = vmul.f32 %v613_v12, %v613_v12  ;;  %v614_v17 = vmul.f32 1.75, %v612_v13 }
 0x43f   :  { %v617_v19 = vsub.f32 0.0, %v615_v16  ;;  %v616_v20 = vmul.f32 %v614_v17, %v614_v17  ;;  %v3458_v16 = vld [vmem:[#allocation13] ss:$0 sm:$0xff] }
 0x441   :  { %v619_v21 = vmul.f32 1.442695, %v617_v19  ;;  %v618_v22 = vsub.f32 0.0, %v616_v20 }
 0x443   :  { %v621_v23 = vmul.f32 1.442695, %v618_v22  ;;  %4325 = vpow2.f32 %v619_v21  ;;  %v3459_v22 = vld [vmem:[#allocation13 + $0x1] ss:$0 sm:$0xff] }
 0x445   :  { %4327 = vpow2.f32 %v621_v23 }
 0x44d   :  { %v4326_v27 = vpop.eup %4325 }
 0x44f   :  { %v4328_v28 = vpop.eup %4327 }
 0x450   :  { %v638_v30 = vpack.c.bf16 %v4328_v28, %v4326_v27  ;;  %v4101_v28 = vld [vmem:[#allocation16 + $0x8] sm:$0xff]  }
 0x452   :  { %771 = vmatprep.mubr.bf16.mxu0 %v638_v30  ;;  %v4103_v30 = vld [vmem:[#allocation16 + $0x50] sm:$0xff]  }
 0x453   :  { %772 = vmatmul.mubr.bf16.vlgmr.msra.gmra.mrb[4].mxu0 %v637_v31  ;;  %v4104_v31 = vld [vmem:[#allocation16 + $0x10] sm:$0xff]  }
 0x454   :  { %3721 = vmatpush3.bf16.msra.mxu0 %v4098_v59 }
 0x455   :  { %3722 = vmatprep.subr.bf16.mxu0 %v4100_v60 }
 0x458   :  { %3723 = vmatpush3.bf16.msra.mxu0 %v4101_v28 }
 0x459   :  { %3724 = vmatprep.subr.bf16.mxu0 %v4103_v30 }
 0x45c   :  { %3725 = vmatpush3.bf16.msra.mxu0 %v4104_v31 }
 0x45d   :  { %3726 = vmatprep.subr.bf16.mxu0 %v4106_v33 }
 0x526   :  { %v3714_v34 = vpop.f32.mrb[4].mxu0 }
 0x527   :  { %v3715_v36 = vpop.f32.mrb[5].mxu0 }
 0x528   :  { %v3716_v37 = vadd.f32 %v3715_v36, %v3714_v34  ;;  %v3717_v38 = vpop.f32.mrb[6].mxu0  ;;  %v4107_v34 = vld [vmem:[#allocation16 + $0x18] sm:$0xff]   ;;  %v4109_v36 = vld [vmem:[#allocation16 + $0x60] sm:$0xff]  }
 0x529   :  { %v3718_v39 = vpop.f32.mrb[7].mxu0  ;;  %3727 = vmatpush3.bf16.msra.mxu0 %v4107_v34 }
 0x52a   :  { %v5467_v40 = vadd.f32 %v3716_v37, %v3441_v35  ;;  %v3719_v9 = vadd.f32 %v3718_v39, %v3717_v38  ;;  %v4110_v37 = vld [vmem:[#allocation16 + $0x20] sm:$0xff]   ;;  %3728 = vmatprep.subr.bf16.mxu0 %v4109_v36  ;;  %v4112_v39 = vld [vmem:[#allocation16 + $0x68] sm:$0xff]  }
 0x52b   :  { %v4111_v38 = vld [vmem:[#allocation16 + $0xa0] sm:$0xff]  }
 0x52c   :  { %v5469_v41 = vadd.f32 %v3719_v9, %v3441_v35  ;;  %849 = vadd.xlane.f32.xlu0 %v5467_v40  ;;  %v855_v6 = vmul.f32 %v5467_v40, %v5467_v40  ;;  %v4108_v35 = vld [vmem:[#allocation16 + $0x98] sm:$0xff]   ;;  %v4113_v9 = vld [vmem:[#allocation16 + $0x28] sm:$0xff]   ;;  %v3476_v50 = vmul.f32 -1.442695, %v5467_v40 }
 0x52d   :  { %3729 = vmatpush3.bf16.msra.mxu0 %v4110_v37 }
 0x52e   :  { %851 = vadd.xlane.f32.xlu1 %v5469_v41  ;;  %v856_v42 = vmul.f32 %v5469_v41, %v5469_v41  ;;  %3730 = vmatprep.subr.bf16.mxu0 %v4112_v39  ;;  %v3477_v49 = vmul.f32 -1.442695, %v5469_v41 }
 0x530   :  { %857 = vadd.xlane.f32.xlu0 %v855_v6  ;;  %v4114_v6 = vld [vmem:[#allocation16 + $0xa8] sm:$0xff]  }
 0x531   :  { %3731 = vmatpush3.bf16.msra.mxu0 %v4113_v9 }
 0x532   :  { %859 = vadd.xlane.f32.xlu1 %v856_v42  ;;  %v4115_v42 = vld [vmem:[#allocation16 + $0x70] sm:$0xff]  }
 0x533   :  { %3732 = vmatprep.subr.bf16.mxu0 %v4115_v42 }
 0x535   :  { %3733 = vmatpush3.bf16.msra.mxu0 %v4116_v43 }
 0x536   :  { %3734 = vmatprep.subr.bf16.mxu0 %v4118_v45 }
 0x539   :  { %3735 = vmatpush3.bf16.msra.mxu0 %v4119_v46  ;;  %v3503_v46 = vld [vmem:[#allocation17] ss:$0 sm:$0xff] }
 0x53a   :  { %3925 = vmatprep.subr.bf16.mxu0 %v4995_v0 }
 0x5b9   :  { %v850_v61 = vpop.xlane.xlu0 %849 }
 0x5ba   :  { %v853_v62 = vmul.f32 0.03125, %v850_v61 }
 0x5bb   :  { %v852_v63 = vpop.xlane.xlu1 %851 }
 0x5bc   :  { %v854_v1 = vmul.f32 0.03125, %v852_v63  ;;  %v863_v3 = vmul.f32 %v853_v62, %v853_v62  ;;  %v867_v14 = vsub.f32 %v5467_v40, %v853_v62 }
 0x5bd   :  { %v858_v2 = vpop.xlane.xlu0 %857 }
 0x5be   :  { %v861_v4 = vmul.f32 0.03125, %v858_v2  ;;  %v864_v7 = vmul.f32 %v854_v1, %v854_v1  ;;  %v868_v17 = vsub.f32 %v5469_v41, %v854_v1 }
 0x5bf   :  { %v860_v5 = vpop.xlane.xlu1 %859 }
 0x5c0   :  { %v865_v8 = vsub.f32 %v861_v4, %v863_v3  ;;  %v862_v10 = vmul.f32 0.03125, %v860_v5 }
 0x5c2   :  { %v869_v11 = vadd.f32 1e-05, %v865_v8  ;;  %v866_v12 = vsub.f32 %v862_v10, %v864_v7 }
 0x5c4   :  { %4329 = vrsqrt.f32 %v869_v11  ;;  %v870_v13 = vadd.f32 1e-05, %v866_v12 }
 0x5c6   :  { %4331 = vrsqrt.f32 %v870_v13 }
 0x5c7   :  { %4333 = vpow2.f32 %v3477_v49 }
 0x5c8   :  { %4335 = vpow2.f32 %v3476_v50 }
 0x5ce   :  { %v4330_v15 = vpop.eup %4329 }
 0x5cf   :  { %v873_v18 = vmul.f32 %v4330_v15, %v867_v14 }
 0x5d0   :  { %v4332_v19 = vpop.eup %4331 }
 0x5d1   :  { %v874_v20 = vmul.f32 %v4332_v19, %v868_v17  ;;  %v879_v21 = vmul.f32 %v3458_v16, %v873_v18  ;;  %v4334_v59 = vpop.eup %4333 }
 0x5d2   :  { %v4336_v1 = vpop.eup %4335  ;;  %v1053_v5 = vadd.f32 1.0, %v4334_v59 }
 0x5d3   :  { %v880_v23 = vmul.f32 %v3458_v16, %v874_v20  ;;  %v885_v24 = vadd.f32 %v3459_v22, %v879_v21  ;;  %v1052_v12 = vadd.f32 1.0, %v4336_v1 }
 0x5d4   :  { %4337 = vrcp.f32 %v1053_v5 }
 0x5d5   :  { %v886_v25 = vadd.f32 %v3459_v22, %v880_v23  ;;  %4339 = vrcp.f32 %v1052_v12  ;;  %v4129_v12 = vld [vmem:[#allocation20 + $0x24] ss:$8 sps:$4 sm:$0xff]  }
 0x5d7   :  { %v887_v27 = vpack.c.bf16 %v886_v25, %v885_v24 }
 0x5d9   :  { %1001 = vmatmul.mubr.bf16.vlgmr.msra.gmra.mrb[4].mxu1 %v887_v27 }
 0x5da   :  { %3906 = vmatpush3.bf16.msra.mxu1 %v4099_v26  ;;  %3921 = vmatprep.mubr.msk.bf16.mxu1 %vm4996_vm0, %v4995_v0 }
 0x5db   :  { %3907 = vmatprep.subr.bf16.mxu1 %v4995_v0 }
 0x5de   :  { %3908 = vmatpush3.bf16.msra.mxu1 %v4102_v29  ;;  %v4338_v25 = vpop.eup %4337 }
 0x5df   :  { %3909 = vmatprep.subr.bf16.mxu1 %v4995_v0  ;;  %v4340_v26 = vpop.eup %4339  ;;  %v1059_v28 = vmul.f32 %v4338_v25, %v5469_v41  ;;  %v4146_v25 = vld [vmem:[#allocation22] sm:$0xff]  }
 0x5e0   :  { %v1058_v31 = vmul.f32 %v4340_v26, %v5467_v40  ;;  %v4148_v26 = vld [vmem:[#allocation22 + $0x48] sm:$0xff]  }
 0x5e2   :  { %3910 = vmatpush3.bf16.msra.mxu1 %v4105_v32  ;;  %v1060_v34 = vpack.c.bf16 %v1059_v28, %v1058_v31 }
 0x5e3   :  { %3911 = vmatprep.subr.bf16.mxu1 %v4995_v0 }
 0x5e6   :  { %3912 = vmatpush3.bf16.msra.mxu1 %v4108_v35 }
 0x5e7   :  { %3913 = vmatprep.subr.bf16.mxu1 %v4995_v0 }
 0x5ea   :  { %3914 = vmatpush3.bf16.msra.mxu1 %v4111_v38  ;;  %v3478_v38 = vld [vmem:[#allocation13 + $0x2] ss:$0 sm:$0xff] }
 0x5eb   :  { %3915 = vmatprep.subr.bf16.mxu1 %v4995_v0 }
 0x5ee   :  { %3916 = vmatpush3.bf16.msra.mxu1 %v4114_v6 }
 0x5ef   :  { %3917 = vmatprep.subr.bf16.mxu1 %v4995_v0 }
 0x5f2   :  { %3918 = vmatpush3.bf16.msra.mxu1 %v4117_v44 }
 0x5f3   :  { %3919 = vmatprep.subr.bf16.mxu1 %v4995_v0 }
 0x5f6   :  { %3920 = vmatpush3.bf16.msra.mxu1 %v4120_v47 }
 0x6ac   :  { %v1002_v58 = vpop.f32.mrb[4].mxu1 }
 0x6ad   :  { %v1022_v60 = vsub.f32 %v1002_v58, %v1015_v56  ;;  %v1004_v61 = vpop.f32.mrb[5].mxu1 }
 0x6ae   :  { %v1023_v62 = vsub.f32 %v1004_v61, %v1019_v57  ;;  %v1006_v63 = vpop.f32.mrb[6].mxu1  ;;  %v4121_v61 = vld [vmem:[#allocation20] ss:$8 sps:$4 sm:$0xff]  }
 0x6af   :  { %v1026_v2 = vmul.f32 1.75, %v1022_v60  ;;  %v1024_v3 = vsub.f32 %v1006_v63, %v1015_v56  ;;  %v1008_v4 = vpop.f32.mrb[7].mxu1  ;;  %v4413_v60 = vld [vmem:[#allocation2] sm:$0xff]  }
 0x6b0   :  { %v1027_v7 = vmul.f32 1.75, %v1023_v62  ;;  %v1025_v8 = vsub.f32 %v1008_v4, %v1019_v57  ;;  %v4123_v62 = vld [vmem:[#allocation20 + $0x4] ss:$8 sps:$4 sm:$0xff]  }
 0x6b1   :  { %v1030_v10 = vmul.f32 %v1026_v2, %v1026_v2  ;;  %v1028_v11 = vmul.f32 1.75, %v1024_v3 }
 0x6b2   :  { %v1031_v13 = vmul.f32 %v1027_v7, %v1027_v7  ;;  %v1029_v14 = vmul.f32 1.75, %v1025_v8 }
 0x6b3   :  { %v1034_v15 = vsub.f32 0.0, %v1030_v10  ;;  %v1032_v16 = vmul.f32 %v1028_v11, %v1028_v11  ;;  %v4126_v10 = vld [vmem:[#allocation20 + $0x14] ss:$8 sps:$4 sm:$0xff]   ;;  %v4124_v11 = vld [vmem:[#allocation20 + $0x10] ss:$8 sps:$4 sm:$0xff]  }
 0x6b4   :  { %v1035_v17 = vsub.f32 0.0, %v1031_v13  ;;  %v1033_v18 = vmul.f32 %v1029_v14, %v1029_v14  ;;  %v4127_v13 = vld [vmem:[#allocation20 + $0x20] ss:$8 sps:$4 sm:$0xff]   ;;  %v4132_v14 = vld [vmem:[#allocation20 + $0x34] ss:$8 sps:$4 sm:$0xff]  }
 0x6b5   :  { %v1038_v19 = vmul.f32 1.442695, %v1034_v15  ;;  %v1036_v20 = vsub.f32 0.0, %v1032_v16  ;;  %v4130_v15 = vld [vmem:[#allocation20 + $0x30] ss:$8 sps:$4 sm:$0xff]  }
 0x6b6   :  { %v1040_v21 = vmul.f32 1.442695, %v1035_v17  ;;  %v1037_v22 = vsub.f32 0.0, %v1033_v18  ;;  %v4133_v16 = vld [vmem:[#allocation20 + $0x40] ss:$8 sps:$4 sm:$0xff]  }
 0x6b7   :  { %4341 = vpow2.f32 %v1038_v19  ;;  %v1042_v23 = vmul.f32 1.442695, %v1036_v20  ;;  %v4135_v17 = vld [vmem:[#allocation20 + $0x44] ss:$8 sps:$4 sm:$0xff]   ;;  %v4138_v18 = vld [vmem:[#allocation20 + $0x54] ss:$8 sps:$4 sm:$0xff]  }
 0x6b8   :  { %4343 = vpow2.f32 %v1040_v21  ;;  %v1044_v24 = vmul.f32 1.442695, %v1037_v22  ;;  %v4136_v19 = vld [vmem:[#allocation20 + $0x50] ss:$8 sps:$4 sm:$0xff]   ;;  %v4141_v20 = vld [vmem:[#allocation20 + $0x64] ss:$8 sps:$4 sm:$0xff]  }
 0x6b9   :  { %4345 = vpow2.f32 %v1042_v23  ;;  %v4139_v21 = vld [vmem:[#allocation20 + $0x60] ss:$8 sps:$4 sm:$0xff]   ;;  %v4144_v22 = vld [vmem:[#allocation20 + $0x74] ss:$8 sps:$4 sm:$0xff]   ;;  %v4142_v23 = vld [vmem:[#allocation20 + $0x70] ss:$8 sps:$4 sm:$0xff]  }
 0x6ba   :  { %4347 = vpow2.f32 %v1044_v24  ;;  %v4145_v24 = vld [vmem:[#allocation22 + $0x40] sm:$0xff]  }
 0x6bb   :  { %3753 = vmatprep.subr.bf16.mxu1 %v4145_v24 }
 0x6c1   :  { %v4342_v27 = vpop.eup %4341 }
 0x6c2   :  { %v4344_v29 = vpop.eup %4343 }
 0x6c3   :  { %v4346_v30 = vpop.eup %4345 }
 0x6c4   :  { %v4348_v32 = vpop.eup %4347  ;;  %v1061_v33 = vpack.c.bf16 %v4346_v30, %v4342_v27 }
 0x6c5   :  { %v1062_v35 = vpack.c.bf16 %v4348_v32, %v4344_v29 }
 0x6c6   :  { %1243 = vmatprep.mubr.bf16.mxu0 %v1061_v33 }
 0x6c7   :  { %1244 = vmatmul.mubr.bf16.vlgmr.msra.gmra.mrb[8].mxu0 %v1060_v34  ;;  %3922 = vmatmul.mubr.bf16.vlgmr.msra.gmra.mrb[8].mxu1 %v1062_v35 }
 0x6c8   :  { %3927 = vmatprep.mubr.msk.bf16.mxu0 %vm4996_vm0, %v4995_v0  ;;  %3754 = vmatpush3.bf16.msra.mxu1 %v4146_v25 }
 0x6c9   :  { %3755 = vmatprep.subr.bf16.mxu1 %v4148_v26 }
 0x79a   :  { %v3736_v36 = vpop.f32.mrb[8].mxu0  ;;  %v1286_v37 = vpop.f32.mrb[8].mxu1 }
 0x79b   :  { %v3737_v39 = vpop.f32.mrb[9].mxu0  ;;  %v3923_v9 = vpop.f32.mrb[9].mxu1 }
 0x79c   :  { %v3738_v41 = vadd.f32 %v3737_v39, %v3736_v36  ;;  %v3739_v6 = vpop.f32.mrb[10].mxu0  ;;  %v1289_v42 = vpop.f32.mrb[10].mxu1 }
 0x79d   :  { %v3740_v43 = vpop.f32.mrb[11].mxu0  ;;  %v3924_v40 = vpop.f32.mrb[11].mxu1 }
 0x79e   :  { %v1246_v44 = vadd.f32 %v3738_v41, %v3478_v38  ;;  %v3741_v45 = vadd.f32 %v3740_v43, %v3739_v6 }
 0x7a0   :  { %v1287_v47 = vadd.f32 %v1286_v37, %v1246_v44  ;;  %v1249_v49 = vadd.f32 %v3741_v45, %v3478_v38 }
 0x7a2   :  { %v1298_v50 = vmul.f32 %v3503_v46, %v1287_v47  ;;  %v1290_v51 = vadd.f32 %v1289_v42, %v1249_v49  ;;  %v3506_v42 = vld [vmem:[#allocation19] ss:$0 sm:$0xff]  ;;  %v3507_v47 = vld [vmem:[#allocation19 + $0x1] ss:$0 sm:$0xff] }
 0x7a4   :  { %v1299_v56 = vmul.f32 %v3503_v46, %v1290_v51  ;;  %v1305_v57 = vadd.f32 %v3504_v54, %v1298_v50 }
 0x7a6   :  { %v1306_v58 = vadd.f32 %v3504_v54, %v1299_v56  ;;  %v4147_v54 = vld [vmem:[#allocation22 + $0x80] sm:$0xff]  }
 0x7a8   :  { %v1307_v59 = vpack.c.bf16 %v1306_v58, %v1305_v57 }
 0x7aa   :  { %3926 = vmatpush3.bf16.msra.mxu0 %v1307_v59  ;;  %v4151_v59 = vld [vmem:[#allocation22 + $0x50] sm:$0xff]  }
 0x7ab   :  { %1539 = vmatprep.subr.bf16.mxu0 %v4123_v62  ;;  %v4154_v62 = vld [vmem:[#allocation22 + $0x58] sm:$0xff]  }
 0x7ad   :  { %3928 = vmatmul.mubr.msk.bf16.vlgmr.msra.gmra.mrb[12].mxu0 %vm380_vm1, %v4413_v60  ;;  %v4152_v60 = vld [vmem:[#allocation22 + $0x10] sm:$0xff]  }
 0x7ae   :  { %1571 = vmatprep.mubr.bf16.mxu0 %v4997_v52  ;;  %1540 = vmatpush1.bf16.msra.mxu0 %v4121_v61  ;;  %v4153_v61 = vld [vmem:[#allocation22 + $0x90] sm:$0xff]  }
 0x7af   :  { %1541 = vmatprep.subr.bf16.mxu0 %v4126_v10  ;;  %v4161_v10 = vld [vmem:[#allocation22 + $0x28] sm:$0xff]  }
 0x7b2   :  { %1542 = vmatpush1.bf16.msra.mxu0 %v4124_v11  ;;  %v4162_v11 = vld [vmem:[#allocation22 + $0xa8] sm:$0xff]  }
 0x7b3   :  { %1543 = vmatprep.subr.bf16.mxu0 %v4129_v12  ;;  %v4163_v12 = vld [vmem:[#allocation22 + $0x70] sm:$0xff]  }
 0x7b6   :  { %1544 = vmatpush1.bf16.msra.mxu0 %v4127_v13  ;;  %v4164_v13 = vld [vmem:[#allocation22 + $0x30] sm:$0xff]  }
 0x7b7   :  { %1545 = vmatprep.subr.bf16.mxu0 %v4132_v14  ;;  %v4165_v14 = vld [vmem:[#allocation22 + $0xb0] sm:$0xff]  }
 0x7ba   :  { %1546 = vmatpush1.bf16.msra.mxu0 %v4130_v15  ;;  %v4166_v15 = vld [vmem:[#allocation22 + $0x78] sm:$0xff]  }
 0x7bb   :  { %1547 = vmatprep.subr.bf16.mxu0 %v4135_v17  ;;  %v4168_v17 = vld [vmem:[#allocation22 + $0xb8] sm:$0xff]  }
 0x7be   :  { %1548 = vmatpush1.bf16.msra.mxu0 %v4133_v16  ;;  %v4167_v16 = vld [vmem:[#allocation22 + $0x38] sm:$0xff]  }
 0x7bf   :  { %1549 = vmatprep.subr.bf16.mxu0 %v4138_v18 }
 0x7c2   :  { %1550 = vmatpush1.bf16.msra.mxu0 %v4136_v19 }
 0x7c3   :  { %1551 = vmatprep.subr.bf16.mxu0 %v4141_v20  ;;  %v1419_v20 = vld [vmem:[#allocation19 + $0x3] ss:$4 sm:$0x3] }
 0x7c6   :  { %1552 = vmatpush1.bf16.msra.mxu0 %v4139_v21  ;;  %v1586_v21 = vrot.slane %v1419_v20, %v5494_v53 }
 0x7c7   :  { %1553 = vmatprep.subr.bf16.mxu0 %v4144_v22  ;;  %v1590_v22 = vrot.slane %v1419_v20, %v5496_v55 }
 0x7ca   :  { %1554 = vmatpush1.bf16.msra.mxu0 %v4142_v23 }
 0x7cb   :  { %3931 = vmatprep.subr.bf16.mxu0 %v4995_v0 }
 0x880   :  { %v1342_v63 = vpop.f32.mrb[12].mxu0 }
 0x881   :  { %v5506_v1 = vadd.f32 %v1342_v63, %v1305_v57  ;;  %v3929_v2 = vpop.f32.mrb[13].mxu0  ;;  %v4149_v57 = vld [vmem:[#allocation22 + $0x8] sm:$0xff]   ;;  %v4155_v63 = vld [vmem:[#allocation22 + $0x18] sm:$0xff]  }
 0x882   :  { %v1345_v3 = vpop.f32.mrb[14].mxu0  ;;  %3756 = vmatpush3.bf16.msra.mxu1 %v4149_v57  ;;  %v4156_v2 = vld [vmem:[#allocation22 + $0x98] sm:$0xff]  }
 0x883   :  { %v5508_v4 = vadd.f32 %v1345_v3, %v1306_v58  ;;  %1420 = vadd.xlane.f32.xlu0 %v5506_v1  ;;  %v3930_v5 = vpop.f32.mrb[15].mxu0  ;;  %v1426_v7 = vmul.f32 %v5506_v1, %v5506_v1  ;;  %v4150_v58 = vld [vmem:[#allocation22 + $0x88] sm:$0xff]   ;;  %3757 = vmatprep.subr.bf16.mxu1 %v4151_v59  ;;  %v4157_v3 = vld [vmem:[#allocation22 + $0x60] sm:$0xff]   ;;  %v3524_v19 = vmul.f32 -1.442695, %v5506_v1 }
 0x884   :  { %v4158_v5 = vld [vmem:[#allocation22 + $0x20] sm:$0xff]  }
 0x885   :  { %1422 = vadd.xlane.f32.xlu1 %v5508_v4  ;;  %v1427_v8 = vmul.f32 %v5508_v4, %v5508_v4  ;;  %v3525_v18 = vmul.f32 -1.442695, %v5508_v4 }
 0x886   :  { %3758 = vmatpush3.bf16.msra.mxu1 %v4152_v60 }
 0x887   :  { %1428 = vadd.xlane.f32.xlu0 %v1426_v7  ;;  %3759 = vmatprep.subr.bf16.mxu1 %v4154_v62  ;;  %v4159_v7 = vld [vmem:[#allocation22 + $0xa0] sm:$0xff]  }
 0x889   :  { %1430 = vadd.xlane.f32.xlu1 %v1427_v8  ;;  %v4160_v8 = vld [vmem:[#allocation22 + $0x68] sm:$0xff]  }
 0x88a   :  { %3760 = vmatpush3.bf16.msra.mxu1 %v4155_v63 }
 0x88b   :  { %3761 = vmatprep.subr.bf16.mxu1 %v4157_v3  ;;  %v4171_v3 = vld [vmem:[#allocation25 + $0x4] ss:$8 sps:$4 sm:$0xff]  }
 0x88e   :  { %3762 = vmatpush3.bf16.msra.mxu1 %v4158_v5 }
 0x88f   :  { %3763 = vmatprep.subr.bf16.mxu1 %v4160_v8 }
 0x892   :  { %3764 = vmatpush3.bf16.msra.mxu1 %v4161_v10 }
 0x893   :  { %3765 = vmatprep.subr.bf16.mxu1 %v4163_v12 }
 0x896   :  { %3766 = vmatpush3.bf16.msra.mxu1 %v4164_v13 }
 0x897   :  { %3767 = vmatprep.subr.bf16.mxu1 %v4166_v15 }
 0x89a   :  { %3768 = vmatpush3.bf16.msra.mxu1 %v4167_v16 }
 0x89b   :  { %2052 = vmatprep.subr.bf16.mxu1 %v4171_v3 }
 0x910   :  { %v1421_v27 = vpop.xlane.xlu0 %1420 }
 0x911   :  { %v1424_v28 = vmul.f32 0.03125, %v1421_v27 }
 0x912   :  { %v1423_v29 = vpop.xlane.xlu1 %1422 }
 0x913   :  { %v1425_v30 = vmul.f32 0.03125, %v1423_v29  ;;  %v1434_v32 = vmul.f32 %v1424_v28, %v1424_v28  ;;  %v1438_v41 = vsub.f32 %v5506_v1, %v1424_v28 }
 0x914   :  { %v1429_v31 = vpop.xlane.xlu0 %1428 }
 0x915   :  { %v1432_v33 = vmul.f32 0.03125, %v1429_v31  ;;  %v1435_v35 = vmul.f32 %v1425_v30, %v1425_v30  ;;  %v1439_v43 = vsub.f32 %v5508_v4, %v1425_v30 }
 0x916   :  { %v1431_v34 = vpop.xlane.xlu1 %1430 }
 0x917   :  { %v1436_v36 = vsub.f32 %v1432_v33, %v1434_v32  ;;  %v1433_v37 = vmul.f32 0.03125, %v1431_v34 }
 0x919   :  { %v1440_v38 = vadd.f32 1e-05, %v1436_v36  ;;  %v1437_v39 = vsub.f32 %v1433_v37, %v1435_v35 }
 0x91b   :  { %4349 = vrsqrt.f32 %v1440_v38  ;;  %v1441_v9 = vadd.f32 1e-05, %v1437_v39 }
 0x91d   :  { %4351 = vrsqrt.f32 %v1441_v9 }
 0x91e   :  { %4353 = vpow2.f32 %v3525_v18 }
 0x91f   :  { %4355 = vpow2.f32 %v3524_v19 }
 0x925   :  { %v4350_v6 = vpop.eup %4349 }
 0x926   :  { %v1444_v40 = vmul.f32 %v4350_v6, %v1438_v41 }
 0x927   :  { %v4352_v44 = vpop.eup %4351 }
 0x928   :  { %v1445_v45 = vmul.f32 %v4352_v44, %v1439_v43  ;;  %v1450_v46 = vmul.f32 %v3506_v42, %v1444_v40  ;;  %v4354_v24 = vpop.eup %4353 }
 0x929   :  { %v4356_v29 = vpop.eup %4355  ;;  %v1624_v33 = vadd.f32 1.0, %v4354_v24  ;;  %v4177_v24 = vld [vmem:[#allocation25 + $0x24] ss:$8 sps:$4 sm:$0xff]  }
 0x92a   :  { %v1451_v49 = vmul.f32 %v3506_v42, %v1445_v45  ;;  %v1456_v50 = vadd.f32 %v3507_v47, %v1450_v46  ;;  %v1623_v38 = vadd.f32 1.0, %v4356_v29  ;;  %v4183_v29 = vld [vmem:[#allocation25 + $0x44] ss:$8 sps:$4 sm:$0xff]  }
 0x92b   :  { %4357 = vrcp.f32 %v1624_v33  ;;  %v4187_v33 = vld [vmem:[#allocation25 + $0x60] ss:$8 sps:$4 sm:$0xff]  }
 0x92c   :  { %v1457_v51 = vadd.f32 %v3507_v47, %v1451_v49  ;;  %4359 = vrcp.f32 %v1623_v38  ;;  %v4196_v38 = vld [vmem:[#allocation26 + $0x48] sm:$0xff]  }
 0x92e   :  { %v1458_v56 = vpack.c.bf16 %v1457_v51, %v1456_v50 }
 0x930   :  { %1572 = vmatmul.mubr.bf16.vlgmr.msra.gmra.mrb[16].mxu0 %v1458_v56 }
 0x931   :  { %3932 = vmatpush3.bf16.msra.mxu0 %v4147_v54  ;;  %3947 = vmatprep.mubr.msk.bf16.mxu0 %vm4996_vm0, %v4995_v0 }
 0x932   :  { %3933 = vmatprep.subr.bf16.mxu0 %v4995_v0 }
 0x935   :  { %3934 = vmatpush3.bf16.msra.mxu0 %v4150_v58  ;;  %v4358_v50 = vpop.eup %4357 }
 0x936   :  { %3935 = vmatprep.subr.bf16.mxu0 %v4995_v0  ;;  %v4360_v51 = vpop.eup %4359  ;;  %v1630_v56 = vmul.f32 %v4358_v50, %v5508_v4  ;;  %v3526_v4 = vld [vmem:[#allocation19 + $0x2] ss:$0 sm:$0xff] }
 0x937   :  { %v1629_v59 = vmul.f32 %v4360_v51, %v5506_v1 }
 0x939   :  { %3936 = vmatpush3.bf16.msra.mxu0 %v4153_v61  ;;  %v1631_v62 = vpack.c.bf16 %v1630_v56, %v1629_v59 }
 0x93a   :  { %3937 = vmatprep.subr.bf16.mxu0 %v4995_v0 }
 0x93d   :  { %3938 = vmatpush3.bf16.msra.mxu0 %v4156_v2  ;;  %v4169_v2 = vld [vmem:[#allocation25] ss:$8 sps:$4 sm:$0xff]  }
 0x93e   :  { %3939 = vmatprep.subr.bf16.mxu0 %v4995_v0 }
 0x941   :  { %3940 = vmatpush3.bf16.msra.mxu0 %v4159_v7 }
 0x942   :  { %3941 = vmatprep.subr.bf16.mxu0 %v4995_v0 }
 0x945   :  { %3942 = vmatpush3.bf16.msra.mxu0 %v4162_v11 }
 0x946   :  { %3943 = vmatprep.subr.bf16.mxu0 %v4995_v0 }
 0x949   :  { %3944 = vmatpush3.bf16.msra.mxu0 %v4165_v14 }
 0x94a   :  { %3945 = vmatprep.subr.bf16.mxu0 %v4995_v0 }
 0x94d   :  { %3946 = vmatpush3.bf16.msra.mxu0 %v4168_v17 }
 0xa03   :  { %v1573_v23 = vpop.f32.mrb[16].mxu0 }
 0xa04   :  { %v1593_v25 = vsub.f32 %v1573_v23, %v1586_v21  ;;  %v1575_v26 = vpop.f32.mrb[17].mxu0  ;;  %v4172_v23 = vld [vmem:[#allocation25 + $0x10] ss:$8 sps:$4 sm:$0xff]  }
 0xa05   :  { %v1594_v27 = vsub.f32 %v1575_v26, %v1590_v22  ;;  %v1577_v28 = vpop.f32.mrb[18].mxu0  ;;  %v4180_v26 = vld [vmem:[#allocation25 + $0x34] ss:$8 sps:$4 sm:$0xff]  }
 0xa06   :  { %v1597_v30 = vmul.f32 1.75, %v1593_v25  ;;  %v1595_v31 = vsub.f32 %v1577_v28, %v1586_v21  ;;  %v1579_v32 = vpop.f32.mrb[19].mxu0  ;;  %v4175_v25 = vld [vmem:[#allocation25 + $0x20] ss:$8 sps:$4 sm:$0xff]  }
 0xa07   :  { %v1598_v34 = vmul.f32 1.75, %v1594_v27  ;;  %v1596_v35 = vsub.f32 %v1579_v32, %v1590_v22  ;;  %v4174_v22 = vld [vmem:[#allocation25 + $0x14] ss:$8 sps:$4 sm:$0xff]   ;;  %v4178_v27 = vld [vmem:[#allocation25 + $0x30] ss:$8 sps:$4 sm:$0xff]  }
 0xa08   :  { %v1601_v36 = vmul.f32 %v1597_v30, %v1597_v30  ;;  %v1599_v37 = vmul.f32 1.75, %v1595_v31  ;;  %v4181_v28 = vld [vmem:[#allocation25 + $0x40] ss:$8 sps:$4 sm:$0xff]   ;;  %v4186_v30 = vld [vmem:[#allocation25 + $0x54] ss:$8 sps:$4 sm:$0xff]  }
 0xa09   :  { %v1602_v39 = vmul.f32 %v1598_v34, %v1598_v34  ;;  %v1600_v9 = vmul.f32 1.75, %v1596_v35  ;;  %v4184_v31 = vld [vmem:[#allocation25 + $0x50] ss:$8 sps:$4 sm:$0xff]   ;;  %v4189_v32 = vld [vmem:[#allocation25 + $0x64] ss:$8 sps:$4 sm:$0xff]  }
 0xa0a   :  { %v1605_v41 = vsub.f32 0.0, %v1601_v36  ;;  %v1603_v6 = vmul.f32 %v1599_v37, %v1599_v37  ;;  %v4192_v34 = vld [vmem:[#allocation25 + $0x74] ss:$8 sps:$4 sm:$0xff]   ;;  %v4190_v35 = vld [vmem:[#allocation25 + $0x70] ss:$8 sps:$4 sm:$0xff]   ;;  %v4193_v36 = vld [vmem:[#allocation26 + $0x40] sm:$0xff]  }
 0xa0b   :  { %v1606_v42 = vsub.f32 0.0, %v1602_v39  ;;  %v1604_v43 = vmul.f32 %v1600_v9, %v1600_v9  ;;  %v4194_v37 = vld [vmem:[#allocation26] sm:$0xff]   ;;  %3784 = vmatprep.subr.bf16.mxu0 %v4193_v36 }
 0xa0c   :  { %v1609_v40 = vmul.f32 1.442695, %v1605_v41  ;;  %v1607_v44 = vsub.f32 0.0, %v1603_v6 }
 0xa0d   :  { %v1611_v45 = vmul.f32 1.442695, %v1606_v42  ;;  %v1608_v46 = vsub.f32 0.0, %v1604_v43 }
 0xa0e   :  { %4361 = vpow2.f32 %v1609_v40  ;;  %v1613_v47 = vmul.f32 1.442695, %v1607_v44 }
 0xa0f   :  { %4363 = vpow2.f32 %v1611_v45  ;;  %v1615_v49 = vmul.f32 1.442695, %v1608_v46 }
 0xa10   :  { %4365 = vpow2.f32 %v1613_v47 }
 0xa11   :  { %4367 = vpow2.f32 %v1615_v49 }
 0xa18   :  { %v4362_v54 = vpop.eup %4361 }
 0xa19   :  { %v4364_v57 = vpop.eup %4363 }
 0xa1a   :  { %v4366_v58 = vpop.eup %4365 }
 0xa1b   :  { %v4368_v60 = vpop.eup %4367  ;;  %v1632_v61 = vpack.c.bf16 %v4366_v58, %v4362_v54 }
 0xa1c   :  { %v1633_v63 = vpack.c.bf16 %v4368_v60, %v4364_v57  ;;  %v3551_v57 = vld [vmem:[#allocation23] ss:$0 sm:$0xff] }
 0xa1d   :  { %1814 = vmatprep.mubr.bf16.mxu1 %v1632_v61 }
 0xa1e   :  { %1815 = vmatmul.mubr.bf16.vlgmr.msra.gmra.mrb[12].mxu1 %v1631_v62  ;;  %3948 = vmatmul.mubr.bf16.vlgmr.msra.gmra.mrb[20].mxu0 %v1633_v63  ;;  %v3552_v63 = vld [vmem:[#allocation23 + $0x1] ss:$0 sm:$0xff] }
 0xa1f   :  { %2084 = vmatprep.mubr.bf16.mxu1 %v4997_v52  ;;  %2053 = vmatpush1.bf16.msra.mxu1 %v4169_v2 }
 0xa20   :  { %2054 = vmatprep.subr.bf16.mxu1 %v4174_v22  ;;  %3785 = vmatpush3.bf16.msra.mxu0 %v4194_v37  ;;  %v4209_v22 = vld [vmem:[#allocation26 + $0x28] sm:$0xff]  }
 0xa21   :  { %3786 = vmatprep.subr.bf16.mxu0 %v4196_v38 }
 0xa23   :  { %2055 = vmatpush1.bf16.msra.mxu1 %v4172_v23  ;;  %v4210_v23 = vld [vmem:[#allocation26 + $0xa8] sm:$0xff]  }
 0xa24   :  { %2056 = vmatprep.subr.bf16.mxu1 %v4177_v24  ;;  %v4211_v24 = vld [vmem:[#allocation26 + $0x70] sm:$0xff]  }
 0xa27   :  { %2057 = vmatpush1.bf16.msra.mxu1 %v4175_v25  ;;  %v4212_v25 = vld [vmem:[#allocation26 + $0x30] sm:$0xff]  }
 0xa28   :  { %2058 = vmatprep.subr.bf16.mxu1 %v4180_v26  ;;  %v4213_v26 = vld [vmem:[#allocation26 + $0xb0] sm:$0xff]  }
 0xa2b   :  { %2059 = vmatpush1.bf16.msra.mxu1 %v4178_v27  ;;  %v4214_v27 = vld [vmem:[#allocation26 + $0x78] sm:$0xff]  }
 0xa2c   :  { %2060 = vmatprep.subr.bf16.mxu1 %v4183_v29  ;;  %v4216_v29 = vld [vmem:[#allocation26 + $0xb8] sm:$0xff]  }
 0xa2f   :  { %2061 = vmatpush1.bf16.msra.mxu1 %v4181_v28  ;;  %v4215_v28 = vld [vmem:[#allocation26 + $0x38] sm:$0xff]  }
 0xa30   :  { %2062 = vmatprep.subr.bf16.mxu1 %v4186_v30 }
 0xa33   :  { %2063 = vmatpush1.bf16.msra.mxu1 %v4184_v31 }
 0xa34   :  { %2064 = vmatprep.subr.bf16.mxu1 %v4189_v32  ;;  %v1932_v32 = vld [vmem:[#allocation23 + $0x3] ss:$4 sm:$0x3] }
 0xa37   :  { %2065 = vmatpush1.bf16.msra.mxu1 %v4187_v33  ;;  %v2099_v33 = vrot.slane %v1932_v32, %v5494_v53 }
 0xa38   :  { %2066 = vmatprep.subr.bf16.mxu1 %v4192_v34  ;;  %v2103_v34 = vrot.slane %v1932_v32, %v5496_v55  ;;  %v3597_v32 = vld [vmem:[#allocation28 + $0x1] ss:$0 sm:$0xff] }
 0xa3b   :  { %2067 = vmatpush1.bf16.msra.mxu1 %v4190_v35 }
 0xa3c   :  { %3951 = vmatprep.subr.bf16.mxu1 %v4995_v0 }
 0xaf1   :  { %v3769_v5 = vpop.f32.mrb[12].mxu1  ;;  %v1857_v7 = vpop.f32.mrb[20].mxu0 }
 0xaf2   :  { %v3770_v8 = vpop.f32.mrb[13].mxu1  ;;  %v3949_v10 = vpop.f32.mrb[21].mxu0 }
 0xaf3   :  { %v3771_v11 = vadd.f32 %v3770_v8, %v3769_v5  ;;  %v3772_v1 = vpop.f32.mrb[14].mxu1  ;;  %v1860_v12 = vpop.f32.mrb[22].mxu0  ;;  %v4197_v8 = vld [vmem:[#allocation26 + $0x8] sm:$0xff]  }
 0xaf4   :  { %v3773_v13 = vpop.f32.mrb[15].mxu1  ;;  %v3950_v14 = vpop.f32.mrb[23].mxu0  ;;  %v4198_v10 = vld [vmem:[#allocation26 + $0x88] sm:$0xff]   ;;  %3787 = vmatpush3.bf16.msra.mxu0 %v4197_v8 }
 0xaf5   :  { %v1817_v15 = vadd.f32 %v3771_v11, %v3526_v4  ;;  %v3774_v16 = vadd.f32 %v3773_v13, %v3772_v1  ;;  %v4199_v11 = vld [vmem:[#allocation26 + $0x50] sm:$0xff]   ;;  %v4202_v13 = vld [vmem:[#allocation26 + $0x58] sm:$0xff]  }
 0xaf6   :  { %v4200_v1 = vld [vmem:[#allocation26 + $0x10] sm:$0xff]   ;;  %3788 = vmatprep.subr.bf16.mxu0 %v4199_v11  ;;  %v4203_v14 = vld [vmem:[#allocation26 + $0x18] sm:$0xff]  }
 0xaf7   :  { %v5535_v17 = vadd.f32 %v1857_v7, %v1817_v15  ;;  %v1820_v18 = vadd.f32 %v3774_v16, %v3526_v4  ;;  %v4195_v7 = vld [vmem:[#allocation26 + $0x80] sm:$0xff]   ;;  %v4204_v15 = vld [vmem:[#allocation26 + $0x98] sm:$0xff]  }
 0xaf8   :  { %3789 = vmatpush3.bf16.msra.mxu0 %v4200_v1  ;;  %v4205_v16 = vld [vmem:[#allocation26 + $0x60] sm:$0xff]  }
 0xaf9   :  { %v5537_v19 = vadd.f32 %v1860_v12, %v1820_v18  ;;  %1933 = vadd.xlane.f32.xlu0 %v5535_v17  ;;  %v1939_v20 = vmul.f32 %v5535_v17, %v5535_v17  ;;  %v4201_v12 = vld [vmem:[#allocation26 + $0x90] sm:$0xff]   ;;  %3790 = vmatprep.subr.bf16.mxu0 %v4202_v13  ;;  %v4206_v18 = vld [vmem:[#allocation26 + $0x20] sm:$0xff]   ;;  %v3569_v31 = vmul.f32 -1.442695, %v5535_v17 }
 0xafb   :  { %1935 = vadd.xlane.f32.xlu1 %v5537_v19  ;;  %v1940_v21 = vmul.f32 %v5537_v19, %v5537_v19  ;;  %v3570_v30 = vmul.f32 -1.442695, %v5537_v19 }
 0xafc   :  { %3791 = vmatpush3.bf16.msra.mxu0 %v4203_v14 }
 0xafd   :  { %1941 = vadd.xlane.f32.xlu0 %v1939_v20  ;;  %v4207_v20 = vld [vmem:[#allocation26 + $0xa0] sm:$0xff]   ;;  %3792 = vmatprep.subr.bf16.mxu0 %v4205_v16 }
 0xaff   :  { %1943 = vadd.xlane.f32.xlu1 %v1940_v21  ;;  %v4208_v21 = vld [vmem:[#allocation26 + $0x68] sm:$0xff]  }
 0xb00   :  { %3793 = vmatpush3.bf16.msra.mxu0 %v4206_v18  ;;  %v3571_v18 = vld [vmem:[#allocation23 + $0x2] ss:$0 sm:$0xff] }
 0xb01   :  { %3794 = vmatprep.subr.bf16.mxu0 %v4208_v21 }
 0xb04   :  { %3795 = vmatpush3.bf16.msra.mxu0 %v4209_v22 }
 0xb05   :  { %3796 = vmatprep.subr.bf16.mxu0 %v4211_v24 }
 0xb08   :  { %3797 = vmatpush3.bf16.msra.mxu0 %v4212_v25 }
 0xb09   :  { %3798 = vmatprep.subr.bf16.mxu0 %v4214_v27  ;;  %v3596_v27 = vld [vmem:[#allocation28] ss:$0 sm:$0xff] }
 0xb0c   :  { %3799 = vmatpush3.bf16.msra.mxu0 %v4215_v28 }
 0xb0d   :  { %3971 = vmatprep.subr.bf16.mxu0 %v4995_v0 }
 0xb86   :  { %v1934_v39 = vpop.xlane.xlu0 %1933 }
 0xb87   :  { %v1937_v9 = vmul.f32 0.03125, %v1934_v39 }
 0xb88   :  { %v1936_v41 = vpop.xlane.xlu1 %1935 }
 0xb89   :  { %v1938_v6 = vmul.f32 0.03125, %v1936_v41  ;;  %v1947_v43 = vmul.f32 %v1937_v9, %v1937_v9  ;;  %v1951_v54 = vsub.f32 %v5535_v17, %v1937_v9 }
 0xb8a   :  { %v1942_v42 = vpop.xlane.xlu0 %1941 }
 0xb8b   :  { %v1945_v40 = vmul.f32 0.03125, %v1942_v42  ;;  %v1948_v45 = vmul.f32 %v1938_v6, %v1938_v6  ;;  %v1952_v58 = vsub.f32 %v5537_v19, %v1938_v6 }
 0xb8c   :  { %v1944_v44 = vpop.xlane.xlu1 %1943 }
 0xb8d   :  { %v1949_v46 = vsub.f32 %v1945_v40, %v1947_v43  ;;  %v1946_v47 = vmul.f32 0.03125, %v1944_v44 }
 0xb8f   :  { %v1953_v49 = vadd.f32 1e-05, %v1949_v46  ;;  %v1950_v50 = vsub.f32 %v1946_v47, %v1948_v45 }
 0xb91   :  { %4369 = vrsqrt.f32 %v1953_v49  ;;  %v1954_v51 = vadd.f32 1e-05, %v1950_v50 }
 0xb93   :  { %4371 = vrsqrt.f32 %v1954_v51 }
 0xb94   :  { %4373 = vpow2.f32 %v3570_v30 }
 0xb95   :  { %4375 = vpow2.f32 %v3569_v31 }
 0xb9b   :  { %v4370_v56 = vpop.eup %4369 }
 0xb9c   :  { %v1957_v59 = vmul.f32 %v4370_v56, %v1951_v54 }
 0xb9d   :  { %v4372_v60 = vpop.eup %4371 }
 0xb9e   :  { %v1958_v61 = vmul.f32 %v4372_v60, %v1952_v58  ;;  %v1963_v62 = vmul.f32 %v3551_v57, %v1957_v59  ;;  %v4374_v36 = vpop.eup %4373 }
 0xb9f   :  { %v4376_v41 = vpop.eup %4375  ;;  %v2137_v40 = vadd.f32 1.0, %v4374_v36 }
 0xba0   :  { %v1964_v2 = vmul.f32 %v3551_v57, %v1958_v61  ;;  %v1969_v3 = vadd.f32 %v3552_v63, %v1963_v62  ;;  %v2136_v49 = vadd.f32 1.0, %v4376_v41  ;;  %v4220_v41 = vld [vmem:[#allocation31 + $0x10] ss:$8 sps:$4 sm:$0xff]  }
 0xba1   :  { %4377 = vrcp.f32 %v2137_v40 }
 0xba2   :  { %v1970_v5 = vadd.f32 %v3552_v63, %v1964_v2  ;;  %4379 = vrcp.f32 %v2136_v49  ;;  %v4226_v49 = vld [vmem:[#allocation31 + $0x30] ss:$8 sps:$4 sm:$0xff]  }
 0xba4   :  { %v1971_v4 = vpack.c.bf16 %v1970_v5, %v1969_v3 }
 0xba6   :  { %2085 = vmatmul.mubr.bf16.vlgmr.msra.gmra.mrb[16].mxu1 %v1971_v4 }
 0xba7   :  { %3952 = vmatpush3.bf16.msra.mxu1 %v4195_v7  ;;  %3967 = vmatprep.mubr.msk.bf16.mxu1 %vm4996_vm0, %v4995_v0 }
 0xba8   :  { %3953 = vmatprep.subr.bf16.mxu1 %v4995_v0 }
 0xbab   :  { %3954 = vmatpush3.bf16.msra.mxu1 %v4198_v10  ;;  %v4378_v3 = vpop.eup %4377 }
 0xbac   :  { %3955 = vmatprep.subr.bf16.mxu1 %v4995_v0  ;;  %v4380_v5 = vpop.eup %4379  ;;  %v2143_v4 = vmul.f32 %v4378_v3, %v5537_v19 }
 0xbad   :  { %v2142_v11 = vmul.f32 %v4380_v5, %v5535_v17 }
 0xbaf   :  { %3956 = vmatpush3.bf16.msra.mxu1 %v4201_v12  ;;  %v2144_v13 = vpack.c.bf16 %v2143_v4, %v2142_v11 }
 0xbb0   :  { %3957 = vmatprep.subr.bf16.mxu1 %v4995_v0 }
 0xbb3   :  { %3958 = vmatpush3.bf16.msra.mxu1 %v4204_v15 }
 0xbb4   :  { %3959 = vmatprep.subr.bf16.mxu1 %v4995_v0 }
 0xbb7   :  { %3960 = vmatpush3.bf16.msra.mxu1 %v4207_v20 }
 0xbb8   :  { %3961 = vmatprep.subr.bf16.mxu1 %v4995_v0 }
 0xbbb   :  { %3962 = vmatpush3.bf16.msra.mxu1 %v4210_v23 }
 0xbbc   :  { %3963 = vmatprep.subr.bf16.mxu1 %v4995_v0 }
 0xbbf   :  { %3964 = vmatpush3.bf16.msra.mxu1 %v4213_v26 }
 0xbc0   :  { %3965 = vmatprep.subr.bf16.mxu1 %v4995_v0 }
 0xbc3   :  { %3966 = vmatpush3.bf16.msra.mxu1 %v4216_v29 }
 0xc79   :  { %v2086_v35 = vpop.f32.mrb[16].mxu1 }
 0xc7a   :  { %v2106_v37 = vsub.f32 %v2086_v35, %v2099_v33  ;;  %v2088_v38 = vpop.f32.mrb[17].mxu1 }
 0xc7b   :  { %v2107_v39 = vsub.f32 %v2088_v38, %v2103_v34  ;;  %v2090_v9 = vpop.f32.mrb[18].mxu1  ;;  %v4217_v38 = vld [vmem:[#allocation31] ss:$8 sps:$4 sm:$0xff]  }
 0xc7c   :  { %v2110_v6 = vmul.f32 1.75, %v2106_v37  ;;  %v2108_v42 = vsub.f32 %v2090_v9, %v2099_v33  ;;  %v2092_v43 = vpop.f32.mrb[19].mxu1  ;;  %v371_v37 = vld [vmem:[#allocation5] sm:$0xf]  ;;  %v4222_v9 = vld [vmem:[#allocation31 + $0x14] ss:$8 sps:$4 sm:$0xff]  }
 0xc7d   :  { %v2111_v44 = vmul.f32 1.75, %v2107_v39  ;;  %v2109_v45 = vsub.f32 %v2092_v43, %v2103_v34  ;;  %v4219_v39 = vld [vmem:[#allocation31 + $0x4] ss:$8 sps:$4 sm:$0xff]  }
 0xc7e   :  { %v2114_v46 = vmul.f32 %v2110_v6, %v2110_v6  ;;  %v2112_v47 = vmul.f32 1.75, %v2108_v42 }
 0xc7f   :  { %v2115_v50 = vmul.f32 %v2111_v44, %v2111_v44  ;;  %v2113_v51 = vmul.f32 1.75, %v2109_v45  ;;  %v4225_v45 = vld [vmem:[#allocation31 + $0x24] ss:$8 sps:$4 sm:$0xff]  }
 0xc80   :  { %v2118_v54 = vsub.f32 0.0, %v2114_v46  ;;  %v2116_v56 = vmul.f32 %v2112_v47, %v2112_v47  ;;  %v4223_v46 = vld [vmem:[#allocation31 + $0x20] ss:$8 sps:$4 sm:$0xff]   ;;  %v4228_v47 = vld [vmem:[#allocation31 + $0x34] ss:$8 sps:$4 sm:$0xff]  }
 0xc81   :  { %v2119_v57 = vsub.f32 0.0, %v2115_v50  ;;  %v2117_v58 = vmul.f32 %v2113_v51, %v2113_v51  ;;  %v4229_v50 = vld [vmem:[#allocation31 + $0x40] ss:$8 sps:$4 sm:$0xff]   ;;  %v4231_v51 = vld [vmem:[#allocation31 + $0x44] ss:$8 sps:$4 sm:$0xff]  }
 0xc82   :  { %v2122_v59 = vmul.f32 1.442695, %v2118_v54  ;;  %v2120_v60 = vsub.f32 0.0, %v2116_v56  ;;  %v4234_v54 = vld [vmem:[#allocation31 + $0x54] ss:$8 sps:$4 sm:$0xff]  }
 0xc83   :  { %v2124_v61 = vmul.f32 1.442695, %v2119_v57  ;;  %v2121_v62 = vsub.f32 0.0, %v2117_v58  ;;  %v4232_v56 = vld [vmem:[#allocation31 + $0x50] ss:$8 sps:$4 sm:$0xff]  }
 0xc84   :  { %4381 = vpow2.f32 %v2122_v59  ;;  %v2126_v63 = vmul.f32 1.442695, %v2120_v60  ;;  %v4237_v57 = vld [vmem:[#allocation31 + $0x64] ss:$8 sps:$4 sm:$0xff]   ;;  %v4235_v58 = vld [vmem:[#allocation31 + $0x60] ss:$8 sps:$4 sm:$0xff]  }
 0xc85   :  { %4383 = vpow2.f32 %v2124_v61  ;;  %v2128_v2 = vmul.f32 1.442695, %v2121_v62  ;;  %v4240_v59 = vld [vmem:[#allocation31 + $0x74] ss:$8 sps:$4 sm:$0xff]   ;;  %v4238_v60 = vld [vmem:[#allocation31 + $0x70] ss:$8 sps:$4 sm:$0xff]  }
 0xc86   :  { %4385 = vpow2.f32 %v2126_v63  ;;  %v4241_v61 = vld [vmem:[#allocation32 + $0x40] sm:$0xff]   ;;  %v4244_v63 = vld [vmem:[#allocation32 + $0x48] sm:$0xff]  }
 0xc87   :  { %4387 = vpow2.f32 %v2128_v2  ;;  %v4242_v62 = vld [vmem:[#allocation32] sm:$0xff]   ;;  %3817 = vmatprep.subr.bf16.mxu1 %v4241_v61  ;;  %v4245_v2 = vld [vmem:[#allocation32 + $0x8] sm:$0xff]  }
 0xc8e   :  { %v4382_v7 = vpop.eup %4381 }
 0xc8f   :  { %v4384_v8 = vpop.eup %4383 }
 0xc90   :  { %v4386_v10 = vpop.eup %4385 }
 0xc91   :  { %v4388_v1 = vpop.eup %4387  ;;  %v2145_v12 = vpack.c.bf16 %v4386_v10, %v4382_v7 }
 0xc92   :  { %v2146_v14 = vpack.c.bf16 %v4388_v1, %v4384_v8 }
 0xc93   :  { %2327 = vmatprep.mubr.bf16.mxu0 %v2145_v12 }
 0xc94   :  { %2328 = vmatmul.mubr.bf16.vlgmr.msra.gmra.mrb[24].mxu0 %v2144_v13  ;;  %3968 = vmatmul.mubr.bf16.vlgmr.msra.gmra.mrb[20].mxu1 %v2146_v14  ;;  %v3599_v13 = vld [vmem:[#allocation29] ss:$0 sm:$0xff] }
 0xc95   :  { %3973 = vmatprep.mubr.msk.bf16.mxu0 %vm4996_vm0, %v4995_v0  ;;  %3818 = vmatpush3.bf16.msra.mxu1 %v4242_v62 }
 0xc96   :  { %3819 = vmatprep.subr.bf16.mxu1 %v4244_v63 }
 0xc99   :  { %3820 = vmatpush3.bf16.msra.mxu1 %v4245_v2 }
 0xd67   :  { %v3800_v15 = vpop.f32.mrb[24].mxu0  ;;  %v2370_v16 = vpop.f32.mrb[20].mxu1 }
 0xd68   :  { %v3801_v20 = vpop.f32.mrb[25].mxu0  ;;  %v3969_v21 = vpop.f32.mrb[21].mxu1 }
 0xd69   :  { %v3802_v19 = vadd.f32 %v3801_v20, %v3800_v15  ;;  %v3803_v22 = vpop.f32.mrb[26].mxu0  ;;  %v2373_v23 = vpop.f32.mrb[22].mxu1  ;;  %v3600_v15 = vld [vmem:[#allocation29 + $0x1] ss:$0 sm:$0xff]  ;;  %v4243_v20 = vld [vmem:[#allocation32 + $0x80] sm:$0xff]  }
 0xd6a   :  { %v3804_v24 = vpop.f32.mrb[27].mxu0  ;;  %v3970_v17 = vpop.f32.mrb[23].mxu1 }
 0xd6b   :  { %v2330_v25 = vadd.f32 %v3802_v19, %v3571_v18  ;;  %v3805_v26 = vadd.f32 %v3804_v24, %v3803_v22  ;;  %v4246_v19 = vld [vmem:[#allocation32 + $0x88] sm:$0xff]   ;;  %v4247_v22 = vld [vmem:[#allocation32 + $0x50] sm:$0xff]   ;;  %v4250_v17 = vld [vmem:[#allocation32 + $0x58] sm:$0xff]  }
 0xd6c   :  { %v4249_v24 = vld [vmem:[#allocation32 + $0x90] sm:$0xff]   ;;  %3821 = vmatprep.subr.bf16.mxu1 %v4247_v22 }
 0xd6d   :  { %v2371_v28 = vadd.f32 %v2370_v16, %v2330_v25  ;;  %v2333_v29 = vadd.f32 %v3805_v26, %v3571_v18  ;;  %v4251_v25 = vld [vmem:[#allocation32 + $0x18] sm:$0xff]  }
 0xd6e   :  { %v4252_v26 = vld [vmem:[#allocation32 + $0x98] sm:$0xff]  }
 0xd6f   :  { %v2382_v30 = vmul.f32 %v3596_v27, %v2371_v28  ;;  %v2374_v31 = vadd.f32 %v2373_v23, %v2333_v29  ;;  %v4248_v23 = vld [vmem:[#allocation32 + $0x10] sm:$0xff]   ;;  %v4254_v28 = vld [vmem:[#allocation32 + $0x20] sm:$0xff]  }
 0xd70   :  { %3822 = vmatpush3.bf16.msra.mxu1 %v4248_v23  ;;  %v4255_v29 = vld [vmem:[#allocation32 + $0xa0] sm:$0xff]  }
 0xd71   :  { %v2383_v33 = vmul.f32 %v3596_v27, %v2374_v31  ;;  %v2389_v34 = vadd.f32 %v3597_v32, %v2382_v30  ;;  %3823 = vmatprep.subr.bf16.mxu1 %v4250_v17  ;;  %v4253_v27 = vld [vmem:[#allocation32 + $0x60] sm:$0xff]   ;;  %v4256_v30 = vld [vmem:[#allocation32 + $0x68] sm:$0xff]  }
 0xd72   :  { %v4257_v31 = vld [vmem:[#allocation32 + $0x28] sm:$0xff]  }
 0xd73   :  { %v2390_v35 = vadd.f32 %v3597_v32, %v2383_v33  ;;  %v4258_v32 = vld [vmem:[#allocation32 + $0xa8] sm:$0xff]   ;;  %v4259_v33 = vld [vmem:[#allocation32 + $0x70] sm:$0xff]  }
 0xd74   :  { %3824 = vmatpush3.bf16.msra.mxu1 %v4251_v25  ;;  %v4271_v17 = vld [vmem:[#allocation35 + $0x20] ss:$8 sps:$4 sm:$0xff]   ;;  %v4276_v25 = vld [vmem:[#allocation35 + $0x34] ss:$8 sps:$4 sm:$0xff]  }
 0xd75   :  { %v2391_v36 = vpack.c.bf16 %v2390_v35, %v2389_v34  ;;  %3825 = vmatprep.subr.bf16.mxu1 %v4253_v27  ;;  %v4260_v34 = vld [vmem:[#allocation32 + $0x30] sm:$0xff]  }
 0xd76   :  { %v4261_v35 = vld [vmem:[#allocation32 + $0xb0] sm:$0xff]  }
 0xd77   :  { %3972 = vmatpush3.bf16.msra.mxu0 %v2391_v36  ;;  %v4262_v36 = vld [vmem:[#allocation32 + $0x78] sm:$0xff]   ;;  %v4277_v27 = vld [vmem:[#allocation35 + $0x40] ss:$8 sps:$4 sm:$0xff]  }
 0xd78   :  { %2608 = vmatprep.subr.bf16.mxu0 %v4219_v39  ;;  %3826 = vmatpush3.bf16.msra.mxu1 %v4254_v28  ;;  %v4279_v28 = vld [vmem:[#allocation35 + $0x44] ss:$8 sps:$4 sm:$0xff]  }
 0xd79   :  { %3827 = vmatprep.subr.bf16.mxu1 %v4256_v30  ;;  %v4280_v30 = vld [vmem:[#allocation35 + $0x50] ss:$8 sps:$4 sm:$0xff]  }
 0xd7a   :  { %3974 = vmatmul.mubr.msk.bf16.vlgmr.msra.gmra.mrb[28].mxu0 %vm380_vm1, %v371_v37  ;;  %v4263_v37 = vld [vmem:[#allocation32 + $0x38] sm:$0xff]  }
 0xd7b   :  { %2640 = vmatprep.mubr.bf16.mxu0 %v4997_v52  ;;  %2609 = vmatpush1.bf16.msra.mxu0 %v4217_v38  ;;  %v4264_v38 = vld [vmem:[#allocation32 + $0xb8] sm:$0xff]  }
 0xd7c   :  { %2610 = vmatprep.subr.bf16.mxu0 %v4222_v9  ;;  %3828 = vmatpush3.bf16.msra.mxu1 %v4257_v31  ;;  %v2503_v9 = vld [vmem:[#allocation29 + $0x3] ss:$4 sm:$0x3]  ;;  %v4285_v31 = vld [vmem:[#allocation35 + $0x64] ss:$8 sps:$4 sm:$0xff]  }
 0xd7d   :  { %3829 = vmatprep.subr.bf16.mxu1 %v4259_v33  ;;  %v4288_v33 = vld [vmem:[#allocation35 + $0x74] ss:$8 sps:$4 sm:$0xff]  }
 0xd7f   :  { %2611 = vmatpush1.bf16.msra.mxu0 %v4220_v41  ;;  %v2653_v41 = vrot.slane %v2503_v9, %v5494_v53 }
 0xd80   :  { %2612 = vmatprep.subr.bf16.mxu0 %v4225_v45  ;;  %3830 = vmatpush3.bf16.msra.mxu1 %v4260_v34  ;;  %v4286_v34 = vld [vmem:[#allocation35 + $0x70] ss:$8 sps:$4 sm:$0xff]  }
 0xd81   :  { %3831 = vmatprep.subr.bf16.mxu1 %v4262_v36  ;;  %v4290_v36 = vld [vmem:[#allocation37] sm:$0xff]  }
 0xd83   :  { %2613 = vmatpush1.bf16.msra.mxu0 %v4223_v46 }
 0xd84   :  { %2614 = vmatprep.subr.bf16.mxu0 %v4228_v47  ;;  %3832 = vmatpush3.bf16.msra.mxu1 %v4263_v37  ;;  %v4292_v37 = vld [vmem:[#allocation37 + $0x48] sm:$0xff]  }
 0xd87   :  { %2615 = vmatpush1.bf16.msra.mxu0 %v4226_v49 }
 0xd88   :  { %2616 = vmatprep.subr.bf16.mxu0 %v4231_v51 }
 0xd8b   :  { %2617 = vmatpush1.bf16.msra.mxu0 %v4229_v50 }
 0xd8c   :  { %2618 = vmatprep.subr.bf16.mxu0 %v4234_v54 }
 0xd8f   :  { %2619 = vmatpush1.bf16.msra.mxu0 %v4232_v56 }
 0xd90   :  { %2620 = vmatprep.subr.bf16.mxu0 %v4237_v57 }
 0xd93   :  { %2621 = vmatpush1.bf16.msra.mxu0 %v4235_v58 }
 0xd94   :  { %2622 = vmatprep.subr.bf16.mxu0 %v4240_v59 }
 0xd97   :  { %2623 = vmatpush1.bf16.msra.mxu0 %v4238_v60 }
 0xd98   :  { %3977 = vmatprep.subr.bf16.mxu0 %v4995_v0 }
 0xe4d   :  { %v5568_v6 = vpop.f32.mrb[28].mxu0 }
 0xe4e   :  { %2504 = vadd.xlane.f32.xlu0 %v5568_v6  ;;  %v2507_v42 = vmul.f32 %v5568_v6, %v5568_v6  ;;  %v3975_v43 = vpop.f32.mrb[29].mxu0  ;;  %v3617_v39 = vmul.f32 -1.442695, %v5568_v6 }
 0xe4f   :  { %v2432_v40 = vpop.f32.mrb[30].mxu0 }
 0xe50   :  { %2508 = vadd.xlane.f32.xlu1 %v2507_v42  ;;  %v3976_v44 = vpop.f32.mrb[31].mxu0  ;;  %v2657_v42 = vrot.slane %v2503_v9, %v5496_v55 }
 0xedb   :  { %v2505_v3 = vpop.xlane.xlu0 %2504 }
 0xedc   :  { %v2506_v5 = vmul.f32 0.03125, %v2505_v3 }
 0xedd   :  { %v2509_v7 = vpop.xlane.xlu1 %2508 }
 0xede   :  { %v2511_v4 = vmul.f32 %v2506_v5, %v2506_v5  ;;  %v2510_v8 = vmul.f32 0.03125, %v2509_v7  ;;  %v2513_v1 = vsub.f32 %v5568_v6, %v2506_v5 }
 0xee0   :  { %v2512_v10 = vsub.f32 %v2510_v8, %v2511_v4  ;;  %v4265_v8 = vld [vmem:[#allocation35] ss:$8 sps:$4 sm:$0xff]  }
 0xee2   :  { %v2514_v11 = vadd.f32 1e-05, %v2512_v10  ;;  %v4267_v10 = vld [vmem:[#allocation35 + $0x4] ss:$8 sps:$4 sm:$0xff]  }
 0xee3   :  { %3083 = vmatprep.subr.bf16.mxu1 %v4267_v10  ;;  %v4306_v10 = vld [vmem:[#allocation37 + $0xa8] sm:$0xff]  }
 0xee4   :  { %4389 = vrsqrt.f32 %v2514_v11  ;;  %v4270_v11 = vld [vmem:[#allocation35 + $0x14] ss:$8 sps:$4 sm:$0xff]  }
 0xee5   :  { %4391 = vpow2.f32 %v3617_v39 }
 0xeee   :  { %v4390_v12 = vpop.eup %4389 }
 0xeef   :  { %v2516_v14 = vmul.f32 %v4390_v12, %v2513_v1  ;;  %v4392_v43 = vpop.eup %4391  ;;  %v4268_v1 = vld [vmem:[#allocation35 + $0x10] ss:$8 sps:$4 sm:$0xff]  }
 0xef0   :  { %v2675_v46 = vadd.f32 1.0, %v4392_v43 }
 0xef1   :  { %v2521_v16 = vmul.f32 %v3599_v13, %v2516_v14  ;;  %v3618_v13 = vld [vmem:[#allocation29 + $0x2] ss:$0 sm:$0xff] }
 0xef2   :  { %4393 = vrcp.f32 %v2675_v46 }
 0xef3   :  { %v2526_v18 = vadd.f32 %v3600_v15, %v2521_v16 }
 0xef5   :  { %v2527_v21 = vpack.c.bf16 %v2526_v18, %v2526_v18 }
 0xef7   :  { %2641 = vmatmul.mubr.bf16.vlgmr.msra.gmra.mrb[32].mxu0 %v2527_v21 }
 0xef8   :  { %3978 = vmatpush3.bf16.msra.mxu0 %v4243_v20  ;;  %3993 = vmatprep.mubr.msk.bf16.mxu0 %vm4996_vm0, %v4995_v0 }
 0xef9   :  { %3979 = vmatprep.subr.bf16.mxu0 %v4995_v0 }
 0xefc   :  { %3980 = vmatpush3.bf16.msra.mxu0 %v4246_v19  ;;  %v4394_v62 = vpop.eup %4393 }
 0xefd   :  { %3981 = vmatprep.subr.bf16.mxu0 %v4995_v0  ;;  %v2678_v63 = vmul.f32 %v4394_v62, %v5568_v6  ;;  %v4298_v62 = vld [vmem:[#allocation37 + $0x58] sm:$0xff]  }
 0xeff   :  { %v2679_v4 = vpack.c.bf16 %v2678_v63, %v2678_v63  ;;  %v4299_v63 = vld [vmem:[#allocation37 + $0x18] sm:$0xff]  }
 0xf00   :  { %3982 = vmatpush3.bf16.msra.mxu0 %v4249_v24  ;;  %v4273_v24 = vld [vmem:[#allocation35 + $0x24] ss:$8 sps:$4 sm:$0xff]  }
 0xf01   :  { %3983 = vmatprep.subr.bf16.mxu0 %v4995_v0 }
 0xf04   :  { %3984 = vmatpush3.bf16.msra.mxu0 %v4252_v26  ;;  %v4274_v26 = vld [vmem:[#allocation35 + $0x30] ss:$8 sps:$4 sm:$0xff]  }
 0xf05   :  { %3985 = vmatprep.subr.bf16.mxu0 %v4995_v0 }
 0xf08   :  { %3986 = vmatpush3.bf16.msra.mxu0 %v4255_v29  ;;  %v4282_v29 = vld [vmem:[#allocation35 + $0x54] ss:$8 sps:$4 sm:$0xff]  }
 0xf09   :  { %3987 = vmatprep.subr.bf16.mxu0 %v4995_v0 }
 0xf0c   :  { %3988 = vmatpush3.bf16.msra.mxu0 %v4258_v32  ;;  %v4283_v32 = vld [vmem:[#allocation35 + $0x60] ss:$8 sps:$4 sm:$0xff]  }
 0xf0d   :  { %3989 = vmatprep.subr.bf16.mxu0 %v4995_v0 }
 0xf10   :  { %3990 = vmatpush3.bf16.msra.mxu0 %v4261_v35  ;;  %v4289_v35 = vld [vmem:[#allocation37 + $0x40] sm:$0xff]  }
 0xf11   :  { %3991 = vmatprep.subr.bf16.mxu0 %v4995_v0 }
 0xf14   :  { %3992 = vmatpush3.bf16.msra.mxu0 %v4264_v38  ;;  %v4293_v38 = vld [vmem:[#allocation37 + $0x8] sm:$0xff]  }
 0xf15   :  { %3848 = vmatprep.subr.bf16.mxu0 %v4289_v35 }
 0xfca   :  { %v2642_v40 = vpop.f32.mrb[32].mxu0 }
 0xfcb   :  { %v2660_v44 = vsub.f32 %v2642_v40, %v2653_v41  ;;  %v2644_v45 = vpop.f32.mrb[33].mxu0 }
 0xfcc   :  { %v2661_v47 = vsub.f32 %v2644_v45, %v2657_v42  ;;  %v2646_v49 = vpop.f32.mrb[34].mxu0 }
 0xfcd   :  { %v2662_v50 = vmul.f32 1.75, %v2660_v44  ;;  %v2647_v51 = vpop.f32.mrb[35].mxu0 }
 0xfce   :  { %v2663_v54 = vmul.f32 1.75, %v2661_v47  ;;  %v3643_v47 = vld [vmem:[#allocation34] ss:$0 sm:$0xff] }
 0xfcf   :  { %v2664_v56 = vmul.f32 %v2662_v50, %v2662_v50  ;;  %v3644_v50 = vld [vmem:[#allocation34 + $0x1] ss:$0 sm:$0xff] }
 0xfd0   :  { %v2665_v57 = vmul.f32 %v2663_v54, %v2663_v54 }
 0xfd1   :  { %v2666_v58 = vsub.f32 0.0, %v2664_v56  ;;  %v4291_v56 = vld [vmem:[#allocation37 + $0x80] sm:$0xff]  }
 0xfd2   :  { %v2667_v59 = vsub.f32 0.0, %v2665_v57 }
 0xfd3   :  { %v2668_v60 = vmul.f32 1.442695, %v2666_v58  ;;  %v4294_v58 = vld [vmem:[#allocation37 + $0x88] sm:$0xff]  }
 0xfd4   :  { %v2670_v61 = vmul.f32 1.442695, %v2667_v59  ;;  %v4295_v59 = vld [vmem:[#allocation37 + $0x50] sm:$0xff]  }
 0xfd5   :  { %4395 = vpow2.f32 %v2668_v60  ;;  %v4296_v60 = vld [vmem:[#allocation37 + $0x10] sm:$0xff]  }
 0xfd6   :  { %4397 = vpow2.f32 %v2670_v61  ;;  %v4297_v61 = vld [vmem:[#allocation37 + $0x90] sm:$0xff]  }
 0xfdf   :  { %v4396_v2 = vpop.eup %4395 }
 0xfe0   :  { %v4398_v3 = vpop.eup %4397  ;;  %v2680_v5 = vpack.c.bf16 %v4396_v2, %v4396_v2  ;;  %v4300_v2 = vld [vmem:[#allocation37 + $0x98] sm:$0xff]  }
 0xfe1   :  { %v2681_v7 = vpack.c.bf16 %v4398_v3, %v4398_v3  ;;  %v4301_v3 = vld [vmem:[#allocation37 + $0x60] sm:$0xff]  }
 0xfe2   :  { %2862 = vmatprep.mubr.bf16.mxu1 %v2680_v5  ;;  %v4302_v5 = vld [vmem:[#allocation37 + $0x20] sm:$0xff]  }
 0xfe3   :  { %2863 = vmatmul.mubr.bf16.vlgmr.msra.gmra.mrb[24].mxu1 %v2679_v4  ;;  %3994 = vmatmul.mubr.bf16.vlgmr.msra.gmra.mrb[36].mxu0 %v2681_v7  ;;  %v4303_v7 = vld [vmem:[#allocation37 + $0xa0] sm:$0xff]   ;;  %v4304_v4 = vld [vmem:[#allocation37 + $0x68] sm:$0xff]  }
 0xfe4   :  { %3115 = vmatprep.mubr.bf16.mxu1 %v4997_v52  ;;  %3084 = vmatpush1.bf16.msra.mxu1 %v4265_v8  ;;  %v4305_v8 = vld [vmem:[#allocation37 + $0x28] sm:$0xff]  }
 0xfe5   :  { %3085 = vmatprep.subr.bf16.mxu1 %v4270_v11  ;;  %3849 = vmatpush3.bf16.msra.mxu0 %v4290_v36  ;;  %v4307_v11 = vld [vmem:[#allocation37 + $0x70] sm:$0xff]  }
 0xfe6   :  { %3850 = vmatprep.subr.bf16.mxu0 %v4292_v37 }
 0xfe8   :  { %3086 = vmatpush1.bf16.msra.mxu1 %v4268_v1  ;;  %v4308_v1 = vld [vmem:[#allocation37 + $0x30] sm:$0xff]  }
 0xfe9   :  { %3087 = vmatprep.subr.bf16.mxu1 %v4273_v24  ;;  %3851 = vmatpush3.bf16.msra.mxu0 %v4293_v38 }
 0xfea   :  { %3852 = vmatprep.subr.bf16.mxu0 %v4295_v59 }
 0xfec   :  { %3088 = vmatpush1.bf16.msra.mxu1 %v4271_v17 }
 0xfed   :  { %3089 = vmatprep.subr.bf16.mxu1 %v4276_v25  ;;  %3853 = vmatpush3.bf16.msra.mxu0 %v4296_v60 }
 0xfee   :  { %3854 = vmatprep.subr.bf16.mxu0 %v4298_v62 }
 0xff0   :  { %3090 = vmatpush1.bf16.msra.mxu1 %v4274_v26 }
 0xff1   :  { %3091 = vmatprep.subr.bf16.mxu1 %v4279_v28  ;;  %3855 = vmatpush3.bf16.msra.mxu0 %v4299_v63 }
 0xff2   :  { %3856 = vmatprep.subr.bf16.mxu0 %v4301_v3 }
 0xff4   :  { %3092 = vmatpush1.bf16.msra.mxu1 %v4277_v27 }
 0xff5   :  { %3093 = vmatprep.subr.bf16.mxu1 %v4282_v29  ;;  %3857 = vmatpush3.bf16.msra.mxu0 %v4302_v5 }
 0xff6   :  { %3858 = vmatprep.subr.bf16.mxu0 %v4304_v4 }
 0xff8   :  { %3094 = vmatpush1.bf16.msra.mxu1 %v4280_v30 }
 0xff9   :  { %3095 = vmatprep.subr.bf16.mxu1 %v4285_v31  ;;  %3859 = vmatpush3.bf16.msra.mxu0 %v4305_v8 }
 0xffa   :  { %3860 = vmatprep.subr.bf16.mxu0 %v4307_v11 }
 0xffc   :  { %3096 = vmatpush1.bf16.msra.mxu1 %v4283_v32 }
 0xffd   :  { %3097 = vmatprep.subr.bf16.mxu1 %v4288_v33  ;;  %3861 = vmatpush3.bf16.msra.mxu0 %v4308_v1 }
0x1000   :  { %3098 = vmatpush1.bf16.msra.mxu1 %v4286_v34 }
0x1001   :  { %3997 = vmatprep.subr.bf16.mxu1 %v4995_v0 }
0x10b6   :  { %v3833_v12 = vpop.f32.mrb[24].mxu1  ;;  %v2904_v6 = vpop.f32.mrb[36].mxu0 }
0x10b7   :  { %v3834_v14 = vpop.f32.mrb[25].mxu1  ;;  %v3995_v15 = vpop.f32.mrb[37].mxu0 }
0x10b8   :  { %v3835_v16 = vadd.f32 %v3834_v14, %v3833_v12  ;;  %v3836_v18 = vpop.f32.mrb[26].mxu1  ;;  %v2907_v20 = vpop.f32.mrb[38].mxu0  ;;  %v4309_v12 = vld [vmem:[#allocation37 + $0xb0] sm:$0xff]   ;;  %v4312_v14 = vld [vmem:[#allocation37 + $0xb8] sm:$0xff]  }
0x10b9   :  { %v3837_v21 = vpop.f32.mrb[27].mxu1  ;;  %v3996_v19 = vpop.f32.mrb[39].mxu0 }
0x10ba   :  { %v2865_v22 = vadd.f32 %v3835_v16, %v3618_v13  ;;  %v4311_v13 = vld [vmem:[#allocation37 + $0x38] sm:$0xff]  }
0x10bb   :  { %v2978_v16 = vld [vmem:[#allocation34 + $0x3] ss:$4 sm:$0x3] }
0x10bc   :  { %v5589_v52 = vadd.f32 %v2904_v6, %v2865_v22  ;;  %v4310_v6 = vld [vmem:[#allocation37 + $0x78] sm:$0xff]   ;;  %v3128_v18 = vrot.slane %v2978_v16, %v5494_v53  ;;  %v3132_v20 = vrot.slane %v2978_v16, %v5496_v55 }
0x10bd   :  { %3862 = vmatprep.subr.bf16.mxu0 %v4310_v6 }
0x10be   :  { %2979 = vadd.xlane.f32.xlu0 %v5589_v52  ;;  %v2982_v23 = vmul.f32 %v5589_v52, %v5589_v52  ;;  %3863 = vmatpush3.bf16.msra.mxu0 %v4311_v13  ;;  %v3661_v15 = vmul.f32 -1.442695, %v5589_v52 }
0x10c0   :  { %2983 = vadd.xlane.f32.xlu1 %v2982_v23 }
0x114b   :  { %v2980_v39 = vpop.xlane.xlu0 %2979 }
0x114c   :  { %v2981_v9 = vmul.f32 0.03125, %v2980_v39 }
0x114d   :  { %v2984_v41 = vpop.xlane.xlu1 %2983 }
0x114e   :  { %v2986_v42 = vmul.f32 %v2981_v9, %v2981_v9  ;;  %v2985_v43 = vmul.f32 0.03125, %v2984_v41  ;;  %v2988_v45 = vsub.f32 %v5589_v52, %v2981_v9  ;;  %v3662_v41 = vld [vmem:[#allocation34 + $0x2] ss:$0 sm:$0xff] }
0x1150   :  { %v2987_v40 = vsub.f32 %v2985_v43, %v2986_v42 }
0x1152   :  { %v2989_v44 = vadd.f32 1e-05, %v2987_v40  ;;  %v3386_v40 = vand.u32 127, %v1012_v48 }
0x1154   :  { %4399 = vrsqrt.f32 %v2989_v44  ;;  %vm3387_vm2 = vcmp.lt.s32.totalorder %v3386_v40, 4 }
0x1155   :  { %4401 = vpow2.f32 %v3661_v15 }
0x115e   :  { %v4400_v46 = vpop.eup %4399 }
0x115f   :  { %v2991_v49 = vmul.f32 %v4400_v46, %v2988_v45  ;;  %v4402_v21 = vpop.eup %4401 }
0x1161   :  { %v2996_v51 = vmul.f32 %v3643_v47, %v2991_v49 }
0x1163   :  { %v3001_v54 = vadd.f32 %v3644_v50, %v2996_v51 }
0x1165   :  { %v3002_v57 = vpack.c.bf16 %v3001_v54, %v3001_v54 }
0x1167   :  { %3116 = vmatmul.mubr.bf16.vlgmr.msra.gmra.mrb[28].mxu1 %v3002_v57 }
0x1168   :  { %3998 = vmatpush3.bf16.msra.mxu1 %v4291_v56  ;;  %4013 = vmatprep.mubr.msk.bf16.mxu1 %vm4996_vm0, %v4995_v0 }
0x1169   :  { %3999 = vmatprep.subr.bf16.mxu1 %v4995_v0 }
0x116c   :  { %4000 = vmatpush3.bf16.msra.mxu1 %v4294_v58 }
0x116d   :  { %4001 = vmatprep.subr.bf16.mxu1 %v4995_v0 }
0x1170   :  { %4002 = vmatpush3.bf16.msra.mxu1 %v4297_v61 }
0x1171   :  { %4003 = vmatprep.subr.bf16.mxu1 %v4995_v0 }
0x1174   :  { %4004 = vmatpush3.bf16.msra.mxu1 %v4300_v2 }
0x1175   :  { %4005 = vmatprep.subr.bf16.mxu1 %v4995_v0 }
0x1178   :  { %4006 = vmatpush3.bf16.msra.mxu1 %v4303_v7 }
0x1179   :  { %4007 = vmatprep.subr.bf16.mxu1 %v4995_v0 }
0x117c   :  { %4008 = vmatpush3.bf16.msra.mxu1 %v4306_v10 }
0x117d   :  { %4009 = vmatprep.subr.bf16.mxu1 %v4995_v0 }
0x1180   :  { %4010 = vmatpush3.bf16.msra.mxu1 %v4309_v12 }
0x1181   :  { %4011 = vmatprep.subr.bf16.mxu1 %v4995_v0  ;;  %v3150_v0 = vadd.f32 1.0, %v4402_v21 }
0x1183   :  { %4403 = vrcp.f32 %v3150_v0 }
0x1184   :  { %4012 = vmatpush3.bf16.msra.mxu1 %v4312_v14 }
0x118d   :  { %v4404_v53 = vpop.eup %4403 }
0x118e   :  { %v3153_v55 = vmul.f32 %v4404_v53, %v5589_v52 }
0x1190   :  { %v3154_v38 = vpack.c.bf16 %v3153_v55, %v3153_v55 }
0x123a   :  { %v3117_v19 = vpop.f32.mrb[28].mxu1 }
0x123b   :  { %v3135_v22 = vsub.f32 %v3117_v19, %v3128_v18  ;;  %v3119_v23 = vpop.f32.mrb[29].mxu1 }
0x123c   :  { %v3136_v24 = vsub.f32 %v3119_v23, %v3132_v20  ;;  %v3121_v17 = vpop.f32.mrb[30].mxu1 }
0x123d   :  { %v3137_v25 = vmul.f32 1.75, %v3135_v22  ;;  %v3122_v26 = vpop.f32.mrb[31].mxu1 }
0x123e   :  { %v3138_v27 = vmul.f32 1.75, %v3136_v24 }
0x123f   :  { %v3139_v28 = vmul.f32 %v3137_v25, %v3137_v25 }
0x1240   :  { %v3140_v29 = vmul.f32 %v3138_v27, %v3138_v27 }
0x1241   :  { %v3141_v30 = vsub.f32 0.0, %v3139_v28 }
0x1242   :  { %v3142_v31 = vsub.f32 0.0, %v3140_v29 }
0x1243   :  { %v3143_v32 = vmul.f32 1.442695, %v3141_v30 }
0x1244   :  { %v3145_v33 = vmul.f32 1.442695, %v3142_v31 }
0x1245   :  { %4405 = vpow2.f32 %v3143_v32 }
0x1246   :  { %4407 = vpow2.f32 %v3145_v33 }
0x124f   :  { %v4406_v34 = vpop.eup %4405 }
0x1250   :  { %v4408_v35 = vpop.eup %4407  ;;  %v3155_v36 = vpack.c.bf16 %v4406_v34, %v4406_v34 }
0x1251   :  { %v3156_v37 = vpack.c.bf16 %v4408_v35, %v4408_v35 }
0x1252   :  { %3337 = vmatprep.mubr.bf16.mxu0 %v3155_v36 }
0x1253   :  { %3338 = vmatmul.mubr.bf16.vlgmr.msra.gmra.mrb[40].mxu0 %v3154_v38  ;;  %4014 = vmatmul.mubr.bf16.vlgmr.msra.gmra.mrb[32].mxu1 %v3156_v37 }
0x1326   :  { %v3864_v39 = vpop.f32.mrb[40].mxu0  ;;  %v3379_v9 = vpop.f32.mrb[32].mxu1 }
0x1327   :  { %v3865_v42 = vpop.f32.mrb[41].mxu0  ;;  %v4015_v43 = vpop.f32.mrb[33].mxu1 }
0x1328   :  { %v3866_v44 = vadd.f32 %v3865_v42, %v3864_v39  ;;  %v3867_v45 = vpop.f32.mrb[42].mxu0  ;;  %v3382_v46 = vpop.f32.mrb[34].mxu1 }
0x1329   :  { %v3868_v47 = vpop.f32.mrb[43].mxu0  ;;  %v4016_v52 = vpop.f32.mrb[35].mxu1 }
0x132a   :  { %v3340_v49 = vadd.f32 %v3866_v44, %v3662_v41 }
0x132c   :  { %v3380_v50 = vadd.f32 %v3379_v9, %v3340_v49 }
0x132e   :  { %v3388_v51 = vsel %vm3387_vm2, %v3380_v50, -1e+30 }
0x132f   :  { %3389 = vmax.xlane.f32.xlu0 %v3388_v51 }
0x13bc   :  { %v3390_v54 = vpop.xlane.xlu0 %3389 }
0x13bd   :  { %v3391_v56 = vsub.f32 %v3388_v51, %v3390_v54 }
0x13bf   :  { %v3392_v57 = vmul.f32 1.442695, %v3391_v56 }
0x13c1   :  { %4409 = vpow2.f32 %v3392_v57 }
0x13cb   :  { %v4410_v58 = vpop.eup %4409 }
0x13cc   :  { %3394 = vadd.xlane.f32.xlu1 %v4410_v58 }
0x1459   :  { %v3395_v59 = vpop.xlane.xlu1 %3394 }
0x145a   :  { %4411 = vlog2.f32 %v3395_v59 }
0x1464   :  { %v4412_v60 = vpop.eup %4411 }
0x1465   :  { %v3397_v48 = vmul.f32 0.6931472, %v4412_v60 }
0x1467   :  { %v3398_v61 = vsub.f32 %v3391_v56, %v3397_v48 }
0x1469   :  { %3399 = vst [vmem:[#allocation38] sm:$0xff] %v3398_v61 }
0x146a   :  { %4931 = shalt.err (!%p4928_p6)
}
0x146b   :  { %s5678_s12 = sld [smem:[#allocation62_spill]] }
0x1471   :  { %s4932_s4 = scalar_lea.hbm %s5678_s12, 128 }
0x1472   :  { %p4933_p7 = scmp.ne.s32.totalorder %s5678_s12, %s4932_s4  ;;  %p4936_p8 = scmp.lt.u32.totalorder %s4932_s4, %s5678_s12 }
0x1474   :  { %p4938_p9 = pnand %p4936_p8, %p4933_p7 }
0x1476   :  { %4941 = shalt.err (!%p4938_p9)
}
0x1477   :  { %3409 = dma.vmem_to_hbm [thread:$0]  %s3407_s5, 128, %s5678_s12, [#allocation4]  }
0x1478   :  { %4966 = dma.done.wait [#allocation4], 128  }
0x1479   :  { %4967 = vsyncadd [#allocation4], 4294967168 }
0x147a   :  { %3413 = vsyncpa [#allocation3], 1 }
0x147b   :  { %3414 = vsyncpa [#allocation6], 1 }
0x147c   :  { %3415 = vsyncpa [#allocation9], 1 }
0x147d   :  { %3416 = vsyncpa [#allocation12], 1 }
0x147e   :  { %3417 = vsyncpa [#allocation15], 1 }
0x147f   :  { %3418 = vsyncpa [#allocation18], 1 }
0x1480   :  { %3419 = vsyncpa [#allocation21], 1 }
0x1481   :  { %3420 = vsyncpa [#allocation24], 1 }
0x1482   :  { %3421 = vsyncpa [#allocation27], 1 }
0x1483   :  { %3422 = vsyncpa [#allocation30], 1 }
0x1484   :  { %3423 = vsyncpa [#allocation33], 1 }
0x1485   :  { %3424 = vsyncpa [#allocation36], 1 }
0x1486   :  { %3425 = vsyncpa [#allocation4], 1 }

</bundles_post_ra>
